<compile_context>
chip_gen: v7x
topology: tpu7x:2x2x1
jax: 0.10.0
libtpu: 0.0.40
codegen_flags: <defaults>
</compile_context>

<pallas_src>
import functools

import jax
import jax.numpy as jnp
import numpy as np
from jax.experimental import pallas as pl
from jax.experimental.pallas import tpu as pltpu


def _gating_kernel(x_ref, w_ref, idx_ref, hist_ref, gsum_ref, *,
                   num_experts_per_tok, k_pad, routed_scaling_factor):
    j = pl.program_id(1)          # seq-tile index within this core's shard
    K = num_experts_per_tok

    # Zero this core's accumulators on its first tile.
    @pl.when(j == 0)
    def _():
        hist_ref[...] = jnp.zeros_like(hist_ref)
        gsum_ref[...] = jnp.zeros_like(gsum_ref)

    logits = x_ref[...].astype(jnp.float32)            # (T, E)
    T, E = logits.shape

    # Row-stabilized exponentials.  Top-k is done on `e` directly (softmax is
    # monotone), so the (T, E) divide is replaced by a (T, 1) reciprocal that
    # only touches the selected values and the gate-sum accumulation.
    m = jnp.max(logits, axis=-1, keepdims=True)        # (T, 1)
    e = jnp.exp(logits - m)                            # (T, E), EUP
    denom = jnp.sum(e, axis=-1, keepdims=True)         # (T, 1)
    inv_denom = 1.0 / denom                            # exact: keeps ~1 ulp parity

    eidx = jax.lax.broadcasted_iota(jnp.int32, (T, E), 1)

    # Iterative top-k (K tiny and static): argmax, record, mask, repeat.
    # Histogram is accumulated as a running one-hot mask (cheap VPU adds) and
    # reduced over the token axis ONCE after the loop.
    # TODO(synk): NaN logits would select expert id E here; torch.topk differs.
    work = e
    selected = jnp.zeros((T, E), jnp.float32)
    vals, idxs = [], []
    for _ in range(K):
        vmax = jnp.max(work, axis=-1, keepdims=True)                               # (T, 1)
        sel = jnp.min(jnp.where(work == vmax, eidx, E), axis=-1, keepdims=True)    # (T, 1)
        onehot = (eidx == sel)                                                     # (T, E)
        selected = selected + onehot.astype(jnp.float32)
        vals.append(vmax)
        idxs.append(sel)
        work = jnp.where(onehot, -1.0, work)           # e > 0, so -1 is a safe mask

    w_k = jnp.concatenate(vals, axis=-1) * inv_denom * routed_scaling_factor   # (T, K)
    i_k = jnp.concatenate(idxs, axis=-1)                                       # (T, K)

    # Lane-dense stores: pad the K columns out to k_pad (=128) lanes so the
    # store is an unmasked vst and the writeback DMA is dense.  The wrapper
    # slices the outputs back to (S, K).
    w_ref[...] = jnp.concatenate(
        [w_k, jnp.zeros((T, k_pad - K), jnp.float32)], axis=-1).astype(w_ref.dtype)
    idx_ref[...] = jnp.concatenate(
        [i_k, jnp.zeros((T, k_pad - K), jnp.int32)], axis=-1)

    # Per-core partial accumulators, resident across the j (arbitrary) axis.
    hist_tile = jnp.sum(selected, axis=0, keepdims=True).astype(jnp.int32)     # (1, E)
    gsum_tile = jnp.sum(e * inv_denom, axis=0, keepdims=True)                  # (1, E)
    hist_ref[...] = hist_ref[...] + hist_tile.reshape(1, 1, E)
    gsum_ref[...] = gsum_ref[...] + gsum_tile.reshape(1, 1, E)


def dropless_fused_gating(x, *, num_experts_per_tok=6, routed_scaling_factor=16.0,
                          tile=None, num_core_splits=2):
    """x: (seq_len, n_routed_experts) f32 router logits.

    Returns (weight_out (S,K) f32, loss (1,) f32, topk_res (S,K) i32, histc (E,) i32).
    """
    S, E = x.shape
    K = num_experts_per_tok
    cap_factor = float(E) / float(S * S * K)
    k_pad = ((K + 127) // 128) * 128          # lane-dense output width (>= 128)

    # Split the token axis across cores (2 TCs on v7x; harmless on v5e/v6e).
    if S % num_core_splits != 0:
        num_core_splits = 1
    per_core = S // num_core_splits

    # Big tiles: per-grid-step overhead is ~0.35 us, so aim for 512 tokens/tile.
    if tile is None:
        if per_core <= 512:
            tile = per_core
        else:
            tile = max(t for t in (512, 256, 128, 64, 32, 16, 8) if per_core % t == 0)
    assert per_core % tile == 0 and tile % 8 == 0, (S, num_core_splits, tile)
    steps = per_core // tile

    kernel = functools.partial(
        _gating_kernel,
        num_experts_per_tok=K,
        k_pad=k_pad,
        routed_scaling_factor=routed_scaling_factor,
    )

    out_shapes = (
        jax.ShapeDtypeStruct((S, k_pad), jnp.float32),              # weight_out (padded)
        jax.ShapeDtypeStruct((S, k_pad), jnp.int32),                # topk_res   (padded)
        jax.ShapeDtypeStruct((num_core_splits, 1, E), jnp.int32),   # per-core histc
        jax.ShapeDtypeStruct((num_core_splits, 1, E), jnp.float32), # per-core gate sums
    )

    tok_map = lambda c, j: (c * steps + j, 0)
    acc_map = lambda c, j: (c, 0, 0)

    w_pad, idx_pad, hist_parts, gsum_parts = pl.pallas_call(
        kernel,
        out_shape=out_shapes,
        grid_spec=pltpu.PrefetchScalarGridSpec(
            num_scalar_prefetch=0,
            grid=(num_core_splits, steps),
            in_specs=[pl.BlockSpec((tile, E), tok_map)],
            out_specs=[
                pl.BlockSpec((tile, k_pad), tok_map),
                pl.BlockSpec((tile, k_pad), tok_map),
                pl.BlockSpec((1, 1, E), acc_map),
                pl.BlockSpec((1, 1, E), acc_map),
            ],
        ),
        compiler_params=pltpu.CompilerParams(
            dimension_semantics=("parallel", "arbitrary"),
            vmem_limit_bytes=32 * 1024 * 1024),
    )(x)

    # Tiny cross-core combine + loss finalize (a product of global sums, so it
    # cannot be finalized per-core inside the kernel).
    hist = jnp.sum(hist_parts, axis=(0, 1))                                    # (E,) i32
    gsum = jnp.sum(gsum_parts, axis=(0, 1))                                    # (E,) f32
    loss = (cap_factor * jnp.sum(hist.astype(jnp.float32) * gsum)).reshape(1)  # (1,) f32
    return w_pad[:, :K], loss, idx_pad[:, :K], hist


if __name__ == "__main__":
    # Small, module-consistent shapes: bsz=1, seq_len=512, n_routed_experts=64, k=6.
    S, E, K = 512, 64, 6
    routed_scaling_factor = 16.0

    key = jax.random.PRNGKey(0)
    x = jax.random.normal(key, (S, E), dtype=jnp.float32)

    # tile=128 here so the demo exercises both the core split (grid axis 0) and
    # the cross-tile accumulation (grid axis 1).  Real sizes use the 512 default.
    w, loss, topk, hist = dropless_fused_gating(
        x, num_experts_per_tok=K, routed_scaling_factor=routed_scaling_factor, tile=128)
    jax.block_until_ready((w, loss, topk, hist))

    # Pure-JAX reference for a correctness sanity check.
    gates_r = jax.nn.softmax(x, axis=-1)
    vals_r, idx_r = jax.lax.top_k(gates_r, K)
    w_r = vals_r * routed_scaling_factor
    hist_r = jnp.sum(jax.nn.one_hot(idx_r, E, dtype=jnp.int32), axis=(0, 1))
    cap_factor = float(E) / float(S * S * K)
    loss_r = cap_factor * jnp.sum(hist_r.astype(jnp.float32) * jnp.sum(gates_r, axis=0))

    np.testing.assert_allclose(np.asarray(w), np.asarray(w_r), rtol=1e-5, atol=1e-6)
    np.testing.assert_array_equal(np.asarray(topk), np.asarray(idx_r))
    np.testing.assert_array_equal(np.asarray(hist), np.asarray(hist_r))
    np.testing.assert_allclose(np.asarray(loss[0]), np.asarray(loss_r), rtol=1e-5, atol=1e-6)

    print("KERNEL_OK")
</pallas_src>

<mosaic_0001>
module attributes {stable_mosaic.version = 11 : i64} {
  func.func @_gating_kernel(%arg0: i32, %arg1: i32, %arg2: memref<128x64xf32, #tpu.memory_space<vmem>>, %arg3: memref<128x128xf32, #tpu.memory_space<vmem>>, %arg4: memref<128x128xi32, #tpu.memory_space<vmem>>, %arg5: memref<1x1x64xi32, #tpu.memory_space<vmem>>, %arg6: memref<1x1x64xf32, #tpu.memory_space<vmem>>) attributes {dimension_semantics = [#tpu.dimension_semantics<parallel>, #tpu.dimension_semantics<arbitrary>], iteration_bounds = array<i64: 2, 2>, scalar_prefetch = 0 : i64, scratch_operands = 0 : i64, tpu.core_type = #tpu.core_type<tc>, window_params = [{transform_indices = @transform_0, window_bounds = array<i64: 128, 64>}, {transform_indices = @transform_1, window_bounds = array<i64: 128, 128>}, {transform_indices = @transform_2, window_bounds = array<i64: 128, 128>}, {transform_indices = @transform_3, window_bounds = array<i64: 1, 1, 64>}, {transform_indices = @transform_4, window_bounds = array<i64: 1, 1, 64>}]} {
    %c0_i32 = arith.constant 0 : i32
    %0 = arith.cmpi eq, %arg1, %c0_i32 : i32
    %1 = arith.extui %0 : i1 to i32
    %c0_i32_0 = arith.constant 0 : i32
    %2 = arith.cmpi ne, %1, %c0_i32_0 : i32
    scf.if %2 {
      %c0_i32_48 = arith.constant 0 : i32
      %130 = vector.broadcast %c0_i32_48 : i32 to vector<1x1x64xi32>
      %c0_49 = arith.constant 0 : index
      %c0_50 = arith.constant 0 : index
      %c0_51 = arith.constant 0 : index
      %131 = vector.load %arg5[%c0_49, %c0_50, %c0_51] : memref<1x1x64xi32, #tpu.memory_space<vmem>>, vector<1x1x64xi32>
      tpu.vector_store %arg5[%c0_49, %c0_50, %c0_51], %130 {strides = array<i32>} : memref<1x1x64xi32, #tpu.memory_space<vmem>>, vector<1x1x64xi32>,
      %cst_52 = arith.constant 0.000000e+00 : f32
      %132 = vector.broadcast %cst_52 : f32 to vector<1x1x64xf32>
      %c0_53 = arith.constant 0 : index
      %c0_54 = arith.constant 0 : index
      %c0_55 = arith.constant 0 : index
      %133 = vector.load %arg6[%c0_53, %c0_54, %c0_55] : memref<1x1x64xf32, #tpu.memory_space<vmem>>, vector<1x1x64xf32>
      tpu.vector_store %arg6[%c0_53, %c0_54, %c0_55], %132 {strides = array<i32>} : memref<1x1x64xf32, #tpu.memory_space<vmem>>, vector<1x1x64xf32>,
    } else {
    }
    %c0 = arith.constant 0 : index
    %c0_1 = arith.constant 0 : index
    %3 = vector.load %arg2[%c0, %c0_1] : memref<128x64xf32, #tpu.memory_space<vmem>>, vector<128x64xf32>
    %cst = arith.constant dense<0xFF800000> : vector<128xf32>
    %4 = vector.multi_reduction <maximumf>, %3, %cst [1] : vector<128x64xf32> to vector<128xf32>
    %5 = vector.shape_cast %4 : vector<128xf32> to vector<128x1xf32>
    %6 = vector.broadcast %5 : vector<128x1xf32> to vector<128x64xf32>
    %7 = arith.subf %3, %6 : vector<128x64xf32>
    %8 = math.exp %7 : vector<128x64xf32>
    %cst_2 = arith.constant dense<0.000000e+00> : vector<128xf32>
    %9 = vector.multi_reduction <add>, %8, %cst_2 [1] : vector<128x64xf32> to vector<128xf32>
    %10 = vector.shape_cast %9 : vector<128xf32> to vector<128x1xf32>
    %cst_3 = arith.constant 1.000000e+00 : f32
    %11 = vector.broadcast %cst_3 : f32 to vector<128x1xf32>
    %12 = arith.divf %11, %10 : vector<128x1xf32>
    %13 = tpu.iota {dimensions = array<i32: 1>} : vector<128x64xi32>
    %cst_4 = arith.constant 0.000000e+00 : f32
    %14 = vector.broadcast %cst_4 : f32 to vector<128x64xf32>
    %cst_5 = arith.constant dense<0xFF800000> : vector<128xf32>
    %15 = vector.multi_reduction <maximumf>, %8, %cst_5 [1] : vector<128x64xf32> to vector<128xf32>
    %16 = vector.shape_cast %15 : vector<128xf32> to vector<128x1xf32>
    %17 = vector.broadcast %16 : vector<128x1xf32> to vector<128x64xf32>
    %18 = arith.cmpf oeq, %8, %17 : vector<128x64xf32>
    %c64_i32 = arith.constant 64 : i32
    %19 = vector.broadcast %c64_i32 : i32 to vector<128x64xi32>
    %20 = arith.select %18, %13, %19 : vector<128x64xi1>, vector<128x64xi32>
    %cst_6 = arith.constant dense<2147483647> : vector<128xi32>
    %21 = vector.multi_reduction <minsi>, %20, %cst_6 [1] : vector<128x64xi32> to vector<128xi32>
    %22 = vector.shape_cast %21 : vector<128xi32> to vector<128x1xi32>
    %23 = vector.broadcast %22 : vector<128x1xi32> to vector<128x64xi32>
    %24 = arith.cmpi eq, %13, %23 : vector<128x64xi32>
    %25 = arith.extui %24 : vector<128x64xi1> to vector<128x64xi32>
    %26 = arith.sitofp %25 : vector<128x64xi32> to vector<128x64xf32>
    %27 = arith.addf %14, %26 : vector<128x64xf32>
    %cst_7 = arith.constant -1.000000e+00 : f32
    %28 = vector.broadcast %cst_7 : f32 to vector<128x64xf32>
    %29 = arith.select %24, %28, %8 : vector<128x64xi1>, vector<128x64xf32>
    %cst_8 = arith.constant dense<0xFF800000> : vector<128xf32>
    %30 = vector.multi_reduction <maximumf>, %29, %cst_8 [1] : vector<128x64xf32> to vector<128xf32>
    %31 = vector.shape_cast %30 : vector<128xf32> to vector<128x1xf32>
    %32 = vector.broadcast %31 : vector<128x1xf32> to vector<128x64xf32>
    %33 = arith.cmpf oeq, %29, %32 : vector<128x64xf32>
    %c64_i32_9 = arith.constant 64 : i32
    %34 = vector.broadcast %c64_i32_9 : i32 to vector<128x64xi32>
    %35 = arith.select %33, %13, %34 : vector<128x64xi1>, vector<128x64xi32>
    %cst_10 = arith.constant dense<2147483647> : vector<128xi32>
    %36 = vector.multi_reduction <minsi>, %35, %cst_10 [1] : vector<128x64xi32> to vector<128xi32>
    %37 = vector.shape_cast %36 : vector<128xi32> to vector<128x1xi32>
    %38 = vector.broadcast %37 : vector<128x1xi32> to vector<128x64xi32>
    %39 = arith.cmpi eq, %13, %38 : vector<128x64xi32>
    %40 = arith.extui %39 : vector<128x64xi1> to vector<128x64xi32>
    %41 = arith.sitofp %40 : vector<128x64xi32> to vector<128x64xf32>
    %42 = arith.addf %27, %41 : vector<128x64xf32>
    %cst_11 = arith.constant -1.000000e+00 : f32
    %43 = vector.broadcast %cst_11 : f32 to vector<128x64xf32>
    %44 = arith.select %39, %43, %29 : vector<128x64xi1>, vector<128x64xf32>
    %cst_12 = arith.constant dense<0xFF800000> : vector<128xf32>
    %45 = vector.multi_reduction <maximumf>, %44, %cst_12 [1] : vector<128x64xf32> to vector<128xf32>
    %46 = vector.shape_cast %45 : vector<128xf32> to vector<128x1xf32>
    %47 = vector.broadcast %46 : vector<128x1xf32> to vector<128x64xf32>
    %48 = arith.cmpf oeq, %44, %47 : vector<128x64xf32>
    %c64_i32_13 = arith.constant 64 : i32
    %49 = vector.broadcast %c64_i32_13 : i32 to vector<128x64xi32>
    %50 = arith.select %48, %13, %49 : vector<128x64xi1>, vector<128x64xi32>
    %cst_14 = arith.constant dense<2147483647> : vector<128xi32>
    %51 = vector.multi_reduction <minsi>, %50, %cst_14 [1] : vector<128x64xi32> to vector<128xi32>
    %52 = vector.shape_cast %51 : vector<128xi32> to vector<128x1xi32>
    %53 = vector.broadcast %52 : vector<128x1xi32> to vector<128x64xi32>
    %54 = arith.cmpi eq, %13, %53 : vector<128x64xi32>
    %55 = arith.extui %54 : vector<128x64xi1> to vector<128x64xi32>
    %56 = arith.sitofp %55 : vector<128x64xi32> to vector<128x64xf32>
    %57 = arith.addf %42, %56 : vector<128x64xf32>
    %cst_15 = arith.constant -1.000000e+00 : f32
    %58 = vector.broadcast %cst_15 : f32 to vector<128x64xf32>
    %59 = arith.select %54, %58, %44 : vector<128x64xi1>, vector<128x64xf32>
    %cst_16 = arith.constant dense<0xFF800000> : vector<128xf32>
    %60 = vector.multi_reduction <maximumf>, %59, %cst_16 [1] : vector<128x64xf32> to vector<128xf32>
    %61 = vector.shape_cast %60 : vector<128xf32> to vector<128x1xf32>
    %62 = vector.broadcast %61 : vector<128x1xf32> to vector<128x64xf32>
    %63 = arith.cmpf oeq, %59, %62 : vector<128x64xf32>
    %c64_i32_17 = arith.constant 64 : i32
    %64 = vector.broadcast %c64_i32_17 : i32 to vector<128x64xi32>
    %65 = arith.select %63, %13, %64 : vector<128x64xi1>, vector<128x64xi32>
    %cst_18 = arith.constant dense<2147483647> : vector<128xi32>
    %66 = vector.multi_reduction <minsi>, %65, %cst_18 [1] : vector<128x64xi32> to vector<128xi32>
    %67 = vector.shape_cast %66 : vector<128xi32> to vector<128x1xi32>
    %68 = vector.broadcast %67 : vector<128x1xi32> to vector<128x64xi32>
    %69 = arith.cmpi eq, %13, %68 : vector<128x64xi32>
    %70 = arith.extui %69 : vector<128x64xi1> to vector<128x64xi32>
    %71 = arith.sitofp %70 : vector<128x64xi32> to vector<128x64xf32>
    %72 = arith.addf %57, %71 : vector<128x64xf32>
    %cst_19 = arith.constant -1.000000e+00 : f32
    %73 = vector.broadcast %cst_19 : f32 to vector<128x64xf32>
    %74 = arith.select %69, %73, %59 : vector<128x64xi1>, vector<128x64xf32>
    %cst_20 = arith.constant dense<0xFF800000> : vector<128xf32>
    %75 = vector.multi_reduction <maximumf>, %74, %cst_20 [1] : vector<128x64xf32> to vector<128xf32>
    %76 = vector.shape_cast %75 : vector<128xf32> to vector<128x1xf32>
    %77 = vector.broadcast %76 : vector<128x1xf32> to vector<128x64xf32>
    %78 = arith.cmpf oeq, %74, %77 : vector<128x64xf32>
    %c64_i32_21 = arith.constant 64 : i32
    %79 = vector.broadcast %c64_i32_21 : i32 to vector<128x64xi32>
    %80 = arith.select %78, %13, %79 : vector<128x64xi1>, vector<128x64xi32>
    %cst_22 = arith.constant dense<2147483647> : vector<128xi32>
    %81 = vector.multi_reduction <minsi>, %80, %cst_22 [1] : vector<128x64xi32> to vector<128xi32>
    %82 = vector.shape_cast %81 : vector<128xi32> to vector<128x1xi32>
    %83 = vector.broadcast %82 : vector<128x1xi32> to vector<128x64xi32>
    %84 = arith.cmpi eq, %13, %83 : vector<128x64xi32>
    %85 = arith.extui %84 : vector<128x64xi1> to vector<128x64xi32>
    %86 = arith.sitofp %85 : vector<128x64xi32> to vector<128x64xf32>
    %87 = arith.addf %72, %86 : vector<128x64xf32>
    %cst_23 = arith.constant -1.000000e+00 : f32
    %88 = vector.broadcast %cst_23 : f32 to vector<128x64xf32>
    %89 = arith.select %84, %88, %74 : vector<128x64xi1>, vector<128x64xf32>
    %cst_24 = arith.constant dense<0xFF800000> : vector<128xf32>
    %90 = vector.multi_reduction <maximumf>, %89, %cst_24 [1] : vector<128x64xf32> to vector<128xf32>
    %91 = vector.shape_cast %90 : vector<128xf32> to vector<128x1xf32>
    %92 = vector.broadcast %91 : vector<128x1xf32> to vector<128x64xf32>
    %93 = arith.cmpf oeq, %89, %92 : vector<128x64xf32>
    %c64_i32_25 = arith.constant 64 : i32
    %94 = vector.broadcast %c64_i32_25 : i32 to vector<128x64xi32>
    %95 = arith.select %93, %13, %94 : vector<128x64xi1>, vector<128x64xi32>
    %cst_26 = arith.constant dense<2147483647> : vector<128xi32>
    %96 = vector.multi_reduction <minsi>, %95, %cst_26 [1] : vector<128x64xi32> to vector<128xi32>
    %97 = vector.shape_cast %96 : vector<128xi32> to vector<128x1xi32>
    %98 = vector.broadcast %97 : vector<128x1xi32> to vector<128x64xi32>
    %99 = arith.cmpi eq, %13, %98 : vector<128x64xi32>
    %100 = arith.extui %99 : vector<128x64xi1> to vector<128x64xi32>
    %101 = arith.sitofp %100 : vector<128x64xi32> to vector<128x64xf32>
    %102 = arith.addf %87, %101 : vector<128x64xf32>
    %103 = tpu.concatenate %16, %31, %46, %61, %76, %91 in 1 : vector<128x1xf32>, vector<128x1xf32>, vector<128x1xf32>, vector<128x1xf32>, vector<128x1xf32>, vector<128x1xf32> -> vector<128x6xf32>
    %104 = vector.broadcast %12 : vector<128x1xf32> to vector<128x6xf32>
    %105 = arith.mulf %103, %104 : vector<128x6xf32>
    %cst_27 = arith.constant 1.600000e+01 : f32
    %106 = vector.broadcast %cst_27 : f32 to vector<128x6xf32>
    %107 = arith.mulf %105, %106 : vector<128x6xf32>
    %108 = tpu.concatenate %22, %37, %52, %67, %82, %97 in 1 : vector<128x1xi32>, vector<128x1xi32>, vector<128x1xi32>, vector<128x1xi32>, vector<128x1xi32>, vector<128x1xi32> -> vector<128x6xi32>
    %cst_28 = arith.constant 0.000000e+00 : f32
    %109 = vector.broadcast %cst_28 : f32 to vector<128x122xf32>
    %110 = tpu.concatenate %107, %109 in 1 : vector<128x6xf32>, vector<128x122xf32> -> vector<128x128xf32>
    %c0_29 = arith.constant 0 : index
    %c0_30 = arith.constant 0 : index
    %111 = vector.load %arg3[%c0_29, %c0_30] : memref<128x128xf32, #tpu.memory_space<vmem>>, vector<128x128xf32>
    tpu.vector_store %arg3[%c0_29, %c0_30], %110 {strides = array<i32>} : memref<128x128xf32, #tpu.memory_space<vmem>>, vector<128x128xf32>,
    %c0_i32_31 = arith.constant 0 : i32
    %112 = vector.broadcast %c0_i32_31 : i32 to vector<128x122xi32>
    %113 = tpu.concatenate %108, %112 in 1 : vector<128x6xi32>, vector<128x122xi32> -> vector<128x128xi32>
    %c0_32 = arith.constant 0 : index
    %c0_33 = arith.constant 0 : index
    %114 = vector.load %arg4[%c0_32, %c0_33] : memref<128x128xi32, #tpu.memory_space<vmem>>, vector<128x128xi32>
    tpu.vector_store %arg4[%c0_32, %c0_33], %113 {strides = array<i32>} : memref<128x128xi32, #tpu.memory_space<vmem>>, vector<128x128xi32>,
    %cst_34 = arith.constant dense<0.000000e+00> : vector<64xf32>
    %115 = vector.multi_reduction <add>, %102, %cst_34 [0] : vector<128x64xf32> to vector<64xf32>
    %116 = vector.shape_cast %115 : vector<64xf32> to vector<1x64xf32>
    %117 = arith.fptosi %116 : vector<1x64xf32> to vector<1x64xi32>
    %118 = vector.broadcast %12 : vector<128x1xf32> to vector<128x64xf32>
    %119 = arith.mulf %8, %118 : vector<128x64xf32>
    %cst_35 = arith.constant dense<0.000000e+00> : vector<64xf32>
    %120 = vector.multi_reduction <add>, %119, %cst_35 [0] : vector<128x64xf32> to vector<64xf32>
    %121 = vector.shape_cast %120 : vector<64xf32> to vector<1x64xf32>
    %c0_36 = arith.constant 0 : index
    %c0_37 = arith.constant 0 : index
    %c0_38 = arith.constant 0 : index
    %122 = vector.load %arg5[%c0_36, %c0_37, %c0_38] : memref<1x1x64xi32, #tpu.memory_space<vmem>>, vector<1x1x64xi32>
    %123 = vector.shape_cast %117 : vector<1x64xi32> to vector<1x1x64xi32>
    %124 = arith.addi %122, %123 : vector<1x1x64xi32>
    %c0_39 = arith.constant 0 : index
    %c0_40 = arith.constant 0 : index
    %c0_41 = arith.constant 0 : index
    %125 = vector.load %arg5[%c0_39, %c0_40, %c0_41] : memref<1x1x64xi32, #tpu.memory_space<vmem>>, vector<1x1x64xi32>
    tpu.vector_store %arg5[%c0_39, %c0_40, %c0_41], %124 {strides = array<i32>} : memref<1x1x64xi32, #tpu.memory_space<vmem>>, vector<1x1x64xi32>,
    %c0_42 = arith.constant 0 : index
    %c0_43 = arith.constant 0 : index
    %c0_44 = arith.constant 0 : index
    %126 = vector.load %arg6[%c0_42, %c0_43, %c0_44] : memref<1x1x64xf32, #tpu.memory_space<vmem>>, vector<1x1x64xf32>
    %127 = vector.shape_cast %121 : vector<1x64xf32> to vector<1x1x64xf32>
    %128 = arith.addf %126, %127 : vector<1x1x64xf32>
    %c0_45 = arith.constant 0 : index
    %c0_46 = arith.constant 0 : index
    %c0_47 = arith.constant 0 : index
    %129 = vector.load %arg6[%c0_45, %c0_46, %c0_47] : memref<1x1x64xf32, #tpu.memory_space<vmem>>, vector<1x1x64xf32>
    tpu.vector_store %arg6[%c0_45, %c0_46, %c0_47], %128 {strides = array<i32>} : memref<1x1x64xf32, #tpu.memory_space<vmem>>, vector<1x1x64xf32>,
    return
  }
  func.func @transform_0(%arg0: i32, %arg1: i32) -> (i32, i32) {
    %c2_i32 = arith.constant 2 : i32
    %0 = arith.muli %arg0, %c2_i32 : i32
    %1 = arith.addi %0, %arg1 : i32
    %c0_i32 = arith.constant 0 : i32
    %c0_i32_0 = arith.constant 0 : i32
    return %1, %c0_i32 : i32, i32
  }
  func.func @transform_1(%arg0: i32, %arg1: i32) -> (i32, i32) {
    %c2_i32 = arith.constant 2 : i32
    %0 = arith.muli %arg0, %c2_i32 : i32
    %1 = arith.addi %0, %arg1 : i32
    %c0_i32 = arith.constant 0 : i32
    %c0_i32_0 = arith.constant 0 : i32
    return %1, %c0_i32 : i32, i32
  }
  func.func @transform_2(%arg0: i32, %arg1: i32) -> (i32, i32) {
    %c2_i32 = arith.constant 2 : i32
    %0 = arith.muli %arg0, %c2_i32 : i32
    %1 = arith.addi %0, %arg1 : i32
    %c0_i32 = arith.constant 0 : i32
    %c0_i32_0 = arith.constant 0 : i32
    return %1, %c0_i32 : i32, i32
  }
  func.func @transform_3(%arg0: i32, %arg1: i32) -> (i32, i32, i32) {
    %c0_i32 = arith.constant 0 : i32
    %c0_i32_0 = arith.constant 0 : i32
    %c0_i32_1 = arith.constant 0 : i32
    return %arg0, %c0_i32, %c0_i32_0 : i32, i32, i32
  }
  func.func @transform_4(%arg0: i32, %arg1: i32) -> (i32, i32, i32) {
    %c0_i32 = arith.constant 0 : i32
    %c0_i32_0 = arith.constant 0 : i32
    %c0_i32_1 = arith.constant 0 : i32
    return %arg0, %c0_i32, %c0_i32_0 : i32, i32, i32
  }
}

</mosaic_0001>

<bundles_post_ra>
// kernel: tpu_custom_call.1
= control target key start
LH: loop header
LB: loop body
LE: loop exit
PB: predicated region body
PF: predicated region fallthrough
CT: control target
= control target key end

     0   :  { %s7956_s0 = inlined_call_operand.vmem [shape: f32[512,64], index: 0, kind: input, shape index: {}]   ;;  %s7957_s1 = inlined_call_operand.hbm [shape: f32[512,128], index: 1, kind: output, shape index: {0}]   ;;  %s7958_s2 = inlined_call_operand.hbm [shape: s32[512,128], index: 2, kind: output, shape index: {1}]   ;;  %s7959_s3 = inlined_call_operand.hbm [shape: s32[2,1,64], index: 3, kind: output, shape index: {2}]   ;;  %s7960_s4 = inlined_call_operand.hbm [shape: f32[2,1,64], index: 4, kind: output, shape index: {3}]  }
   0x1   :  { %8161 = sst [smem:[#allocation156_spill]] %s7956_s0 }
   0x2   :  { %10 = vsyncpa [#allocation3], 0 }
   0x3   :  { %12 = vsyncpa [#allocation3 + $0x1], 0 }
   0x4   :  { %13 = vsyncpa [#allocation5], 0 }
   0x5   :  { %15 = vsyncpa [#allocation5 + $0x1], 0 }
   0x6   :  { %16 = vsyncpa [#allocation8], 0 }
   0x7   :  { %18 = vsyncpa [#allocation8 + $0x1], 0  ;;  %s4003_s15 = smov 0   ;;  %s4005_s16 = smov 0  }
   0x8   :  { %s4007_s17 = smov 0   ;;  %s4009_s18 = smov 0  }
   0x9   :  { %s4011_s19 = smov 0   ;;  %s4013_s20 = smov 0  }
   0xa   :  { %s4015_s21 = smov 0   ;;  %s4017_s22 = smov 0  }
   0xb   :  { %s4019_s23 = smov 0   ;;  %s4021_s24 = smov 0  }
   0xc   :  { %s4023_s25 = smov 0  }
   0xd LB: > { %8162 = sst [smem:[#allocation13_spill]] %s3947_s20  ;;  %s7962_s26 = sadd.s32 4294967295, %s3967_s25   ;;  %s3967_s25 = sphi %s4023_s25, %s24_s25   ;;  %s3963_s24 = sphi %s4021_s24, %s8856_s24   ;;  %s3959_s23 = sphi %s4019_s23, %s8855_s23   ;;  %s3955_s22 = sphi %s4017_s22, %s8854_s22   ;;  %s3951_s21 = sphi %s4015_s21, %s8853_s21   ;;  %s3947_s20 = sphi %s4013_s20, %s8852_s20   ;;  %s3943_s19 = sphi %s4011_s19, %s8861_s19   ;;  %s3939_s18 = sphi %s4009_s18, %s8860_s18   ;;  %s3935_s17 = sphi %s4007_s17, %s8859_s17   ;;  %s3931_s16 = sphi %s4005_s16, %s8858_s16   ;;  %s3927_s15 = sphi %s4003_s15, %s8857_s15  }
   0xe   : > { %8163 = sst [smem:[#allocation14_spill]] %s3959_s23  ;;  %s7961_s27 = sadd.s32 4294967294, %s3967_s25  }
   0xf   : > { %8164 = sst [smem:[#allocation15_spill]] %s3963_s24  ;;  %s33_s28 = sadd.s32 1, %s3959_s23 }
  0x10   : > { %s36_s29 = sadd.s32 1, %s3963_s24  ;;  %p34_p0 = scmp.ge.s32.totalorder %s33_s28, 2 }
  0x11   : > { %s3449_s30 = sshll.u32 %s3963_s24, 1  ;;  %s77_s6 = sadd.s32 1, %s3947_s20 }
  0x12   : > { %s71_s5 = sadd.s32 %s3959_s23, %s3449_s30  ;;  %s8863_s28 = smov (%p34_p0, %s33_s28), 0 }
  0x13   : > { %8165 = sst [smem:[#allocation16_spill]] %s8863_s28  ;;  %s8865_s29 = smov (!%p34_p0, %s36_s29), %s3963_s24 }
  0x14   : > { %p87_p1 = scmp.ne.s32.totalorder %s3947_s20, %s3943_s19  ;;  %p4072_p2 = scmp.eq.s32.totalorder %s7962_s26, 3 }
  0x15   : > { %p38_p3 = scmp.ge.s32.totalorder %s8865_s29, 2  ;;  %p93_p4 = scmp.ne.s32.totalorder %s3943_s19, %s3939_s18 }
  0x16   : > { %p4080_p5 = por %p4072_p2, %p87_p1  ;;  %p4086_p6 = scmp.eq.s32.totalorder %s7961_s27, 3 }
  0x17   : > { %s8867_s29 = smov (%p38_p3, %s8865_s29), 0  ;;  %s133_s11 = sadd.s32 1, %s3935_s17 }
  0x18   : > { %8169 = sst [smem:[#allocation17_spill]] %s8867_s29  ;;  %p4094_p7 = por %p4086_p6, %p93_p4 }
  0x19   : > { %s3450_s12 = sshll.u32 %s8867_s29, 1  ;;  %s130_s13 = ssub.s32 %s3963_s24, %s8867_s29 }
  0x1a   : > { %s8170_s10 = scalar_select %p4094_p7, 1, 0 }
  0x1b   : > { %s73_s14 = sadd.s32 %s3450_s12, %s8863_s28  ;;  %p131_p8 = scmp.eq.s32.totalorder %s130_s13, 0 }
  0x1c   : > { %8171 = sst [smem:[#allocation18_spill]] %s8170_s10  ;;  %s74_s30 = ssub.s32 %s71_s5, %s73_s14 }
  0x1d   : > { %p143_p9 = scmp.ne.s32.totalorder %s3935_s17, %s3931_s16  ;;  %p75_p10 = scmp.eq.s32.totalorder %s74_s30, 0 }
  0x1e   : > { %p149_p11 = scmp.ne.s32.totalorder %s3931_s16, %s3927_s15  ;;  %p3455_p0 = scmp.ge.s32.totalorder %s3967_s25, 1 }
  0x1f   : > { %s4108_s27 = scalar_select %p131_p8, %s3935_s17, %s133_s11  }
  0x20   : > { %s4111_s26 = scalar_select %p75_p10, %s3947_s20, %s77_s6  }
  0x21   : > { %p4115_p12 = por %p143_p9, %p4072_p2  ;;  %p4121_p13 = por %p149_p11, %p4086_p6 }
  0x22   : > { %8172 = sst [smem:[#allocation19_spill]] %s4111_s26  ;;  %p207_p1 = scmp.lt.s32.totalorder %s3967_s25, 5 }
  0x24   : > { %p208_p3 = pnand %p3455_p0, %p207_p1 }
  0x26   : > { %211 = sbr.rel (%p208_p3) target bundleno = 3018 (0xbca), region = 24 }
  0x2d   : > { %s7968_s5 = sand.u32 1, %s3943_s19   ;;  %s4129_s6 = sand.u32 1, %s3931_s16  }
  0x2e   : > { %s3456_s7 = sshll.u32 %s7968_s5, 7  ;;  %s3458_s9 = sshll.u32 %s3955_s22, 1 }
  0x2f   : > { %s4135_s11 = sadd.s32 %s3951_s21, %s3458_s9  ;;  %s8175_s0 = sld [smem:[#allocation156_spill]] }
  0x30   : > { %s3459_s12 = sshll.u32 %s4135_s11, 4  ;;  %s4143_s28 = scalar_lea.vmem [#allocation2], %s3456_s7 }
  0x31   : > { %p251_p2 = scmp.lt.s32.totalorder %s3459_s12, 63  ;;  %s4145_s24 = scalar_lea.vmem [#allocation4], %s3456_s7 }
  0x32   : > { %s4148_s26 = scalar_lea.vmem [#allocation6], %s4129_s6  ;;  %s4151_s5 = scalar_lea.vmem [#allocation7], %s4129_s6 }
  0x33   : > { %s8869_s12 = smov (!%p251_p2, %s3459_s12), 63  ;;  %p3461_p4 = scmp.ne.s32.totalorder %s3951_s21, 0 }
  0x34   : > { %s3460_s13 = sshll.u32 %s8869_s12, 3  ;;  %vm268_vm0 = vcmask (!%p3461_p4), 516096   ;;  %v3969_v0 = vmov (!%p3461_p4), 0   ;;  %v3970_v1 = vmov (!%p3461_p4), 0.0  }
  0x35   : > { %s4141_s29 = scalar_lea.vmem %s8175_s0, %s3460_s13  ;;  %267 = sbr.rel (%p3461_p4) target bundleno = 60 (0x3c), region = 28  ;;  %269 = vst.msk [vmem:[%s4148_s26] sm:$0x1] (!%p3461_p4), %vm268_vm0, %v3969_v0  ;;  %270 = vst.msk [vmem:[%s4151_s5] sm:$0x1] (!%p3461_p4), %vm268_vm0, %v3970_v1 }
  0x3c PF: > { %v271_v2 = vld [vmem:[%s4141_s29] sm:$0xff]  ;;  %vm8051_vm1 = vcmask 523264   ;;  %v273_v3 = vld [vmem:[%s4141_s29 + $0x10] sm:$0xff]  ;;  %v272_v4 = vld [vmem:[%s4141_s29 + $0x8] sm:$0xff]  ;;  %s8157_s21 = sshll.u32 %s4135_s11, 11  ;;  %s8827_s13 = sand.u32 1, %s3943_s19  }
  0x3d   : > { %v288_v5 = vsel %vm8051_vm1, %v271_v2, -inf  ;;  %v294_v6 = vsel %vm8051_vm1, %v273_v3, -inf  ;;  %v274_v7 = vld [vmem:[%s4141_s29 + $0x18] sm:$0xff]  ;;  %v291_v8 = vsel %vm8051_vm1, %v272_v4, -inf  ;;  %v275_v10 = vld [vmem:[%s4141_s29 + $0x20] sm:$0xff]  ;;  %v276_v11 = vld [vmem:[%s4141_s29 + $0x28] sm:$0xff]  ;;  %s7716_s12 = scalar_lea.hbm %s7957_s1, %s8157_s21 }
  0x3e   : > { %289 = vmax.xlane.f32.xlu0 %v288_v5  ;;  %295 = vmax.xlane.f32.xlu1 %v294_v6  ;;  %v297_v9 = vsel %vm8051_vm1, %v274_v7, -inf  ;;  %v300_v12 = vsel %vm8051_vm1, %v275_v10, -inf  ;;  %v303_v13 = vsel %vm8051_vm1, %v276_v11, -inf  ;;  %v277_v14 = vld [vmem:[%s4141_s29 + $0x30] sm:$0xff]  ;;  %v278_v15 = vld [vmem:[%s4141_s29 + $0x38] sm:$0xff]  ;;  %v4173_v18 = vld [vmem:[%s4141_s29 + $0x40] sm:$0xff] }
  0x3f   : > { %v306_v16 = vsel %vm8051_vm1, %v277_v14, -inf  ;;  %v309_v17 = vsel %vm8051_vm1, %v278_v15, -inf  ;;  %v4176_v19 = vld [vmem:[%s4141_s29 + $0x48] sm:$0xff]  ;;  %v312_v20 = vsel %vm8051_vm1, %v4173_v18, -inf  ;;  %v4183_v22 = vld [vmem:[%s4141_s29 + $0x50] sm:$0xff]  ;;  %v4186_v23 = vld [vmem:[%s4141_s29 + $0x58] sm:$0xff] }
  0x40   : > { %v315_v21 = vsel %vm8051_vm1, %v4176_v19, -inf  ;;  %v318_v24 = vsel %vm8051_vm1, %v4183_v22, -inf  ;;  %v321_v25 = vsel %vm8051_vm1, %v4186_v23, -inf  ;;  %v4193_v26 = vld [vmem:[%s4141_s29 + $0x60] sm:$0xff]  ;;  %v4196_v27 = vld [vmem:[%s4141_s29 + $0x68] sm:$0xff]  ;;  %v4203_v30 = vld [vmem:[%s4141_s29 + $0x70] sm:$0xff] }
  0x41   : > { %v324_v28 = vsel %vm8051_vm1, %v4193_v26, -inf  ;;  %v327_v29 = vsel %vm8051_vm1, %v4196_v27, -inf  ;;  %v4206_v31 = vld [vmem:[%s4141_s29 + $0x78] sm:$0xff]  ;;  %v330_v32 = vsel %vm8051_vm1, %v4203_v30, -inf  ;;  %s3239_s29 = sshll.u32 %s4143_s28, 4  ;;  %s7730_s14 = scalar_lea.sflag [#allocation3], %s8827_s13  ;;  %s7718_s29 = int_to_ptr.vmem [resolvable:$true] %s3239_s29 }
  0x42   : > { %292 = vmax.xlane.f32.xlu0 %v291_v8  ;;  %298 = vmax.xlane.f32.xlu1 %v297_v9  ;;  %v333_v33 = vsel %vm8051_vm1, %v4206_v31, -inf  ;;  %s3753_s30 = scalar_lea.vmem %s7718_s29, 2048 }
  0x43   : > { %p3754_p6 = scmp.ne.s32.totalorder %s7718_s29, %s3753_s30 }
  0x45   : > { %p3755_p8 = pnand %p3754_p6, %p4080_p5 }
  0x46   : > { %301 = vmax.xlane.f32.xlu0 %v300_v12  ;;  %304 = vmax.xlane.f32.xlu1 %v303_v13 }
  0x47   : > { %p3756_p9 = pneg %p3755_p8 }
  0x4a   : > { %307 = vmax.xlane.f32.xlu0 %v306_v16  ;;  %310 = vmax.xlane.f32.xlu1 %v309_v17 }
  0x4e   : > { %313 = vmax.xlane.f32.xlu0 %v312_v20  ;;  %316 = vmax.xlane.f32.xlu1 %v315_v21 }
  0x52   : > { %319 = vmax.xlane.f32.xlu0 %v318_v24  ;;  %322 = vmax.xlane.f32.xlu1 %v321_v25 }
  0x56   : > { %325 = vmax.xlane.f32.xlu0 %v324_v28  ;;  %328 = vmax.xlane.f32.xlu1 %v327_v29 }
  0x5a   : > { %331 = vmax.xlane.f32.xlu0 %v330_v32  ;;  %334 = vmax.xlane.f32.xlu1 %v333_v33 }
  0xcb   : > { %v290_v34 = vpop.xlane.xlu0 %289  ;;  %v296_v35 = vpop.xlane.xlu1 %295 }
  0xcc   : > { %v336_v36 = vsub.f32 %v271_v2, %v290_v34  ;;  %v338_v37 = vsub.f32 %v273_v3, %v296_v35 }
  0xce   : > { %v352_v38 = vmul.f32 1.442695, %v336_v36  ;;  %v356_v39 = vmul.f32 1.442695, %v338_v37 }
  0xcf   : > { %v293_v40 = vpop.xlane.xlu0 %292  ;;  %v299_v41 = vpop.xlane.xlu1 %298 }
  0xd0   : > { %3689 = vpow2.f32 %v352_v38  ;;  %v337_v42 = vsub.f32 %v272_v4, %v293_v40  ;;  %v339_v43 = vsub.f32 %v274_v7, %v299_v41 }
  0xd1   : > { %3691 = vpow2.f32 %v356_v39 }
  0xd2   : > { %v354_v44 = vmul.f32 1.442695, %v337_v42  ;;  %v358_v45 = vmul.f32 1.442695, %v339_v43 }
  0xd3   : > { %v302_v46 = vpop.xlane.xlu0 %301  ;;  %v305_v47 = vpop.xlane.xlu1 %304 }
  0xd4   : > { %3693 = vpow2.f32 %v354_v44  ;;  %v340_v48 = vsub.f32 %v275_v10, %v302_v46  ;;  %v341_v49 = vsub.f32 %v276_v11, %v305_v47 }
  0xd5   : > { %3695 = vpow2.f32 %v358_v45 }
  0xd6   : > { %v360_v50 = vmul.f32 1.442695, %v340_v48  ;;  %v362_v51 = vmul.f32 1.442695, %v341_v49 }
  0xd7   : > { %v308_v52 = vpop.xlane.xlu0 %307  ;;  %v311_v53 = vpop.xlane.xlu1 %310 }
  0xd8   : > { %3697 = vpow2.f32 %v360_v50  ;;  %v342_v54 = vsub.f32 %v277_v14, %v308_v52  ;;  %v343_v55 = vsub.f32 %v278_v15, %v311_v53  ;;  %v464_v50 = vlaneseq }
  0xd9   : > { %3699 = vpow2.f32 %v362_v51 }
  0xda   : > { %v4212_v56 = vpop.eup %3689  ;;  %v364_v57 = vmul.f32 1.442695, %v342_v54  ;;  %v366_v58 = vmul.f32 1.442695, %v343_v55  ;;  %v4284_v51 = vand.u32 127, %v464_v50 }
  0xdb   : > { %8176 = vst [vmem:[#allocation20_spill] sm:$0xff] %v4212_v56  ;;  %v4214_v59 = vpop.eup %3691  ;;  %v314_v60 = vpop.xlane.xlu0 %313  ;;  %v466_v61 = vsel %vm8051_vm1, %v4212_v56, -inf }
  0xdc   : > { %8177 = vst [vmem:[#allocation21_spill] sm:$0xff] %v4214_v59  ;;  %v317_v62 = vpop.xlane.xlu1 %316  ;;  %3701 = vpow2.f32 %v364_v57  ;;  %v344_v63 = vsub.f32 %v4173_v18, %v314_v60  ;;  %467 = vmax.xlane.f32.xlu0 %v466_v61  ;;  %v472_v1 = vsel %vm8051_vm1, %v4214_v59, -inf  ;;  %8192 = vst [vmem:[#allocation36_spill] sm:$0xff] %v4284_v51 }
  0xdd   : > { %v345_v0 = vsub.f32 %v4176_v19, %v317_v62  ;;  %3703 = vpow2.f32 %v366_v58 }
  0xde   : > { %v4222_v2 = vpop.eup %3693  ;;  %v368_v3 = vmul.f32 1.442695, %v344_v63 }
  0xdf   : > { %8178 = vst [vmem:[#allocation22_spill] sm:$0xff] %v4222_v2  ;;  %v370_v4 = vmul.f32 1.442695, %v345_v0  ;;  %v4224_v5 = vpop.eup %3695  ;;  %v320_v6 = vpop.xlane.xlu0 %319  ;;  %v469_v7 = vsel %vm8051_vm1, %v4222_v2, -inf }
  0xe0   : > { %8179 = vst [vmem:[#allocation23_spill] sm:$0xff] %v4224_v5  ;;  %v323_v8 = vpop.xlane.xlu1 %322  ;;  %3705 = vpow2.f32 %v368_v3  ;;  %v346_v9 = vsub.f32 %v4183_v22, %v320_v6  ;;  %473 = vmax.xlane.f32.xlu0 %v472_v1  ;;  %470 = vmax.xlane.f32.xlu1 %v469_v7  ;;  %v475_v11 = vsel %vm8051_vm1, %v4224_v5, -inf }
  0xe1   : > { %v347_v10 = vsub.f32 %v4186_v23, %v323_v8  ;;  %3707 = vpow2.f32 %v370_v4 }
  0xe2   : > { %v4232_v12 = vpop.eup %3697  ;;  %v372_v13 = vmul.f32 1.442695, %v346_v9 }
  0xe3   : > { %8180 = vst [vmem:[#allocation24_spill] sm:$0xff] %v4232_v12  ;;  %v374_v14 = vmul.f32 1.442695, %v347_v10  ;;  %v4234_v15 = vpop.eup %3699  ;;  %v326_v16 = vpop.xlane.xlu0 %325  ;;  %v478_v17 = vsel %vm8051_vm1, %v4232_v12, -inf }
  0xe4   : > { %8181 = vst [vmem:[#allocation25_spill] sm:$0xff] %v4234_v15  ;;  %v329_v18 = vpop.xlane.xlu1 %328  ;;  %3709 = vpow2.f32 %v372_v13  ;;  %v348_v19 = vsub.f32 %v4193_v26, %v326_v16  ;;  %476 = vmax.xlane.f32.xlu1 %v475_v11  ;;  %479 = vmax.xlane.f32.xlu0 %v478_v17  ;;  %v481_v21 = vsel %vm8051_vm1, %v4234_v15, -inf }
  0xe5   : > { %v349_v20 = vsub.f32 %v4196_v27, %v329_v18  ;;  %3711 = vpow2.f32 %v374_v14 }
  0xe6   : > { %v4242_v22 = vpop.eup %3701  ;;  %v376_v23 = vmul.f32 1.442695, %v348_v19 }
  0xe7   : > { %8182 = vst [vmem:[#allocation26_spill] sm:$0xff] %v4242_v22  ;;  %v378_v24 = vmul.f32 1.442695, %v349_v20  ;;  %v4244_v25 = vpop.eup %3703  ;;  %v332_v28 = vpop.xlane.xlu0 %331  ;;  %v484_v29 = vsel %vm8051_vm1, %v4242_v22, -inf }
  0xe8   : > { %8183 = vst [vmem:[#allocation27_spill] sm:$0xff] %v4244_v25  ;;  %v335_v32 = vpop.xlane.xlu1 %334  ;;  %3713 = vpow2.f32 %v376_v23  ;;  %v350_v26 = vsub.f32 %v4203_v30, %v332_v28  ;;  %482 = vmax.xlane.f32.xlu1 %v481_v21  ;;  %485 = vmax.xlane.f32.xlu0 %v484_v29  ;;  %v487_v33 = vsel %vm8051_vm1, %v4244_v25, -inf }
  0xe9   : > { %v351_v27 = vsub.f32 %v4206_v31, %v335_v32  ;;  %3715 = vpow2.f32 %v378_v24 }
  0xea   : > { %v4252_v34 = vpop.eup %3705  ;;  %v380_v35 = vmul.f32 1.442695, %v350_v26 }
  0xeb   : > { %8184 = vst [vmem:[#allocation28_spill] sm:$0xff] %v4252_v34  ;;  %v382_v36 = vmul.f32 1.442695, %v351_v27  ;;  %v4254_v37 = vpop.eup %3707  ;;  %v490_v38 = vsel %vm8051_vm1, %v4252_v34, -inf }
  0xec   : > { %8185 = vst [vmem:[#allocation29_spill] sm:$0xff] %v4254_v37  ;;  %3717 = vpow2.f32 %v380_v35  ;;  %488 = vmax.xlane.f32.xlu1 %v487_v33  ;;  %491 = vmax.xlane.f32.xlu0 %v490_v38  ;;  %v493_v30 = vsel %vm8051_vm1, %v4254_v37, -inf }
  0xed   : > { %3719 = vpow2.f32 %v382_v36 }
  0xee   : > { %v4260_v31 = vpop.eup %3709 }
  0xef   : > { %8186 = vst [vmem:[#allocation30_spill] sm:$0xff] %v4260_v31  ;;  %v4262_v39 = vpop.eup %3711  ;;  %v496_v40 = vsel %vm8051_vm1, %v4260_v31, -inf }
  0xf0   : > { %8187 = vst [vmem:[#allocation31_spill] sm:$0xff] %v4262_v39  ;;  %494 = vmax.xlane.f32.xlu1 %v493_v30  ;;  %497 = vmax.xlane.f32.xlu0 %v496_v40  ;;  %v499_v41 = vsel %vm8051_vm1, %v4262_v39, -inf }
  0xf2   : > { %v4268_v42 = vpop.eup %3713 }
  0xf3   : > { %8188 = vst [vmem:[#allocation32_spill] sm:$0xff] %v4268_v42  ;;  %v4270_v43 = vpop.eup %3715  ;;  %v502_v44 = vsel %vm8051_vm1, %v4268_v42, -inf }
  0xf4   : > { %8189 = vst [vmem:[#allocation33_spill] sm:$0xff] %v4270_v43  ;;  %500 = vmax.xlane.f32.xlu1 %v499_v41  ;;  %503 = vmax.xlane.f32.xlu0 %v502_v44  ;;  %v505_v45 = vsel %vm8051_vm1, %v4270_v43, -inf }
  0xf6   : > { %v4276_v46 = vpop.eup %3717 }
  0xf7   : > { %8190 = vst [vmem:[#allocation34_spill] sm:$0xff] %v4276_v46  ;;  %v4278_v47 = vpop.eup %3719  ;;  %v508_v48 = vsel %vm8051_vm1, %v4276_v46, -inf }
  0xf8   : > { %8191 = vst [vmem:[#allocation35_spill] sm:$0xff] %v4278_v47  ;;  %506 = vmax.xlane.f32.xlu1 %v505_v45  ;;  %509 = vmax.xlane.f32.xlu0 %v508_v48  ;;  %v511_v49 = vsel %vm8051_vm1, %v4278_v47, -inf }
  0xfc   : > { %512 = vmax.xlane.f32.xlu1 %v511_v49 }
 0x169   : > { %v4286_v52 = vpop.xlane.xlu0 %467 }
 0x16a   : > { %8193 = vst [vmem:[#allocation37_spill] sm:$0xff] %v4286_v52  ;;  %vm514_vm2 = vcmp.eq.f32.partialorder %v4212_v56, %v4286_v52 }
 0x16b   : > { %v530_v53 = vsel %vm514_vm2, %v4284_v51, 64 }
 0x16c   : > { %v4292_v54 = vsel %vm8051_vm1, %v530_v53, 2147483647 }
 0x16d   : > { %v4294_v55 = vpop.xlane.xlu1 %470  ;;  %v4296_v57 = vpop.xlane.xlu0 %473  ;;  %v548_v58 = vshra.s32 %v4292_v54, 16 }
 0x16e   : > { %8194 = vst [vmem:[#allocation38_spill] sm:$0xff] %v4294_v55  ;;  %8195 = vst [vmem:[#allocation39_spill] sm:$0xff] %v4296_v57  ;;  %vm515_vm3 = vcmp.eq.f32.partialorder %v4222_v2, %v4294_v55  ;;  %vm516_vm4 = vcmp.eq.f32.partialorder %v4214_v59, %v4296_v57 }
 0x16f   : > { %v4303_v60 = vcvt.s32.f32 %v548_v58  ;;  %v531_v61 = vsel %vm515_vm3, %v4284_v51, 64  ;;  %v532_v62 = vsel %vm516_vm4, %v4284_v51, 64 }
 0x170   : > { %v4308_v63 = vsel %vm8051_vm1, %v531_v61, 2147483647  ;;  %v4311_v0 = vsel %vm8051_vm1, %v532_v62, 2147483647 }
 0x171   : > { %v4313_v1 = vpop.xlane.xlu1 %476  ;;  %551 = vmin.xlane.f32.xlu0 %v4303_v60  ;;  %v4316_v3 = vpop.xlane.xlu0 %479  ;;  %v563_v4 = vshra.s32 %v4308_v63, 16  ;;  %v578_v6 = vshra.s32 %v4311_v0, 16 }
 0x172   : > { %8196 = vst [vmem:[#allocation40_spill] sm:$0xff] %v4313_v1  ;;  %8197 = vst [vmem:[#allocation41_spill] sm:$0xff] %v4316_v3  ;;  %vm517_vm5 = vcmp.eq.f32.partialorder %v4224_v5, %v4313_v1  ;;  %vm518_vm6 = vcmp.eq.f32.partialorder %v4232_v12, %v4316_v3 }
 0x173   : > { %v4324_v7 = vcvt.s32.f32 %v563_v4  ;;  %v4326_v8 = vcvt.s32.f32 %v578_v6  ;;  %v533_v9 = vsel %vm517_vm5, %v4284_v51, 64  ;;  %v534_v10 = vsel %vm518_vm6, %v4284_v51, 64 }
 0x174   : > { %v4331_v11 = vsel %vm8051_vm1, %v533_v9, 2147483647  ;;  %v4334_v13 = vsel %vm8051_vm1, %v534_v10, 2147483647 }
 0x175   : > { %566 = vmin.xlane.f32.xlu1 %v4324_v7  ;;  %v4337_v14 = vpop.xlane.xlu1 %482  ;;  %581 = vmin.xlane.f32.xlu0 %v4326_v8  ;;  %v4340_v16 = vpop.xlane.xlu0 %485  ;;  %v593_v17 = vshra.s32 %v4331_v11, 16  ;;  %v608_v18 = vshra.s32 %v4334_v13, 16  ;;  %v607_v3 = vand.u32 65535, %v4334_v13 }
 0x176   : > { %8198 = vst [vmem:[#allocation42_spill] sm:$0xff] %v4337_v14  ;;  %8199 = vst [vmem:[#allocation43_spill] sm:$0xff] %v4340_v16  ;;  %vm519_vm7 = vcmp.eq.f32.partialorder %v4234_v15, %v4337_v14  ;;  %vm520_vm8 = vcmp.eq.f32.partialorder %v4242_v22, %v4340_v16 }
 0x177   : > { %v4348_v19 = vcvt.s32.f32 %v593_v17  ;;  %v4350_v20 = vcvt.s32.f32 %v608_v18  ;;  %v535_v21 = vsel %vm519_vm7, %v4284_v51, 64  ;;  %v536_v23 = vsel %vm520_vm8, %v4284_v51, 64 }
 0x178   : > { %v4355_v24 = vsel %vm8051_vm1, %v535_v21, 2147483647  ;;  %v4358_v28 = vsel %vm8051_vm1, %v536_v23, 2147483647 }
 0x179   : > { %596 = vmin.xlane.f32.xlu1 %v4348_v19  ;;  %v4361_v29 = vpop.xlane.xlu1 %488  ;;  %611 = vmin.xlane.f32.xlu0 %v4350_v20  ;;  %v4364_v32 = vpop.xlane.xlu0 %491  ;;  %v623_v26 = vshra.s32 %v4355_v24, 16  ;;  %v638_v27 = vshra.s32 %v4358_v28, 16  ;;  %v637_v13 = vand.u32 65535, %v4358_v28 }
 0x17a   : > { %8200 = vst [vmem:[#allocation44_spill] sm:$0xff] %v4361_v29  ;;  %8201 = vst [vmem:[#allocation45_spill] sm:$0xff] %v4364_v32  ;;  %vm521_vm9 = vcmp.eq.f32.partialorder %v4244_v25, %v4361_v29  ;;  %vm522_vm10 = vcmp.eq.f32.partialorder %v4252_v34, %v4364_v32 }
 0x17b   : > { %v4372_v33 = vcvt.s32.f32 %v623_v26  ;;  %v4374_v35 = vcvt.s32.f32 %v638_v27  ;;  %v537_v36 = vsel %vm521_vm9, %v4284_v51, 64  ;;  %v538_v38 = vsel %vm522_vm10, %v4284_v51, 64 }
 0x17c   : > { %v4379_v30 = vsel %vm8051_vm1, %v537_v36, 2147483647  ;;  %v4382_v40 = vsel %vm8051_vm1, %v538_v38, 2147483647 }
 0x17d   : > { %626 = vmin.xlane.f32.xlu1 %v4372_v33  ;;  %v4385_v41 = vpop.xlane.xlu1 %494  ;;  %641 = vmin.xlane.f32.xlu0 %v4374_v35  ;;  %v4388_v44 = vpop.xlane.xlu0 %497  ;;  %v653_v45 = vshra.s32 %v4379_v30, 16  ;;  %v668_v48 = vshra.s32 %v4382_v40, 16  ;;  %v667_v28 = vand.u32 65535, %v4382_v40 }
 0x17e   : > { %8202 = vst [vmem:[#allocation46_spill] sm:$0xff] %v4385_v41  ;;  %8203 = vst [vmem:[#allocation47_spill] sm:$0xff] %v4388_v44  ;;  %vm523_vm11 = vcmp.eq.f32.partialorder %v4254_v37, %v4385_v41  ;;  %vm524_vm12 = vcmp.eq.f32.partialorder %v4260_v31, %v4388_v44  ;;  %v562_v41 = vand.u32 65535, %v4308_v63 }
 0x17f   : > { %v4396_v49 = vcvt.s32.f32 %v653_v45  ;;  %v4398_v50 = vcvt.s32.f32 %v668_v48  ;;  %v539_v53 = vsel %vm523_vm11, %v4284_v51, 64  ;;  %v540_v58 = vsel %vm524_vm12, %v4284_v51, 64 }
 0x180   : > { %v4403_v61 = vsel %vm8051_vm1, %v539_v53, 2147483647  ;;  %v4406_v62 = vsel %vm8051_vm1, %v540_v58, 2147483647  ;;  %v564_v16 = vcvt.s32.f32 %v562_v41 }
 0x181   : > { %656 = vmin.xlane.f32.xlu1 %v4396_v49  ;;  %v4409_v4 = vpop.xlane.xlu1 %500  ;;  %671 = vmin.xlane.f32.xlu0 %v4398_v50  ;;  %v4412_v6 = vpop.xlane.xlu0 %503  ;;  %v683_v9 = vshra.s32 %v4403_v61, 16  ;;  %v698_v10 = vshra.s32 %v4406_v62, 16  ;;  %v697_v40 = vand.u32 65535, %v4406_v62 }
 0x182   : > { %8204 = vst [vmem:[#allocation48_spill] sm:$0xff] %v4409_v4  ;;  %8205 = vst [vmem:[#allocation49_spill] sm:$0xff] %v4412_v6  ;;  %vm525_vm13 = vcmp.eq.f32.partialorder %v4262_v39, %v4409_v4  ;;  %vm526_vm14 = vcmp.eq.f32.partialorder %v4268_v42, %v4412_v6 }
 0x183   : > { %v4420_v17 = vcvt.s32.f32 %v683_v9  ;;  %v4422_v18 = vcvt.s32.f32 %v698_v10  ;;  %v541_v21 = vsel %vm525_vm13, %v4284_v51, 64  ;;  %v542_v23 = vsel %vm526_vm14, %v4284_v51, 64 }
 0x184   : > { %v4427_v26 = vsel %vm8051_vm1, %v541_v21, 2147483647  ;;  %v4430_v27 = vsel %vm8051_vm1, %v542_v23, 2147483647 }
 0x185   : > { %686 = vmin.xlane.f32.xlu1 %v4420_v17  ;;  %v4433_v36 = vpop.xlane.xlu1 %506  ;;  %701 = vmin.xlane.f32.xlu0 %v4422_v18  ;;  %v4436_v38 = vpop.xlane.xlu0 %509  ;;  %v713_v45 = vshra.s32 %v4427_v26, 16  ;;  %v728_v48 = vshra.s32 %v4430_v27, 16  ;;  %v727_v62 = vand.u32 65535, %v4430_v27 }
 0x186   : > { %8206 = vst [vmem:[#allocation50_spill] sm:$0xff] %v4433_v36  ;;  %8207 = vst [vmem:[#allocation51_spill] sm:$0xff] %v4436_v38  ;;  %vm527_vm15 = vcmp.eq.f32.partialorder %v4270_v43, %v4433_v36  ;;  %vm528_vm0 = vcmp.eq.f32.partialorder %v4276_v46, %v4436_v38 }
 0x187   : > { %v4444_v53 = vcvt.s32.f32 %v713_v45  ;;  %v4446_v58 = vcvt.s32.f32 %v728_v48  ;;  %v543_v9 = vsel %vm527_vm15, %v4284_v51, 64  ;;  %v544_v10 = vsel %vm528_vm0, %v4284_v51, 64 }
 0x188   : > { %v4451_v21 = vsel %vm8051_vm1, %v543_v9, 2147483647  ;;  %v4454_v23 = vsel %vm8051_vm1, %v544_v10, 2147483647 }
 0x189   : > { %716 = vmin.xlane.f32.xlu1 %v4444_v53  ;;  %v4457_v36 = vpop.xlane.xlu1 %512  ;;  %731 = vmin.xlane.f32.xlu0 %v4446_v58  ;;  %v743_v45 = vshra.s32 %v4451_v21, 16  ;;  %v758_v48 = vshra.s32 %v4454_v23, 16  ;;  %v757_v27 = vand.u32 65535, %v4454_v23 }
 0x18a   : > { %8208 = vst [vmem:[#allocation52_spill] sm:$0xff] %v4457_v36  ;;  %vm529_vm2 = vcmp.eq.f32.partialorder %v4278_v47, %v4457_v36 }
 0x18b   : > { %v4464_v38 = vcvt.s32.f32 %v743_v45  ;;  %v4466_v9 = vcvt.s32.f32 %v758_v48  ;;  %v545_v10 = vsel %vm529_vm2, %v4284_v51, 64  ;;  %v547_v45 = vand.u32 65535, %v4292_v54 }
 0x18c   : > { %v4470_v6 = vsel %vm8051_vm1, %v545_v10, 2147483647  ;;  %v577_v10 = vand.u32 65535, %v4311_v0  ;;  %v592_v54 = vand.u32 65535, %v4331_v11  ;;  %v622_v11 = vand.u32 65535, %v4355_v24 }
 0x18d   : > { %746 = vmin.xlane.f32.xlu1 %v4464_v38  ;;  %761 = vmin.xlane.f32.xlu0 %v4466_v9  ;;  %v773_v4 = vshra.s32 %v4470_v6, 16  ;;  %v549_v48 = vcvt.s32.f32 %v547_v45  ;;  %v609_v45 = vcvt.s32.f32 %v607_v3  ;;  %v639_v3 = vcvt.s32.f32 %v637_v13 }
 0x18e   : > { %v579_v14 = vcvt.s32.f32 %v577_v10  ;;  %v594_v41 = vcvt.s32.f32 %v592_v54  ;;  %v652_v24 = vand.u32 65535, %v4379_v30  ;;  %v682_v30 = vand.u32 65535, %v4403_v61 }
 0x18f   : > { %v4475_v44 = vcvt.s32.f32 %v773_v4  ;;  %v699_v13 = vcvt.s32.f32 %v697_v40  ;;  %v712_v61 = vand.u32 65535, %v4427_v26  ;;  %v742_v26 = vand.u32 65535, %v4451_v21 }
 0x190   : > { %v772_v21 = vand.u32 65535, %v4470_v6 }
 0x191   : > { %776 = vmin.xlane.f32.xlu1 %v4475_v44 }
 0x1fe   : > { %v4479_v36 = vpop.xlane.xlu0 %551 }
 0x1ff   : > { %vm553_vm3 = vcmp.eq.f32.partialorder %v4303_v60, %v4479_v36  ;;  %v558_v6 = vcvt.f32.s32 %v4479_v36 }
 0x200   : > { %v554_v32 = vsel %vm553_vm3, %v549_v48, inf  ;;  %v624_v48 = vcvt.s32.f32 %v622_v11  ;;  %v684_v11 = vcvt.s32.f32 %v682_v30 }
 0x201   : > { %555 = vmin.xlane.f32.xlu0 %v554_v32  ;;  %v559_v40 = vshll.u32 %v558_v6, 16 }
 0x202   : > { %v4485_v29 = vpop.xlane.xlu1 %566  ;;  %v4487_v4 = vpop.xlane.xlu0 %581 }
 0x203   : > { %vm568_vm4 = vcmp.eq.f32.partialorder %v4324_v7, %v4485_v29  ;;  %vm583_vm5 = vcmp.eq.f32.partialorder %v4326_v8, %v4487_v4  ;;  %v573_v30 = vcvt.f32.s32 %v4485_v29 }
 0x204   : > { %v569_v63 = vsel %vm568_vm4, %v564_v16, inf  ;;  %v584_v60 = vsel %vm583_vm5, %v579_v14, inf }
 0x205   : > { %570 = vmin.xlane.f32.xlu1 %v569_v63  ;;  %585 = vmin.xlane.f32.xlu0 %v584_v60  ;;  %v654_v63 = vcvt.s32.f32 %v652_v24  ;;  %v669_v60 = vcvt.s32.f32 %v667_v28 }
 0x206   : > { %v4495_v0 = vpop.xlane.xlu1 %596  ;;  %v4497_v32 = vpop.xlane.xlu0 %611 }
 0x207   : > { %vm598_vm6 = vcmp.eq.f32.partialorder %v4348_v19, %v4495_v0  ;;  %vm613_vm7 = vcmp.eq.f32.partialorder %v4350_v20, %v4497_v32 }
 0x208   : > { %v599_v7 = vsel %vm598_vm6, %v594_v41, inf  ;;  %v614_v8 = vsel %vm613_vm7, %v609_v45, inf }
 0x209   : > { %600 = vmin.xlane.f32.xlu1 %v599_v7  ;;  %615 = vmin.xlane.f32.xlu0 %v614_v8 }
 0x20a   : > { %v4505_v14 = vpop.xlane.xlu1 %626  ;;  %v4507_v16 = vpop.xlane.xlu0 %641 }
 0x20b   : > { %vm628_vm8 = vcmp.eq.f32.partialorder %v4372_v33, %v4505_v14  ;;  %vm643_vm9 = vcmp.eq.f32.partialorder %v4374_v35, %v4507_v16 }
 0x20c   : > { %v629_v19 = vsel %vm628_vm8, %v624_v48, inf  ;;  %v644_v20 = vsel %vm643_vm9, %v639_v3, inf  ;;  %v714_v48 = vcvt.s32.f32 %v712_v61  ;;  %v729_v3 = vcvt.s32.f32 %v727_v62 }
 0x20d   : > { %630 = vmin.xlane.f32.xlu1 %v629_v19  ;;  %645 = vmin.xlane.f32.xlu0 %v644_v20  ;;  %v744_v19 = vcvt.s32.f32 %v742_v26  ;;  %v759_v20 = vcvt.s32.f32 %v757_v27  ;;  %v618_v61 = vcvt.f32.s32 %v4497_v32  ;;  %v633_v26 = vcvt.f32.s32 %v4505_v14 }
 0x20e   : > { %v4515_v10 = vpop.xlane.xlu1 %656  ;;  %v4517_v54 = vpop.xlane.xlu0 %671  ;;  %v648_v27 = vcvt.f32.s32 %v4507_v16 }
 0x20f   : > { %vm658_vm10 = vcmp.eq.f32.partialorder %v4396_v49, %v4515_v10  ;;  %vm673_vm11 = vcmp.eq.f32.partialorder %v4398_v50, %v4517_v54 }
 0x210   : > { %v659_v33 = vsel %vm658_vm10, %v654_v63, inf  ;;  %v674_v35 = vsel %vm673_vm11, %v669_v60, inf  ;;  %v774_v63 = vcvt.s32.f32 %v772_v21  ;;  %v649_v6 = vshll.u32 %v648_v27, 16 }
 0x211   : > { %660 = vmin.xlane.f32.xlu1 %v659_v33  ;;  %675 = vmin.xlane.f32.xlu0 %v674_v35 }
 0x212   : > { %v4525_v41 = vpop.xlane.xlu1 %686  ;;  %v4527_v45 = vpop.xlane.xlu0 %701 }
 0x213   : > { %vm688_vm12 = vcmp.eq.f32.partialorder %v4420_v17, %v4525_v41  ;;  %vm703_vm13 = vcmp.eq.f32.partialorder %v4422_v18, %v4527_v45 }
 0x214   : > { %v689_v49 = vsel %vm688_vm12, %v684_v11, inf  ;;  %v704_v50 = vsel %vm703_vm13, %v699_v13, inf  ;;  %v574_v11 = vshll.u32 %v573_v30, 16  ;;  %v603_v13 = vcvt.f32.s32 %v4495_v0 }
 0x215   : > { %690 = vmin.xlane.f32.xlu1 %v689_v49  ;;  %705 = vmin.xlane.f32.xlu0 %v704_v50  ;;  %v663_v30 = vcvt.f32.s32 %v4515_v10 }
 0x216   : > { %v4535_v7 = vpop.xlane.xlu1 %716  ;;  %v4537_v8 = vpop.xlane.xlu0 %731  ;;  %v604_v32 = vshll.u32 %v603_v13, 16 }
 0x217   : > { %vm718_vm14 = vcmp.eq.f32.partialorder %v4444_v53, %v4535_v7  ;;  %vm733_vm15 = vcmp.eq.f32.partialorder %v4446_v58, %v4537_v8 }
 0x218   : > { %v719_v17 = vsel %vm718_vm14, %v714_v48, inf  ;;  %v734_v18 = vsel %vm733_vm15, %v729_v3, inf  ;;  %v619_v3 = vshll.u32 %v618_v61, 16 }
 0x219   : > { %720 = vmin.xlane.f32.xlu1 %v719_v17  ;;  %735 = vmin.xlane.f32.xlu0 %v734_v18 }
 0x21a   : > { %v4545_v24 = vpop.xlane.xlu1 %746  ;;  %v4547_v28 = vpop.xlane.xlu0 %761 }
 0x21b   : > { %vm748_vm0 = vcmp.eq.f32.partialorder %v4464_v38, %v4545_v24  ;;  %vm763_vm2 = vcmp.eq.f32.partialorder %v4466_v9, %v4547_v28  ;;  %v588_v9 = vcvt.f32.s32 %v4487_v4 }
 0x21c   : > { %v749_v53 = vsel %vm748_vm0, %v744_v19, inf  ;;  %v764_v58 = vsel %vm763_vm2, %v759_v20, inf }
 0x21d   : > { %750 = vmin.xlane.f32.xlu1 %v749_v53  ;;  %765 = vmin.xlane.f32.xlu0 %v764_v58  ;;  %v589_v49 = vshll.u32 %v588_v9, 16 }
 0x21e   : > { %v4554_v23 = vpop.xlane.xlu1 %776 }
 0x21f   : > { %vm778_vm3 = vcmp.eq.f32.partialorder %v4475_v44, %v4554_v23 }
 0x220   : > { %v779_v60 = vsel %vm778_vm3, %v774_v63, inf }
 0x221   : > { %780 = vmin.xlane.f32.xlu1 %v779_v60  ;;  %v634_v60 = vshll.u32 %v633_v26, 16 }
 0x28e   : > { %v556_v38 = vpop.xlane.xlu0 %555 }
 0x28f   : > { %v557_v33 = vcvt.f32.s32 %v556_v38  ;;  %v678_v38 = vcvt.f32.s32 %v4517_v54 }
 0x291   : > { %v4561_v35 = vadd.s32 %v559_v40, %v557_v33 }
 0x292   : > { %v571_v62 = vpop.xlane.xlu1 %570  ;;  %v586_v44 = vpop.xlane.xlu0 %585 }
 0x293   : > { %v572_v50 = vcvt.f32.s32 %v571_v62  ;;  %v587_v48 = vcvt.f32.s32 %v586_v44  ;;  %vm786_vm4 = vcmp.eq.s32.totalorder %v4284_v51, %v4561_v35 }
 0x294   : > { %v4571_v29 = vsel %vm786_vm4, -1.0, %v4212_v56 }
 0x295   : > { %v4573_v36 = vadd.s32 %v574_v11, %v572_v50  ;;  %v4575_v4 = vadd.s32 %v589_v49, %v587_v48  ;;  %v866_v0 = vsel %vm8051_vm1, %v4571_v29, -inf  ;;  %v664_v49 = vshll.u32 %v663_v30, 16 }
 0x296   : > { %v601_v17 = vpop.xlane.xlu1 %600  ;;  %867 = vmax.xlane.f32.xlu0 %v866_v0  ;;  %v616_v18 = vpop.xlane.xlu0 %615  ;;  %v679_v50 = vshll.u32 %v678_v38, 16  ;;  %v693_v48 = vcvt.f32.s32 %v4525_v41  ;;  %v708_v0 = vcvt.f32.s32 %v4527_v45 }
 0x297   : > { %v602_v19 = vcvt.f32.s32 %v601_v17  ;;  %v617_v20 = vcvt.f32.s32 %v616_v18  ;;  %vm787_vm5 = vcmp.eq.s32.totalorder %v4284_v51, %v4573_v36  ;;  %vm788_vm6 = vcmp.eq.s32.totalorder %v4284_v51, %v4575_v4 }
 0x298   : > { %v4589_v21 = vsel %vm787_vm5, -1.0, %v4222_v2  ;;  %v4595_v14 = vsel %vm788_vm6, -1.0, %v4214_v59 }
 0x299   : > { %v4597_v16 = vadd.s32 %v604_v32, %v602_v19  ;;  %v4599_v53 = vadd.s32 %v619_v3, %v617_v20  ;;  %v869_v58 = vsel %vm8051_vm1, %v4589_v21, -inf  ;;  %v872_v63 = vsel %vm8051_vm1, %v4595_v14, -inf }
 0x29a   : > { %870 = vmax.xlane.f32.xlu1 %v869_v58  ;;  %v631_v40 = vpop.xlane.xlu1 %630  ;;  %873 = vmax.xlane.f32.xlu0 %v872_v63  ;;  %v646_v9 = vpop.xlane.xlu0 %645  ;;  %v694_v58 = vshll.u32 %v693_v48, 16  ;;  %v709_v63 = vshll.u32 %v708_v0, 16  ;;  %v753_v48 = vcvt.f32.s32 %v4545_v24  ;;  %v768_v0 = vcvt.f32.s32 %v4547_v28 }
 0x29b   : > { %v632_v33 = vcvt.f32.s32 %v631_v40  ;;  %v647_v11 = vcvt.f32.s32 %v646_v9  ;;  %vm789_vm7 = vcmp.eq.s32.totalorder %v4284_v51, %v4597_v16  ;;  %vm790_vm8 = vcmp.eq.s32.totalorder %v4284_v51, %v4599_v53 }
 0x29c   : > { %v4615_v13 = vsel %vm789_vm7, -1.0, %v4224_v5  ;;  %v4621_v10 = vsel %vm790_vm8, -1.0, %v4232_v12 }
 0x29d   : > { %v4623_v54 = vadd.s32 %v634_v60, %v632_v33  ;;  %v4625_v61 = vadd.s32 %v649_v6, %v647_v11  ;;  %v875_v62 = vsel %vm8051_vm1, %v4615_v13, -inf  ;;  %v878_v44 = vsel %vm8051_vm1, %v4621_v10, -inf }
 0x29e   : > { %876 = vmax.xlane.f32.xlu1 %v875_v62  ;;  %v661_v32 = vpop.xlane.xlu1 %660  ;;  %879 = vmax.xlane.f32.xlu0 %v878_v44  ;;  %v676_v3 = vpop.xlane.xlu0 %675  ;;  %v723_v60 = vcvt.f32.s32 %v4535_v7  ;;  %v738_v6 = vcvt.f32.s32 %v4537_v8 }
 0x29f   : > { %v662_v26 = vcvt.f32.s32 %v661_v32  ;;  %v677_v27 = vcvt.f32.s32 %v676_v3  ;;  %vm791_vm9 = vcmp.eq.s32.totalorder %v4284_v51, %v4623_v54  ;;  %vm792_vm10 = vcmp.eq.s32.totalorder %v4284_v51, %v4625_v61 }
 0x2a0   : > { %v4641_v17 = vsel %vm791_vm9, -1.0, %v4234_v15  ;;  %v4647_v41 = vsel %vm792_vm10, -1.0, %v4242_v22 }
 0x2a1   : > { %v4649_v45 = vadd.s32 %v664_v49, %v662_v26  ;;  %v4651_v18 = vadd.s32 %v679_v50, %v677_v27  ;;  %v881_v19 = vsel %vm8051_vm1, %v4641_v17, -inf  ;;  %v884_v20 = vsel %vm8051_vm1, %v4647_v41, -inf }
 0x2a2   : > { %882 = vmax.xlane.f32.xlu1 %v881_v19  ;;  %v691_v30 = vpop.xlane.xlu1 %690  ;;  %885 = vmax.xlane.f32.xlu0 %v884_v20  ;;  %v706_v38 = vpop.xlane.xlu0 %705  ;;  %v724_v49 = vshll.u32 %v723_v60, 16  ;;  %v739_v50 = vshll.u32 %v738_v6, 16  ;;  %v754_v60 = vshll.u32 %v753_v48, 16  ;;  %v769_v6 = vshll.u32 %v768_v0, 16 }
 0x2a3   : > { %v692_v40 = vcvt.f32.s32 %v691_v30  ;;  %v707_v9 = vcvt.f32.s32 %v706_v38  ;;  %vm793_vm11 = vcmp.eq.s32.totalorder %v4284_v51, %v4649_v45  ;;  %vm794_vm12 = vcmp.eq.s32.totalorder %v4284_v51, %v4651_v18 }
 0x2a4   : > { %v4667_v33 = vsel %vm793_vm11, -1.0, %v4244_v25  ;;  %v4673_v7 = vsel %vm794_vm12, -1.0, %v4252_v34  ;;  %v783_v30 = vcvt.f32.s32 %v4554_v23 }
 0x2a5   : > { %8209 = vst [vmem:[#allocation53_spill] sm:$0xff] %v4673_v7  ;;  %v4675_v8 = vadd.s32 %v694_v58, %v692_v40  ;;  %v4677_v11 = vadd.s32 %v709_v63, %v707_v9  ;;  %v887_v62 = vsel %vm8051_vm1, %v4667_v33, -inf  ;;  %v890_v44 = vsel %vm8051_vm1, %v4673_v7, -inf }
 0x2a6   : > { %888 = vmax.xlane.f32.xlu1 %v887_v62  ;;  %v721_v32 = vpop.xlane.xlu1 %720  ;;  %891 = vmax.xlane.f32.xlu0 %v890_v44  ;;  %v736_v3 = vpop.xlane.xlu0 %735 }
 0x2a7   : > { %8210 = vst [vmem:[#allocation54_spill] sm:$0xff] %v4677_v11  ;;  %v722_v26 = vcvt.f32.s32 %v721_v32  ;;  %v737_v27 = vcvt.f32.s32 %v736_v3  ;;  %vm795_vm13 = vcmp.eq.s32.totalorder %v4284_v51, %v4675_v8  ;;  %vm796_vm14 = vcmp.eq.s32.totalorder %v4284_v51, %v4677_v11 }
 0x2a8   : > { %v4693_v19 = vsel %vm795_vm13, -1.0, %v4254_v37  ;;  %v4699_v24 = vsel %vm796_vm14, -1.0, %v4260_v31  ;;  %v784_v3 = vshll.u32 %v783_v30, 16 }
 0x2a9   : > { %8211 = vst [vmem:[#allocation55_spill] sm:$0xff] %v4693_v19  ;;  %8212 = vst [vmem:[#allocation56_spill] sm:$0xff] %v4699_v24  ;;  %v4701_v28 = vadd.s32 %v724_v49, %v722_v26  ;;  %v4703_v20 = vadd.s32 %v739_v50, %v737_v27  ;;  %v893_v58 = vsel %vm8051_vm1, %v4693_v19, -inf  ;;  %v896_v63 = vsel %vm8051_vm1, %v4699_v24, -inf }
 0x2aa   : > { %894 = vmax.xlane.f32.xlu1 %v893_v58  ;;  %v751_v38 = vpop.xlane.xlu1 %750  ;;  %897 = vmax.xlane.f32.xlu0 %v896_v63  ;;  %v766_v40 = vpop.xlane.xlu0 %765 }
 0x2ab   : > { %8213 = vst [vmem:[#allocation57_spill] sm:$0xff] %v4701_v28  ;;  %8214 = vst [vmem:[#allocation58_spill] sm:$0xff] %v4703_v20  ;;  %v752_v9 = vcvt.f32.s32 %v751_v38  ;;  %v767_v62 = vcvt.f32.s32 %v766_v40  ;;  %vm797_vm15 = vcmp.eq.s32.totalorder %v4284_v51, %v4701_v28  ;;  %vm7984_vm0 = vcmp.eq.s32.totalorder %v4284_v51, %v4703_v20 }
 0x2ac   : > { %v4718_v44 = vsel %vm797_vm15, -1.0, %v4262_v39  ;;  %v4724_v23 = vsel %vm7984_vm0, -1.0, %v4268_v42 }
 0x2ad   : > { %8215 = vst [vmem:[#allocation59_spill] sm:$0xff] %v4718_v44  ;;  %8216 = vst [vmem:[#allocation60_spill] sm:$0xff] %v4724_v23  ;;  %v4726_v49 = vadd.s32 %v754_v60, %v752_v9  ;;  %v4728_v50 = vadd.s32 %v769_v6, %v767_v62  ;;  %v899_v48 = vsel %vm8051_vm1, %v4718_v44, -inf  ;;  %v902_v0 = vsel %vm8051_vm1, %v4724_v23, -inf }
 0x2ae   : > { %900 = vmax.xlane.f32.xlu1 %v899_v48  ;;  %v781_v32 = vpop.xlane.xlu1 %780  ;;  %903 = vmax.xlane.f32.xlu0 %v902_v0 }
 0x2af   : > { %8217 = vst [vmem:[#allocation61_spill] sm:$0xff] %v4726_v49  ;;  %8218 = vst [vmem:[#allocation62_spill] sm:$0xff] %v4728_v50  ;;  %v782_v26 = vcvt.f32.s32 %v781_v32  ;;  %vm7981_vm2 = vcmp.eq.s32.totalorder %v4284_v51, %v4726_v49  ;;  %vm7982_vm3 = vcmp.eq.s32.totalorder %v4284_v51, %v4728_v50 }
 0x2b0   : > { %v4742_v27 = vsel %vm7981_vm2, -1.0, %v4270_v43  ;;  %v4748_v58 = vsel %vm7982_vm3, -1.0, %v4276_v46 }
 0x2b1   : > { %8219 = vst [vmem:[#allocation63_spill] sm:$0xff] %v4742_v27  ;;  %8220 = vst [vmem:[#allocation64_spill] sm:$0xff] %v4748_v58  ;;  %v4750_v63 = vadd.s32 %v784_v3, %v782_v26  ;;  %v905_v60 = vsel %vm8051_vm1, %v4742_v27, -inf  ;;  %v908_v6 = vsel %vm8051_vm1, %v4748_v58, -inf }
 0x2b2   : > { %906 = vmax.xlane.f32.xlu1 %v905_v60  ;;  %909 = vmax.xlane.f32.xlu0 %v908_v6 }
 0x2b3   : > { %8221 = vst [vmem:[#allocation65_spill] sm:$0xff] %v4750_v63  ;;  %vm7983_vm2 = vcmp.eq.s32.totalorder %v4284_v51, %v4750_v63 }
 0x2b4   : > { %v4762_v30 = vsel %vm7983_vm2, -1.0, %v4278_v47 }
 0x2b5   : > { %8222 = vst [vmem:[#allocation66_spill] sm:$0xff] %v4762_v30  ;;  %v911_v38 = vsel %vm8051_vm1, %v4762_v30, -inf }
 0x2b6   : > { %912 = vmax.xlane.f32.xlu1 %v911_v38 }
 0x323   : > { %v4766_v40 = vpop.xlane.xlu0 %867 }
 0x324   : > { %8223 = vst [vmem:[#allocation67_spill] sm:$0xff] %v4766_v40  ;;  %vm914_vm3 = vcmp.eq.f32.partialorder %v4571_v29, %v4766_v40 }
 0x325   : > { %v930_v9 = vsel %vm914_vm3, %v4284_v51, 64 }
 0x326   : > { %v4772_v62 = vsel %vm8051_vm1, %v930_v9, 2147483647 }
 0x327   : > { %v4774_v48 = vpop.xlane.xlu1 %870  ;;  %v4776_v0 = vpop.xlane.xlu0 %873  ;;  %v948_v32 = vshra.s32 %v4772_v62, 16 }
 0x328   : > { %8224 = vst [vmem:[#allocation68_spill] sm:$0xff] %v4774_v48  ;;  %8225 = vst [vmem:[#allocation69_spill] sm:$0xff] %v4776_v0  ;;  %vm915_vm2 = vcmp.eq.f32.partialorder %v4589_v21, %v4774_v48  ;;  %vm916_vm0 = vcmp.eq.f32.partialorder %v4595_v14, %v4776_v0 }
 0x329   : > { %v4783_v3 = vcvt.s32.f32 %v948_v32  ;;  %v931_v26 = vsel %vm915_vm2, %v4284_v51, 64  ;;  %v932_v60 = vsel %vm916_vm0, %v4284_v51, 64 }
 0x32a   : > { %v4788_v6 = vsel %vm8051_vm1, %v931_v26, 2147483647  ;;  %v4791_v38 = vsel %vm8051_vm1, %v932_v60, 2147483647 }
 0x32b   : > { %v4793_v9 = vpop.xlane.xlu1 %876  ;;  %951 = vmin.xlane.f32.xlu0 %v4783_v3  ;;  %v4796_v1 = vpop.xlane.xlu0 %879  ;;  %v963_v57 = vshra.s32 %v4788_v6, 16  ;;  %v978_v32 = vshra.s32 %v4791_v38, 16 }
 0x32c   : > { %8226 = vst [vmem:[#allocation70_spill] sm:$0xff] %v4793_v9  ;;  %8227 = vst [vmem:[#allocation71_spill] sm:$0xff] %v4796_v1  ;;  %vm917_vm2 = vcmp.eq.f32.partialorder %v4615_v13, %v4793_v9  ;;  %vm918_vm0 = vcmp.eq.f32.partialorder %v4621_v10, %v4796_v1 }
 0x32d   : > { %v4804_v26 = vcvt.s32.f32 %v963_v57  ;;  %v4806_v60 = vcvt.s32.f32 %v978_v32  ;;  %v933_v0 = vsel %vm917_vm2, %v4284_v51, 64  ;;  %v934_v55 = vsel %vm918_vm0, %v4284_v51, 64 }
 0x32e   : > { %v4811_v48 = vsel %vm8051_vm1, %v933_v0, 2147483647  ;;  %v4814_v52 = vsel %vm8051_vm1, %v934_v55, 2147483647 }
 0x32f   : > { %966 = vmin.xlane.f32.xlu1 %v4804_v26  ;;  %v4817_v9 = vpop.xlane.xlu1 %882  ;;  %981 = vmin.xlane.f32.xlu0 %v4806_v60  ;;  %v4820_v57 = vpop.xlane.xlu0 %885  ;;  %v993_v32 = vshra.s32 %v4811_v48, 16  ;;  %v1008_v1 = vshra.s32 %v4814_v52, 16 }
 0x330   : > { %8228 = vst [vmem:[#allocation72_spill] sm:$0xff] %v4817_v9  ;;  %8229 = vst [vmem:[#allocation73_spill] sm:$0xff] %v4820_v57  ;;  %vm919_vm3 = vcmp.eq.f32.partialorder %v4641_v17, %v4817_v9  ;;  %vm920_vm2 = vcmp.eq.f32.partialorder %v4647_v41, %v4820_v57 }
 0x331   : > { %v4828_v55 = vcvt.s32.f32 %v993_v32  ;;  %v4830_v0 = vcvt.s32.f32 %v1008_v1  ;;  %v935_v40 = vsel %vm919_vm3, %v4284_v51, 64  ;;  %v936_v47 = vsel %vm920_vm2, %v4284_v51, 64 }
 0x332   : > { %v4835_v46 = vsel %vm8051_vm1, %v935_v40, 2147483647  ;;  %v4838_v43 = vsel %vm8051_vm1, %v936_v47, 2147483647 }
 0x333   : > { %996 = vmin.xlane.f32.xlu1 %v4828_v55  ;;  %v4841_v9 = vpop.xlane.xlu1 %888  ;;  %1011 = vmin.xlane.f32.xlu0 %v4830_v0  ;;  %v4844_v32 = vpop.xlane.xlu0 %891  ;;  %v1023_v1 = vshra.s32 %v4835_v46, 16  ;;  %v1038_v57 = vshra.s32 %v4838_v43, 16 }
 0x334   : > { %8230 = vst [vmem:[#allocation74_spill] sm:$0xff] %v4841_v9  ;;  %8231 = vst [vmem:[#allocation75_spill] sm:$0xff] %v4844_v32  ;;  %vm921_vm0 = vcmp.eq.f32.partialorder %v4667_v33, %v4841_v9  ;;  %vm922_vm3 = vcmp.eq.f32.partialorder %v4673_v7, %v4844_v32 }
 0x335   : > { %v4852_v47 = vcvt.s32.f32 %v1023_v1  ;;  %v4854_v40 = vcvt.s32.f32 %v1038_v57  ;;  %v937_v42 = vsel %vm921_vm0, %v4284_v51, 64  ;;  %v938_v39 = vsel %vm922_vm3, %v4284_v51, 64 }
 0x336   : > { %v4859_v31 = vsel %vm8051_vm1, %v937_v42, 2147483647  ;;  %v4862_v37 = vsel %vm8051_vm1, %v938_v39, 2147483647 }
 0x337   : > { %1026 = vmin.xlane.f32.xlu1 %v4852_v47  ;;  %v4865_v9 = vpop.xlane.xlu1 %894  ;;  %1041 = vmin.xlane.f32.xlu0 %v4854_v40  ;;  %v4868_v1 = vpop.xlane.xlu0 %897  ;;  %v1053_v57 = vshra.s32 %v4859_v31, 16  ;;  %v1068_v32 = vshra.s32 %v4862_v37, 16 }
 0x338   : > { %8232 = vst [vmem:[#allocation76_spill] sm:$0xff] %v4865_v9  ;;  %8233 = vst [vmem:[#allocation77_spill] sm:$0xff] %v4868_v1  ;;  %vm923_vm2 = vcmp.eq.f32.partialorder %v4693_v19, %v4865_v9  ;;  %vm924_vm0 = vcmp.eq.f32.partialorder %v4699_v24, %v4868_v1  ;;  %v992_v24 = vand.u32 65535, %v4811_v48 }
 0x339   : > { %v4876_v39 = vcvt.s32.f32 %v1053_v57  ;;  %v4878_v42 = vcvt.s32.f32 %v1068_v32  ;;  %v939_v34 = vsel %vm923_vm2, %v4284_v51, 64  ;;  %v940_v25 = vsel %vm924_vm0, %v4284_v51, 64 }
 0x33a   : > { %v4883_v22 = vsel %vm8051_vm1, %v939_v34, 2147483647  ;;  %v4886_v15 = vsel %vm8051_vm1, %v940_v25, 2147483647 }
 0x33b   : > { %1056 = vmin.xlane.f32.xlu1 %v4876_v39  ;;  %v4889_v9 = vpop.xlane.xlu1 %900  ;;  %1071 = vmin.xlane.f32.xlu0 %v4878_v42  ;;  %v4892_v57 = vpop.xlane.xlu0 %903  ;;  %v1083_v32 = vshra.s32 %v4883_v22, 16  ;;  %v1098_v1 = vshra.s32 %v4886_v15, 16 }
 0x33c   : > { %8234 = vst [vmem:[#allocation78_spill] sm:$0xff] %v4889_v9  ;;  %8235 = vst [vmem:[#allocation79_spill] sm:$0xff] %v4892_v57  ;;  %vm925_vm3 = vcmp.eq.f32.partialorder %v4718_v44, %v4889_v9  ;;  %vm926_vm2 = vcmp.eq.f32.partialorder %v4724_v23, %v4892_v57 }
 0x33d   : > { %v4900_v25 = vcvt.s32.f32 %v1083_v32  ;;  %v4902_v34 = vcvt.s32.f32 %v1098_v1  ;;  %v941_v12 = vsel %vm925_vm3, %v4284_v51, 64  ;;  %v942_v5 = vsel %vm926_vm2, %v4284_v51, 64 }
 0x33e   : > { %v4907_v59 = vsel %vm8051_vm1, %v941_v12, 2147483647  ;;  %v4910_v2 = vsel %vm8051_vm1, %v942_v5, 2147483647 }
 0x33f   : > { %1086 = vmin.xlane.f32.xlu1 %v4900_v25  ;;  %v4913_v9 = vpop.xlane.xlu1 %906  ;;  %1101 = vmin.xlane.f32.xlu0 %v4902_v34  ;;  %v4916_v32 = vpop.xlane.xlu0 %909  ;;  %v1113_v1 = vshra.s32 %v4907_v59, 16  ;;  %v1128_v57 = vshra.s32 %v4910_v2, 16 }
 0x340   : > { %8236 = vst [vmem:[#allocation80_spill] sm:$0xff] %v4913_v9  ;;  %8237 = vst [vmem:[#allocation81_spill] sm:$0xff] %v4916_v32  ;;  %vm927_vm0 = vcmp.eq.f32.partialorder %v4742_v27, %v4913_v9  ;;  %vm928_vm3 = vcmp.eq.f32.partialorder %v4748_v58, %v4916_v32 }
 0x341   : > { %v4924_v5 = vcvt.s32.f32 %v1113_v1  ;;  %v4926_v12 = vcvt.s32.f32 %v1128_v57  ;;  %v943_v56 = vsel %vm927_vm0, %v4284_v51, 64  ;;  %v944_v63 = vsel %vm928_vm3, %v4284_v51, 64 }
 0x342   : > { %v4931_v50 = vsel %vm8051_vm1, %v943_v56, 2147483647  ;;  %v4934_v49 = vsel %vm8051_vm1, %v944_v63, 2147483647 }
 0x343   : > { %1116 = vmin.xlane.f32.xlu1 %v4924_v5  ;;  %v4937_v9 = vpop.xlane.xlu1 %912  ;;  %1131 = vmin.xlane.f32.xlu0 %v4926_v12  ;;  %v1143_v1 = vshra.s32 %v4931_v50, 16  ;;  %v1158_v57 = vshra.s32 %v4934_v49, 16 }
 0x344   : > { %8238 = vst [vmem:[#allocation82_spill] sm:$0xff] %v4937_v9  ;;  %vm929_vm2 = vcmp.eq.f32.partialorder %v4762_v30, %v4937_v9 }
 0x345   : > { %v4944_v32 = vcvt.s32.f32 %v1143_v1  ;;  %v4946_v56 = vcvt.s32.f32 %v1158_v57  ;;  %v945_v63 = vsel %vm929_vm2, %v4284_v51, 64  ;;  %v947_v1 = vand.u32 65535, %v4772_v62 }
 0x346   : > { %v4950_v58 = vsel %vm8051_vm1, %v945_v63, 2147483647  ;;  %v977_v57 = vand.u32 65535, %v4791_v38  ;;  %v962_v63 = vand.u32 65535, %v4788_v6 }
 0x347   : > { %1146 = vmin.xlane.f32.xlu1 %v4944_v32  ;;  %1161 = vmin.xlane.f32.xlu0 %v4946_v56  ;;  %v1173_v27 = vshra.s32 %v4950_v58, 16  ;;  %v949_v30 = vcvt.s32.f32 %v947_v1  ;;  %v994_v1 = vcvt.s32.f32 %v992_v24 }
 0x348   : > { %v964_v62 = vcvt.s32.f32 %v962_v63  ;;  %v979_v38 = vcvt.s32.f32 %v977_v57 }
 0x349   : > { %v4955_v23 = vcvt.s32.f32 %v1173_v27  ;;  %v1007_v27 = vand.u32 65535, %v4814_v52  ;;  %v1037_v52 = vand.u32 65535, %v4838_v43  ;;  %v1067_v43 = vand.u32 65535, %v4862_v37 }
 0x34a   : > { %v1097_v37 = vand.u32 65535, %v4886_v15  ;;  %v1127_v15 = vand.u32 65535, %v4910_v2  ;;  %v1157_v2 = vand.u32 65535, %v4934_v49 }
 0x34b   : > { %1176 = vmin.xlane.f32.xlu1 %v4955_v23  ;;  %v1009_v57 = vcvt.s32.f32 %v1007_v27  ;;  %v1039_v27 = vcvt.s32.f32 %v1037_v52 }
 0x3b8   : > { %v4960_v9 = vpop.xlane.xlu0 %951 }
 0x3b9   : > { %vm953_vm0 = vcmp.eq.f32.partialorder %v4783_v3, %v4960_v9 }
 0x3ba   : > { %v954_v44 = vsel %vm953_vm0, %v949_v30, inf }
 0x3bb   : > { %955 = vmin.xlane.f32.xlu0 %v954_v44  ;;  %v1022_v44 = vand.u32 65535, %v4835_v46  ;;  %v1052_v46 = vand.u32 65535, %v4859_v31  ;;  %v1082_v31 = vand.u32 65535, %v4883_v22  ;;  %v1112_v22 = vand.u32 65535, %v4907_v59 }
 0x3bc   : > { %v4967_v19 = vpop.xlane.xlu1 %966  ;;  %v4969_v7 = vpop.xlane.xlu0 %981  ;;  %v1142_v59 = vand.u32 65535, %v4931_v50  ;;  %v1172_v50 = vand.u32 65535, %v4950_v58 }
 0x3bd   : > { %vm968_vm3 = vcmp.eq.f32.partialorder %v4804_v26, %v4967_v19  ;;  %vm983_vm2 = vcmp.eq.f32.partialorder %v4806_v60, %v4969_v7  ;;  %v1024_v24 = vcvt.s32.f32 %v1022_v44  ;;  %v1069_v44 = vcvt.s32.f32 %v1067_v43 }
 0x3be   : > { %v969_v6 = vsel %vm968_vm3, %v964_v62, inf  ;;  %v984_v3 = vsel %vm983_vm2, %v979_v38, inf  ;;  %v1114_v43 = vcvt.s32.f32 %v1112_v22 }
 0x3bf   : > { %970 = vmin.xlane.f32.xlu1 %v969_v6  ;;  %985 = vmin.xlane.f32.xlu0 %v984_v3  ;;  %v1054_v3 = vcvt.s32.f32 %v1052_v46 }
 0x3c0   : > { %v4977_v30 = vpop.xlane.xlu1 %996  ;;  %v4979_v48 = vpop.xlane.xlu0 %1011 }
 0x3c1   : > { %vm998_vm0 = vcmp.eq.f32.partialorder %v4828_v55, %v4977_v30  ;;  %vm1013_vm1 = vcmp.eq.f32.partialorder %v4830_v0, %v4979_v48 }
 0x3c2   : > { %v999_v26 = vsel %vm998_vm0, %v994_v1, inf  ;;  %v1014_v60 = vsel %vm1013_vm1, %v1009_v57, inf  ;;  %v1084_v57 = vcvt.s32.f32 %v1082_v31 }
 0x3c3   : > { %1000 = vmin.xlane.f32.xlu1 %v999_v26  ;;  %1015 = vmin.xlane.f32.xlu0 %v1014_v60  ;;  %v1099_v26 = vcvt.s32.f32 %v1097_v37  ;;  %v1174_v37 = vcvt.s32.f32 %v1172_v50 }
 0x3c4   : > { %v4987_v63 = vpop.xlane.xlu1 %1026  ;;  %v4989_v62 = vpop.xlane.xlu0 %1041 }
 0x3c5   : > { %vm1028_vm3 = vcmp.eq.f32.partialorder %v4852_v47, %v4987_v63  ;;  %vm1043_vm2 = vcmp.eq.f32.partialorder %v4854_v40, %v4989_v62 }
 0x3c6   : > { %v1029_v55 = vsel %vm1028_vm3, %v1024_v24, inf  ;;  %v1044_v0 = vsel %vm1043_vm2, %v1039_v27, inf  ;;  %v1129_v24 = vcvt.s32.f32 %v1127_v15 }
 0x3c7   : > { %1030 = vmin.xlane.f32.xlu1 %v1029_v55  ;;  %1045 = vmin.xlane.f32.xlu0 %v1044_v0  ;;  %v1144_v55 = vcvt.s32.f32 %v1142_v59  ;;  %v1159_v0 = vcvt.s32.f32 %v1157_v2 }
 0x3c8   : > { %v4997_v38 = vpop.xlane.xlu1 %1056  ;;  %v4999_v6 = vpop.xlane.xlu0 %1071 }
 0x3c9   : > { %vm1058_vm1 = vcmp.eq.f32.partialorder %v4876_v39, %v4997_v38  ;;  %vm1073_vm0 = vcmp.eq.f32.partialorder %v4878_v42, %v4999_v6 }
 0x3ca   : > { %v1059_v47 = vsel %vm1058_vm1, %v1054_v3, inf  ;;  %v1074_v40 = vsel %vm1073_vm0, %v1069_v44, inf  ;;  %v958_v3 = vcvt.f32.s32 %v4960_v9  ;;  %v8055_v44 = vmov 0.0  }
 0x3cb   : > { %1060 = vmin.xlane.f32.xlu1 %v1059_v47  ;;  %1075 = vmin.xlane.f32.xlu0 %v1074_v40  ;;  %v973_v47 = vcvt.f32.s32 %v4967_v19  ;;  %v988_v40 = vcvt.f32.s32 %v4969_v7  ;;  %v5059_v9 = vsel %vm789_vm7, 1.0, %v8055_v44  ;;  %v5065_v22 = vsel %vm790_vm8, 1.0, %v8055_v44 }
 0x3cc   : > { %v5007_v52 = vpop.xlane.xlu1 %1086  ;;  %v5009_v1 = vpop.xlane.xlu0 %1101  ;;  %v5071_v7 = vsel %vm791_vm9, 1.0, %v8055_v44  ;;  %v5077_v15 = vsel %vm792_vm10, 1.0, %v8055_v44  ;;  %v5095_v59 = vsel %vm795_vm13, 1.0, %v8055_v44  ;;  %v5101_v2 = vsel %vm796_vm14, 1.0, %v8055_v44 }
 0x3cd   : > { %vm1088_vm3 = vcmp.eq.f32.partialorder %v4900_v25, %v5007_v52  ;;  %vm1103_vm2 = vcmp.eq.f32.partialorder %v4902_v34, %v5009_v1  ;;  %v1108_v11 = vcvt.f32.s32 %v5009_v1 }
 0x3ce   : > { %v1089_v39 = vsel %vm1088_vm3, %v1084_v57, inf  ;;  %v1104_v42 = vsel %vm1103_vm2, %v1099_v26, inf  ;;  %v5083_v57 = vsel %vm793_vm11, 1.0, %v8055_v44  ;;  %v959_v26 = vshll.u32 %v958_v3, 16 }
 0x3cf   : > { %1090 = vmin.xlane.f32.xlu1 %v1089_v39  ;;  %1105 = vmin.xlane.f32.xlu0 %v1104_v42  ;;  %v5089_v42 = vsel %vm794_vm12, 1.0, %v8055_v44  ;;  %v1063_v3 = vcvt.f32.s32 %v4997_v38 }
 0x3d0   : > { %v5017_v60 = vpop.xlane.xlu1 %1116  ;;  %v5019_v46 = vpop.xlane.xlu0 %1131 }
 0x3d1   : > { %vm1118_vm1 = vcmp.eq.f32.partialorder %v4924_v5, %v5017_v60  ;;  %vm1133_vm0 = vcmp.eq.f32.partialorder %v4926_v12, %v5019_v46 }
 0x3d2   : > { %v1119_v25 = vsel %vm1118_vm1, %v1114_v43, inf  ;;  %v1134_v34 = vsel %vm1133_vm0, %v1129_v24, inf  ;;  %v5107_v43 = vsel %vm797_vm15, 1.0, %v8055_v44 }
 0x3d3   : > { %1120 = vmin.xlane.f32.xlu1 %v1119_v25  ;;  %1135 = vmin.xlane.f32.xlu0 %v1134_v34  ;;  %v974_v25 = vshll.u32 %v973_v47, 16  ;;  %v989_v34 = vshll.u32 %v988_v40, 16  ;;  %v1078_v47 = vcvt.f32.s32 %v4999_v6  ;;  %v1093_v40 = vcvt.f32.s32 %v5007_v52 }
 0x3d4   : > { %v5026_v27 = vpop.xlane.xlu1 %1146  ;;  %v5028_v49 = vpop.xlane.xlu0 %1161 }
 0x3d5   : > { %vm1148_vm3 = vcmp.eq.f32.partialorder %v4944_v32, %v5026_v27  ;;  %vm1163_vm2 = vcmp.eq.f32.partialorder %v4946_v56, %v5028_v49  ;;  %v3462_v32 = vsel %vm786_vm4, 1.0, %v8055_v44  ;;  %v3463_v56 = vsel %vm787_vm5, 1.0, %v8055_v44 }
 0x3d6   : > { %v1149_v5 = vsel %vm1148_vm3, %v1144_v55, inf  ;;  %v1164_v12 = vsel %vm1163_vm2, %v1159_v0, inf  ;;  %vm8239_vm4 = vcmp.eq.s32.totalorder %v4284_v51, %v4703_v20  ;;  %v1003_v55 = vcvt.f32.s32 %v4977_v30 }
 0x3d7   : > { %1150 = vmin.xlane.f32.xlu1 %v1149_v5  ;;  %1165 = vmin.xlane.f32.xlu0 %v1164_v12  ;;  %v5113_v24 = vsel %vm8239_vm4, 1.0, %v8055_v44  ;;  %v1018_v0 = vcvt.f32.s32 %v4979_v48  ;;  %v1033_v5 = vcvt.f32.s32 %v4987_v63  ;;  %v1048_v12 = vcvt.f32.s32 %v4989_v62 }
 0x3d8   : > { %v5034_v31 = vpop.xlane.xlu1 %1176 }
 0x3d9   : > { %vm1178_vm1 = vcmp.eq.f32.partialorder %v4955_v23, %v5034_v31  ;;  %v5053_v23 = vsel %vm788_vm6, 1.0, %v8055_v44  ;;  %vm8241_vm6 = vcmask 523264   ;;  %v1049_v6 = vshll.u32 %v1048_v12, 16 }
 0x3da   : > { %v1179_v58 = vsel %vm1178_vm1, %v1174_v37, inf  ;;  %vm8245_vm9 = vmmov %vm8241_vm6 }
 0x3db   : > { %1180 = vmin.xlane.f32.xlu1 %v1179_v58  ;;  %vm8248_vm10 = vmmov %vm8241_vm6 }
 0x3dc   : > { %vm8252_vm13 = vmmov %vm8241_vm6 }
 0x3dd   : > { %vm8254_vm14 = vmmov %vm8241_vm6 }
 0x3de   : > { %vm8257_vm3 = vmmov %vm8241_vm6 }
 0x3df   : > { %vm8260_vm2 = vmmov %vm8257_vm3 }
 0x448   : > { %v956_v19 = vpop.xlane.xlu0 %955 }
 0x449   : > { %v957_v39 = vcvt.f32.s32 %v956_v19 }
 0x44b   : > { %v5115_v50 = vadd.s32 %v959_v26, %v957_v39  ;;  %v1004_v39 = vshll.u32 %v1003_v55, 16 }
 0x44c   : > { %v971_v37 = vpop.xlane.xlu1 %970  ;;  %v986_v58 = vpop.xlane.xlu0 %985 }
 0x44d   : > { %v972_v19 = vcvt.f32.s32 %v971_v37  ;;  %v987_v20 = vcvt.f32.s32 %v986_v58  ;;  %vm1186_vm5 = vcmp.eq.s32.totalorder %v4284_v51, %v5115_v50  ;;  %v1019_v37 = vshll.u32 %v1018_v0, 16 }
 0x44e   : > { %v5127_v30 = vsel %vm1186_vm5, -1.0, %v4571_v29  ;;  %v3478_v48 = vsel %vm1186_vm5, 1.0, %v8055_v44  ;;  %v1034_v58 = vshll.u32 %v1033_v5, 16  ;;  %v1064_v29 = vshll.u32 %v1063_v3, 16  ;;  %vm8265_vm5 = vmmov %vm8260_vm2 }
 0x44f   : > { %8240 = vst [vmem:[#allocation83_spill] sm:$0xff] %v5127_v30  ;;  %v5130_v63 = vadd.s32 %v974_v25, %v972_v19  ;;  %v5132_v62 = vadd.s32 %v989_v34, %v987_v20  ;;  %v1266_v38 = vsel %vm8241_vm6, %v5127_v30, -inf  ;;  %v5136_v26 = vadd.f32 %v3478_v48, %v3462_v32  ;;  %vm8267_vm6 = vmmov %vm8260_vm2 }
 0x450   : > { %v1001_v28 = vpop.xlane.xlu1 %1000  ;;  %1267 = vmax.xlane.f32.xlu0 %v1266_v38  ;;  %v1016_v52 = vpop.xlane.xlu0 %1015  ;;  %v1079_v19 = vshll.u32 %v1078_v47, 16  ;;  %v5139_v20 = vshll.u32 %v1093_v40, 16  ;;  %v8244_v0 = vmov 0.0   ;;  %v1109_v40 = vshll.u32 %v1108_v11, 16 }
 0x451   : > { %8242 = vst [vmem:[#allocation84_spill] sm:$0xff] %v5136_v26  ;;  %v1002_v44 = vcvt.f32.s32 %v1001_v28  ;;  %v1017_v25 = vcvt.f32.s32 %v1016_v52  ;;  %vm1187_vm7 = vcmp.eq.s32.totalorder %v4284_v51, %v5130_v63  ;;  %vm1188_vm8 = vcmp.eq.s32.totalorder %v4284_v51, %v5132_v62 }
 0x452   : > { %v5150_v55 = vsel %vm1187_vm7, -1.0, %v4589_v21  ;;  %v3479_v1 = vsel %vm1187_vm7, 1.0, %v8244_v0  ;;  %v5158_v3 = vsel %vm1188_vm8, -1.0, %v4595_v14  ;;  %v3480_v47 = vsel %vm1188_vm8, 1.0, %v8244_v0 }
 0x453   : > { %v5145_v32 = vadd.s32 %v1004_v39, %v1002_v44  ;;  %v5147_v34 = vadd.s32 %v1019_v37, %v1017_v25  ;;  %8243 = vst [vmem:[#allocation85_spill] sm:$0xff] %v5150_v55  ;;  %v1269_v28 = vsel %vm8245_vm9, %v5150_v55, -inf  ;;  %v5155_v5 = vadd.f32 %v3479_v1, %v3463_v56  ;;  %8247 = vst [vmem:[#allocation87_spill] sm:$0xff] %v5158_v3 }
 0x454   : > { %v1031_v12 = vpop.xlane.xlu1 %1030  ;;  %v1046_v44 = vpop.xlane.xlu0 %1045  ;;  %v1123_v48 = vcvt.f32.s32 %v5017_v60  ;;  %1270 = vmax.xlane.f32.xlu1 %v1269_v28  ;;  %v1272_v38 = vsel %vm8248_vm10, %v5158_v3, -inf  ;;  %v5165_v39 = vadd.f32 %v3480_v47, %v5053_v23  ;;  %vm8272_vm9 = vmmov %vm8260_vm2 }
 0x455   : > { %8246 = vst [vmem:[#allocation86_spill] sm:$0xff] %v5155_v5  ;;  %v1032_v21 = vcvt.f32.s32 %v1031_v12  ;;  %1273 = vmax.xlane.f32.xlu0 %v1272_v38  ;;  %v1047_v56 = vcvt.f32.s32 %v1046_v44  ;;  %vm1189_vm11 = vcmp.eq.s32.totalorder %v4284_v51, %v5145_v32  ;;  %vm1190_vm12 = vcmp.eq.s32.totalorder %v4284_v51, %v5147_v34  ;;  %vm8276_vm10 = vmmov %vm8260_vm2 }
 0x456   : > { %8249 = vst [vmem:[#allocation88_spill] sm:$0xff] %v5165_v39  ;;  %v5174_v11 = vsel %vm1189_vm11, -1.0, %v4615_v13  ;;  %v3481_v60 = vsel %vm1189_vm11, 1.0, %v8244_v0  ;;  %v5178_v37 = vsel %vm1190_vm12, -1.0, %v4621_v10  ;;  %v1138_v13 = vcvt.f32.s32 %v5019_v46 }
 0x457   : > { %v5171_v14 = vadd.s32 %v1034_v58, %v1032_v21  ;;  %8250 = vst [vmem:[#allocation89_spill] sm:$0xff] %v5174_v11  ;;  %8251 = vst [vmem:[#allocation90_spill] sm:$0xff] %v5178_v37  ;;  %v5180_v52 = vadd.s32 %v1049_v6, %v1047_v56  ;;  %v1275_v23 = vsel %vm8252_vm13, %v5174_v11, -inf  ;;  %v5185_v25 = vadd.f32 %v3481_v60, %v5059_v9 }
 0x458   : > { %v1061_v1 = vpop.xlane.xlu1 %1060  ;;  %v1278_v58 = vsel %vm8254_vm14, %v5178_v37, -inf  ;;  %v1076_v28 = vpop.xlane.xlu0 %1075  ;;  %1276 = vmax.xlane.f32.xlu1 %v1275_v23  ;;  %v3482_v10 = vsel %vm1190_vm12, 1.0, %v8244_v0  ;;  %v1124_v6 = vshll.u32 %v1123_v48, 16  ;;  %vm8284_vm13 = vmmov %vm8260_vm2 }
 0x459   : > { %8253 = vst [vmem:[#allocation91_spill] sm:$0xff] %v5185_v25  ;;  %v1062_v12 = vcvt.f32.s32 %v1061_v1  ;;  %v1077_v47 = vcvt.f32.s32 %v1076_v28  ;;  %1279 = vmax.xlane.f32.xlu0 %v1278_v58  ;;  %v5192_v44 = vadd.f32 %v3482_v10, %v5065_v22  ;;  %vm1191_vm15 = vcmp.eq.s32.totalorder %v4284_v51, %v5171_v14  ;;  %vm8286_vm14 = vmmov %vm8260_vm2 }
 0x45a   : > { %vm1192_vm0 = vcmp.eq.s32.totalorder %v4284_v51, %v5180_v52  ;;  %v5203_v46 = vsel %vm1191_vm15, -1.0, %v4641_v17  ;;  %v3483_v38 = vsel %vm1191_vm15, 1.0, %v8244_v0  ;;  %v1153_v1 = vcvt.f32.s32 %v5026_v27 }
 0x45b   : > { %8255 = vst [vmem:[#allocation92_spill] sm:$0xff] %v5192_v44  ;;  %v5198_v9 = vadd.s32 %v1064_v29, %v1062_v12  ;;  %v5200_v21 = vadd.s32 %v1079_v19, %v1077_v47  ;;  %8256 = vst [vmem:[#allocation93_spill] sm:$0xff] %v5203_v46  ;;  %v1281_v48 = vsel %vm8257_vm3, %v5203_v46, -inf  ;;  %v5209_v22 = vadd.f32 %v3483_v38, %v5071_v7  ;;  %v8263_v12 = vld [vmem:[#allocation53_spill] sm:$0xff] }
 0x45c   : > { %v1091_v56 = vpop.xlane.xlu1 %1090  ;;  %v5212_v60 = vsel %vm1192_vm0, -1.0, %v4647_v41  ;;  %v3484_v29 = vsel %vm1192_vm0, 1.0, %v8244_v0  ;;  %v1106_v23 = vpop.xlane.xlu0 %1105  ;;  %v1139_v19 = vshll.u32 %v1138_v13, 16  ;;  %1282 = vmax.xlane.f32.xlu1 %v1281_v48  ;;  %vm8293_vm3 = vmmov %vm8260_vm2 }
 0x45d   : > { %8258 = vst [vmem:[#allocation94_spill] sm:$0xff] %v5209_v22  ;;  %8259 = vst [vmem:[#allocation95_spill] sm:$0xff] %v5212_v60  ;;  %v1092_v17 = vcvt.f32.s32 %v1091_v56  ;;  %v1284_v58 = vsel %vm8260_vm2, %v5212_v60, -inf  ;;  %v5219_v28 = vadd.f32 %v3484_v29, %v5077_v15  ;;  %v1107_v7 = vcvt.f32.s32 %v1106_v23 }
 0x45e   : > { %1285 = vmax.xlane.f32.xlu0 %v1284_v58  ;;  %vm1193_vm1 = vcmp.eq.s32.totalorder %v4284_v51, %v5198_v9  ;;  %vm1194_vm4 = vcmp.eq.s32.totalorder %v4284_v51, %v5200_v21 }
 0x45f   : > { %8261 = vst [vmem:[#allocation96_spill] sm:$0xff] %v5219_v28  ;;  %v5226_v41 = vadd.s32 %v5139_v20, %v1092_v17  ;;  %v5229_v27 = vsel %vm1193_vm1, -1.0, %v4667_v33  ;;  %v3485_v13 = vsel %vm1193_vm1, 1.0, %v8244_v0  ;;  %v5233_v10 = vsel %vm1194_vm4, -1.0, %v8263_v12 }
 0x460   : > { %8262 = vst [vmem:[#allocation97_spill] sm:$0xff] %v5229_v27  ;;  %8264 = vst [vmem:[#allocation53_spill] sm:$0xff] %v5233_v10  ;;  %v5235_v15 = vadd.s32 %v1109_v40, %v1107_v7  ;;  %v1287_v47 = vsel %vm8265_vm5, %v5229_v27, -inf  ;;  %v5240_v38 = vadd.f32 %v3485_v13, %v5083_v57  ;;  %v1121_v48 = vpop.xlane.xlu1 %1120  ;;  %v1290_v20 = vsel %vm8267_vm6, %v5233_v10, -inf  ;;  %v1136_v56 = vpop.xlane.xlu0 %1135 }
 0x461   : > { %v1168_v33 = vcvt.f32.s32 %v5028_v49  ;;  %1288 = vmax.xlane.f32.xlu1 %v1287_v47  ;;  %v1122_v29 = vcvt.f32.s32 %v1121_v48  ;;  %v3486_v23 = vsel %vm1194_vm4, 1.0, %v8244_v0  ;;  %v1137_v17 = vcvt.f32.s32 %v1136_v56  ;;  %v8270_v49 = vld [vmem:[#allocation55_spill] sm:$0xff]  ;;  %v8274_v48 = vld [vmem:[#allocation56_spill] sm:$0xff]  ;;  %vm8299_vm4 = vmmov %vm8293_vm3 }
 0x462   : > { %8266 = vst [vmem:[#allocation98_spill] sm:$0xff] %v5240_v38  ;;  %v1154_v40 = vshll.u32 %v1153_v1, 16  ;;  %1291 = vmax.xlane.f32.xlu0 %v1290_v20  ;;  %v5247_v58 = vadd.f32 %v3486_v23, %v5089_v42  ;;  %vm1195_vm7 = vcmp.eq.s32.totalorder %v4284_v51, %v5226_v41  ;;  %vm1196_vm8 = vcmp.eq.s32.totalorder %v4284_v51, %v5235_v15 }
 0x463   : > { %v5253_v57 = vadd.s32 %v1124_v6, %v1122_v29  ;;  %v5255_v7 = vadd.s32 %v1139_v19, %v1137_v17  ;;  %v5258_v13 = vsel %vm1195_vm7, -1.0, %v8270_v49  ;;  %v3487_v12 = vsel %vm1195_vm7, 1.0, %v8244_v0  ;;  %vm8305_vm7 = vmmov %vm8293_vm3 }
 0x464   : > { %8268 = vst [vmem:[#allocation99_spill] sm:$0xff] %v5247_v58  ;;  %8271 = vst [vmem:[#allocation55_spill] sm:$0xff] %v5258_v13  ;;  %v1293_v1 = vsel %vm8272_vm9, %v5258_v13, -inf  ;;  %v5264_v42 = vadd.f32 %v3487_v12, %v5095_v59  ;;  %v1151_v47 = vpop.xlane.xlu1 %1150  ;;  %v5267_v20 = vsel %vm1196_vm8, -1.0, %v8274_v48  ;;  %v3488_v6 = vsel %vm1196_vm8, 1.0, %v8244_v0  ;;  %v1166_v56 = vpop.xlane.xlu0 %1165 }
 0x465   : > { %8269 = vst [vmem:[#allocation100_spill] sm:$0xff] %v5255_v7  ;;  %8275 = vst [vmem:[#allocation56_spill] sm:$0xff] %v5267_v20  ;;  %v1169_v19 = vshll.u32 %v1168_v33, 16  ;;  %v1183_v29 = vcvt.f32.s32 %v5034_v31  ;;  %1294 = vmax.xlane.f32.xlu1 %v1293_v1  ;;  %v1152_v23 = vcvt.f32.s32 %v1151_v47  ;;  %v1296_v17 = vsel %vm8276_vm10, %v5267_v20, -inf  ;;  %v8279_v33 = vld [vmem:[#allocation59_spill] sm:$0xff]  ;;  %v8281_v47 = vld [vmem:[#allocation60_spill] sm:$0xff] }
 0x466   : > { %8273 = vst [vmem:[#allocation101_spill] sm:$0xff] %v5264_v42  ;;  %1297 = vmax.xlane.f32.xlu0 %v1296_v17  ;;  %v5274_v49 = vadd.f32 %v3488_v6, %v5101_v2  ;;  %v1167_v59 = vcvt.f32.s32 %v1166_v56  ;;  %vm1197_vm11 = vcmp.eq.s32.totalorder %v4284_v51, %v5253_v57  ;;  %vm1198_vm12 = vcmp.eq.s32.totalorder %v4284_v51, %v5255_v7  ;;  %vm8308_vm9 = vmmov %vm8293_vm3 }
 0x467   : > { %v5280_v12 = vadd.s32 %v1154_v40, %v1152_v23  ;;  %v5283_v31 = vsel %vm1197_vm11, -1.0, %v8279_v33  ;;  %v3489_v1 = vsel %vm1197_vm11, 1.0, %v8244_v0  ;;  %v5287_v48 = vsel %vm1198_vm12, -1.0, %v8281_v47 }
 0x468   : > { %8277 = vst [vmem:[#allocation102_spill] sm:$0xff] %v5274_v49  ;;  %8280 = vst [vmem:[#allocation59_spill] sm:$0xff] %v5283_v31  ;;  %v5289_v17 = vadd.s32 %v1169_v19, %v1167_v59  ;;  %v1299_v2 = vsel %vm8284_vm13, %v5283_v31, -inf  ;;  %v5294_v6 = vadd.f32 %v3489_v1, %v5107_v43  ;;  %v1181_v56 = vpop.xlane.xlu1 %1180  ;;  %v1302_v40 = vsel %vm8286_vm14, %v5287_v48, -inf  ;;  %v8287_v19 = vld [vmem:[#allocation61_spill] sm:$0xff]  ;;  %v8290_v1 = vld [vmem:[#allocation63_spill] sm:$0xff] }
 0x469   : > { %8278 = vst [vmem:[#allocation103_spill] sm:$0xff] %v5280_v12  ;;  %8282 = vst [vmem:[#allocation60_spill] sm:$0xff] %v5287_v48  ;;  %v1184_v23 = vshll.u32 %v1183_v29, 16  ;;  %1300 = vmax.xlane.f32.xlu1 %v1299_v2  ;;  %v1182_v33 = vcvt.f32.s32 %v1181_v56  ;;  %v3490_v49 = vsel %vm1198_vm12, 1.0, %v8244_v0  ;;  %vm1199_vm15 = vcmp.eq.s32.totalorder %v4284_v51, %v5280_v12 }
 0x46a   : > { %8283 = vst [vmem:[#allocation104_spill] sm:$0xff] %v5289_v17  ;;  %8285 = vst [vmem:[#allocation105_spill] sm:$0xff] %v5294_v6  ;;  %vm8288_vm0 = vcmp.eq.s32.totalorder %v4284_v51, %v8287_v19  ;;  %1303 = vmax.xlane.f32.xlu0 %v1302_v40  ;;  %v5306_v43 = vadd.f32 %v3490_v49, %v5113_v24  ;;  %v5309_v47 = vsel %vm1199_vm15, -1.0, %v8290_v1  ;;  %v3491_v29 = vsel %vm1199_vm15, 1.0, %v8244_v0  ;;  %v8295_v40 = vld [vmem:[#allocation62_spill] sm:$0xff]  ;;  %v8297_v49 = vld [vmem:[#allocation64_spill] sm:$0xff] }
 0x46b   : > { %v3475_v59 = vsel %vm8288_vm0, 1.0, %v8244_v0  ;;  %8291 = vst [vmem:[#allocation63_spill] sm:$0xff] %v5309_v47  ;;  %v5312_v2 = vadd.s32 %v1184_v23, %v1182_v33  ;;  %v1305_v56 = vsel %vm8293_vm3, %v5309_v47, -inf  ;;  %vm1200_vm2 = vcmp.eq.s32.totalorder %v4284_v51, %v5289_v17  ;;  %vm8311_vm12 = vmmov %vm8293_vm3 }
 0x46c   : > { %8289 = vst [vmem:[#allocation106_spill] sm:$0xff] %v5306_v43  ;;  %v5316_v6 = vadd.f32 %v3491_v29, %v3475_v59  ;;  %vm8296_vm1 = vcmp.eq.s32.totalorder %v4284_v51, %v8295_v40  ;;  %v5325_v1 = vsel %vm1200_vm2, -1.0, %v8297_v49  ;;  %v3492_v43 = vsel %vm1200_vm2, 1.0, %v8244_v0  ;;  %v8301_v59 = vld [vmem:[#allocation65_spill] sm:$0xff]  ;;  %vm8313_vm13 = vmmov %vm8293_vm3 }
 0x46d   : > { %8292 = vst [vmem:[#allocation107_spill] sm:$0xff] %v5312_v2  ;;  %v3476_v24 = vsel %vm8296_vm1, 1.0, %v8244_v0  ;;  %8298 = vst [vmem:[#allocation64_spill] sm:$0xff] %v5325_v1  ;;  %1306 = vmax.xlane.f32.xlu1 %v1305_v56  ;;  %v1308_v23 = vsel %vm8299_vm4, %v5325_v1, -inf  ;;  %vm1201_vm5 = vcmp.eq.s32.totalorder %v4284_v51, %v5312_v2  ;;  %vm8302_vm6 = vcmp.eq.s32.totalorder %v4284_v51, %v8301_v59 }
 0x46e   : > { %8294 = vst [vmem:[#allocation108_spill] sm:$0xff] %v5316_v6  ;;  %v5330_v33 = vadd.f32 %v3492_v43, %v3476_v24  ;;  %v3477_v29 = vsel %vm8302_vm6, 1.0, %v8244_v0  ;;  %1309 = vmax.xlane.f32.xlu0 %v1308_v23  ;;  %v8303_v6 = vld [vmem:[#allocation66_spill] sm:$0xff]  ;;  %v3493_v42 = vsel %vm1201_vm5, 1.0, %v8244_v0  ;;  %vm8315_vm0 = vmmov %vm8293_vm3 }
 0x46f   : > { %v5339_v49 = vsel %vm1201_vm5, -1.0, %v8303_v6  ;;  %v5344_v58 = vadd.f32 %v3493_v42, %v3477_v29  ;;  %vm8317_vm3 = vmmov %vm8315_vm0 }
 0x470   : > { %8300 = vst [vmem:[#allocation109_spill] sm:$0xff] %v5330_v33  ;;  %8304 = vst [vmem:[#allocation66_spill] sm:$0xff] %v5339_v49  ;;  %v1311_v56 = vsel %vm8305_vm7, %v5339_v49, -inf }
 0x471   : > { %8306 = vst [vmem:[#allocation110_spill] sm:$0xff] %v5344_v58  ;;  %1312 = vmax.xlane.f32.xlu1 %v1311_v56  ;;  %vm8319_vm4 = vmmov %vm8315_vm0 }
 0x472   : > { %vm8321_vm5 = vmmov %vm8315_vm0 }
 0x4dd   : > { %v5346_v43 = vpop.xlane.xlu0 %1267 }
 0x4de   : > { %8307 = vst [vmem:[#allocation111_spill] sm:$0xff] %v5346_v43  ;;  %vm1314_vm8 = vcmp.eq.f32.partialorder %v5127_v30, %v5346_v43 }
 0x4df   : > { %v1330_v24 = vsel %vm1314_vm8, %v4284_v51, 64  ;;  %vm8323_vm8 = vmmov %vm8315_vm0 }
 0x4e0   : > { %v5352_v23 = vsel %vm8308_vm9, %v1330_v24, 2147483647  ;;  %vm8325_vm9 = vmmov %vm8315_vm0 }
 0x4e1   : > { %v1348_v6 = vshra.s32 %v5352_v23, 16  ;;  %v5355_v33 = vpop.xlane.xlu1 %1270 }
 0x4e2   : > { %8309 = vst [vmem:[#allocation112_spill] sm:$0xff] %v5355_v33  ;;  %vm1315_vm10 = vcmp.eq.f32.partialorder %v5150_v55, %v5355_v33  ;;  %v5359_v42 = vpop.xlane.xlu0 %1273 }
 0x4e3   : > { %8310 = vst [vmem:[#allocation113_spill] sm:$0xff] %v5359_v42  ;;  %v5361_v29 = vcvt.s32.f32 %v1348_v6  ;;  %v1331_v56 = vsel %vm1315_vm10, %v4284_v51, 64  ;;  %vm1316_vm11 = vcmp.eq.f32.partialorder %v5158_v3, %v5359_v42 }
 0x4e4   : > { %v1332_v43 = vsel %vm1316_vm11, %v4284_v51, 64  ;;  %v5369_v24 = vsel %vm8311_vm12, %v1331_v56, 2147483647  ;;  %vm8327_vm12 = vmmov %vm8315_vm0 }
 0x4e5   : > { %1351 = vmin.xlane.f32.xlu0 %v5361_v29  ;;  %v5371_v58 = vpop.xlane.xlu1 %1276  ;;  %v1363_v33 = vshra.s32 %v5369_v24, 16  ;;  %v5375_v59 = vsel %vm8313_vm13, %v1332_v43, 2147483647  ;;  %vm8329_vm13 = vmmov %vm8315_vm0 }
 0x4e6   : > { %8312 = vst [vmem:[#allocation114_spill] sm:$0xff] %v5371_v58  ;;  %vm1317_vm14 = vcmp.eq.f32.partialorder %v5174_v11, %v5371_v58  ;;  %v5379_v6 = vpop.xlane.xlu0 %1279  ;;  %v1378_v42 = vshra.s32 %v5375_v59, 16  ;;  %v1377_v17 = vand.u32 65535, %v5375_v59 }
 0x4e7   : > { %8314 = vst [vmem:[#allocation115_spill] sm:$0xff] %v5379_v6  ;;  %v1333_v2 = vsel %vm1317_vm14, %v4284_v51, 64  ;;  %vm1318_vm15 = vcmp.eq.f32.partialorder %v5178_v37, %v5379_v6  ;;  %v5385_v56 = vcvt.s32.f32 %v1363_v33 }
 0x4e8   : > { %v1334_v38 = vsel %vm1318_vm15, %v4284_v51, 64  ;;  %v5388_v28 = vcvt.s32.f32 %v1378_v42  ;;  %v5391_v43 = vsel %vm8315_vm0, %v1333_v2, 2147483647 }
 0x4e9   : > { %1366 = vmin.xlane.f32.xlu1 %v5385_v56  ;;  %v5394_v58 = vpop.xlane.xlu1 %1282  ;;  %v1393_v22 = vshra.s32 %v5391_v43, 16  ;;  %v5398_v44 = vsel %vm8317_vm3, %v1334_v38, 2147483647  ;;  %vm8332_vm3 = vmmov %vm8315_vm0  ;;  %v1392_v12 = vand.u32 65535, %v5391_v43 }
 0x4ea   : > { %8316 = vst [vmem:[#allocation116_spill] sm:$0xff] %v5394_v58  ;;  %vm1319_vm2 = vcmp.eq.f32.partialorder %v5203_v46, %v5394_v58  ;;  %1381 = vmin.xlane.f32.xlu0 %v5388_v28  ;;  %v1408_v42 = vshra.s32 %v5398_v44, 16 }
 0x4eb   : > { %v5403_v33 = vpop.xlane.xlu0 %1285  ;;  %v1335_v2 = vsel %vm1319_vm2, %v4284_v51, 64  ;;  %v5409_v6 = vcvt.s32.f32 %v1393_v22 }
 0x4ec   : > { %8318 = vst [vmem:[#allocation117_spill] sm:$0xff] %v5403_v33  ;;  %vm1320_vm1 = vcmp.eq.f32.partialorder %v5212_v60, %v5403_v33  ;;  %v5412_v38 = vcvt.s32.f32 %v1408_v42  ;;  %v5415_v37 = vsel %vm8319_vm4, %v1335_v2, 2147483647  ;;  %vm8334_vm4 = vmmov %vm8315_vm0 }
 0x4ed   : > { %v1336_v25 = vsel %vm1320_vm1, %v4284_v51, 64  ;;  %1396 = vmin.xlane.f32.xlu1 %v5409_v6  ;;  %v1423_v46 = vshra.s32 %v5415_v37, 16  ;;  %v1422_v43 = vand.u32 65535, %v5415_v37 }
 0x4ee   : > { %v5418_v58 = vpop.xlane.xlu1 %1288  ;;  %v5422_v11 = vsel %vm8321_vm5, %v1336_v25, 2147483647  ;;  %1411 = vmin.xlane.f32.xlu0 %v5412_v38  ;;  %vm8336_vm5 = vmmov %vm8315_vm0 }
 0x4ef   : > { %8320 = vst [vmem:[#allocation118_spill] sm:$0xff] %v5418_v58  ;;  %vm1321_vm6 = vcmp.eq.f32.partialorder %v5229_v27, %v5418_v58  ;;  %v5427_v22 = vpop.xlane.xlu0 %1291  ;;  %v1438_v42 = vshra.s32 %v5422_v11, 16  ;;  %v5433_v33 = vcvt.s32.f32 %v1423_v46 }
 0x4f0   : > { %8322 = vst [vmem:[#allocation119_spill] sm:$0xff] %v5427_v22  ;;  %v1337_v2 = vsel %vm1321_vm6, %v4284_v51, 64  ;;  %vm1322_vm7 = vcmp.eq.f32.partialorder %v5233_v10, %v5427_v22 }
 0x4f1   : > { %v1338_v60 = vsel %vm1322_vm7, %v4284_v51, 64  ;;  %v5436_v25 = vcvt.s32.f32 %v1438_v42  ;;  %v5439_v39 = vsel %vm8323_vm8, %v1337_v2, 2147483647  ;;  %1426 = vmin.xlane.f32.xlu1 %v5433_v33  ;;  %vm8337_vm7 = vmmov %vm8315_vm0 }
 0x4f2   : > { %v5442_v58 = vpop.xlane.xlu1 %1294  ;;  %v1453_v27 = vshra.s32 %v5439_v39, 16  ;;  %v5446_v3 = vsel %vm8325_vm9, %v1338_v60, 2147483647  ;;  %v1452_v37 = vand.u32 65535, %v5439_v39 }
 0x4f3   : > { %8324 = vst [vmem:[#allocation120_spill] sm:$0xff] %v5442_v58  ;;  %vm1323_vm10 = vcmp.eq.f32.partialorder %v5258_v13, %v5442_v58  ;;  %1441 = vmin.xlane.f32.xlu0 %v5436_v25  ;;  %v5451_v46 = vpop.xlane.xlu0 %1297  ;;  %v1468_v42 = vshra.s32 %v5446_v3, 16 }
 0x4f4   : > { %8326 = vst [vmem:[#allocation121_spill] sm:$0xff] %v5451_v46  ;;  %v1339_v2 = vsel %vm1323_vm10, %v4284_v51, 64  ;;  %vm1324_vm11 = vcmp.eq.f32.partialorder %v5267_v20, %v5451_v46  ;;  %v5457_v22 = vcvt.s32.f32 %v1453_v27 }
 0x4f5   : > { %v1340_v10 = vsel %vm1324_vm11, %v4284_v51, 64  ;;  %v5460_v60 = vcvt.s32.f32 %v1468_v42  ;;  %v5463_v5 = vsel %vm8327_vm12, %v1339_v2, 2147483647 }
 0x4f6   : > { %1456 = vmin.xlane.f32.xlu1 %v5457_v22  ;;  %v5466_v58 = vpop.xlane.xlu1 %1300  ;;  %v1483_v13 = vshra.s32 %v5463_v5, 16  ;;  %v5470_v55 = vsel %vm8329_vm13, %v1340_v10, 2147483647  ;;  %v1482_v39 = vand.u32 65535, %v5463_v5 }
 0x4f7   : > { %8328 = vst [vmem:[#allocation122_spill] sm:$0xff] %v5466_v58  ;;  %vm1325_vm14 = vcmp.eq.f32.partialorder %v5283_v31, %v5466_v58  ;;  %1471 = vmin.xlane.f32.xlu0 %v5460_v60  ;;  %v5475_v27 = vpop.xlane.xlu0 %1303  ;;  %v1498_v42 = vshra.s32 %v5470_v55, 16 }
 0x4f8   : > { %8330 = vst [vmem:[#allocation123_spill] sm:$0xff] %v5475_v27  ;;  %v1341_v2 = vsel %vm1325_vm14, %v4284_v51, 64  ;;  %vm1326_vm15 = vcmp.eq.f32.partialorder %v5287_v48, %v5475_v27  ;;  %v5481_v46 = vcvt.s32.f32 %v1483_v13 }
 0x4f9   : > { %v1342_v20 = vsel %vm1326_vm15, %v4284_v51, 64  ;;  %v5484_v10 = vcvt.s32.f32 %v1498_v42  ;;  %v5487_v26 = vsel %vm8315_vm0, %v1341_v2, 2147483647 }
 0x4fa   : > { %1486 = vmin.xlane.f32.xlu1 %v5481_v46  ;;  %v5490_v58 = vpop.xlane.xlu1 %1306  ;;  %v1513_v31 = vshra.s32 %v5487_v26, 16  ;;  %v5494_v0 = vsel %vm8332_vm3, %v1342_v20, 2147483647  ;;  %v1512_v5 = vand.u32 65535, %v5487_v26 }
 0x4fb   : > { %8331 = vst [vmem:[#allocation124_spill] sm:$0xff] %v5490_v58  ;;  %vm1327_vm2 = vcmp.eq.f32.partialorder %v5309_v47, %v5490_v58  ;;  %1501 = vmin.xlane.f32.xlu0 %v5484_v10  ;;  %v5499_v13 = vpop.xlane.xlu0 %1309  ;;  %v1528_v42 = vshra.s32 %v5494_v0, 16 }
 0x4fc   : > { %8333 = vst [vmem:[#allocation125_spill] sm:$0xff] %v5499_v13  ;;  %v1343_v2 = vsel %vm1327_vm2, %v4284_v51, 64  ;;  %vm1328_vm1 = vcmp.eq.f32.partialorder %v5325_v1, %v5499_v13  ;;  %v5505_v27 = vcvt.s32.f32 %v1513_v31 }
 0x4fd   : > { %v1344_v48 = vsel %vm1328_vm1, %v4284_v51, 64  ;;  %v5508_v20 = vcvt.s32.f32 %v1528_v42  ;;  %v5511_v30 = vsel %vm8334_vm4, %v1343_v2, 2147483647 }
 0x4fe   : > { %1516 = vmin.xlane.f32.xlu1 %v5505_v27  ;;  %v5514_v58 = vpop.xlane.xlu1 %1312  ;;  %v1543_v47 = vshra.s32 %v5511_v30, 16  ;;  %v5518_v40 = vsel %vm8336_vm5, %v1344_v48, 2147483647  ;;  %v1542_v26 = vand.u32 65535, %v5511_v30 }
 0x4ff   : > { %8335 = vst [vmem:[#allocation126_spill] sm:$0xff] %v5514_v58  ;;  %vm1329_vm6 = vcmp.eq.f32.partialorder %v5339_v49, %v5514_v58  ;;  %1531 = vmin.xlane.f32.xlu0 %v5508_v20  ;;  %v1558_v31 = vshra.s32 %v5518_v40, 16  ;;  %v1347_v49 = vand.u32 65535, %v5352_v23  ;;  %v1407_v23 = vand.u32 65535, %v5398_v44 }
 0x500   : > { %v1345_v42 = vsel %vm1329_vm6, %v4284_v51, 64  ;;  %v5525_v2 = vcvt.s32.f32 %v1543_v47  ;;  %v1437_v44 = vand.u32 65535, %v5422_v11  ;;  %v1467_v11 = vand.u32 65535, %v5446_v3 }
 0x501   : > { %v5527_v13 = vcvt.s32.f32 %v1558_v31  ;;  %v5530_v1 = vsel %vm8337_vm7, %v1345_v42, 2147483647  ;;  %v1349_v47 = vcvt.s32.f32 %v1347_v49  ;;  %v1362_v31 = vand.u32 65535, %v5369_v24 }
 0x502   : > { %1546 = vmin.xlane.f32.xlu1 %v5525_v2  ;;  %v1573_v48 = vshra.s32 %v5530_v1, 16  ;;  %v1379_v49 = vcvt.s32.f32 %v1377_v17  ;;  %v1409_v17 = vcvt.s32.f32 %v1407_v23  ;;  %v1497_v3 = vand.u32 65535, %v5470_v55 }
 0x503   : > { %1561 = vmin.xlane.f32.xlu0 %v5527_v13  ;;  %v1527_v55 = vand.u32 65535, %v5494_v0  ;;  %v1557_v0 = vand.u32 65535, %v5518_v40  ;;  %v1572_v30 = vand.u32 65535, %v5530_v1 }
 0x504   : > { %v5535_v58 = vcvt.s32.f32 %v1573_v48  ;;  %v1364_v48 = vcvt.s32.f32 %v1362_v31 }
 0x506   : > { %1576 = vmin.xlane.f32.xlu1 %v5535_v58 }
 0x572   : > { %v5539_v51 = vpop.xlane.xlu0 %1351 }
 0x573   : > { %vm1353_vm8 = vcmp.eq.f32.partialorder %v5361_v29, %v5539_v51 }
 0x574   : > { %v1354_v42 = vsel %vm1353_vm8, %v1349_v47, inf  ;;  %v1394_v47 = vcvt.s32.f32 %v1392_v12  ;;  %v1424_v12 = vcvt.s32.f32 %v1422_v43  ;;  %vm2850_vm8 = vcmask 7168  }
 0x575   : > { %1355 = vmin.xlane.f32.xlu0 %v1354_v42 }
 0x576   : > { %v5545_v19 = vpop.xlane.xlu1 %1366 }
 0x577   : > { %v5548_v7 = vpop.xlane.xlu0 %1381  ;;  %vm1368_vm9 = vcmp.eq.f32.partialorder %v5385_v56, %v5545_v19 }
 0x578   : > { %v1369_v29 = vsel %vm1368_vm9, %v1364_v48, inf  ;;  %vm1383_vm10 = vcmp.eq.f32.partialorder %v5388_v28, %v5548_v7  ;;  %vm2867_vm9 = vcmask 15360  }
 0x579   : > { %1370 = vmin.xlane.f32.xlu1 %v1369_v29  ;;  %v1384_v59 = vsel %vm1383_vm10, %v1379_v49, inf  ;;  %v1454_v29 = vcvt.s32.f32 %v1452_v37 }
 0x57a   : > { %1385 = vmin.xlane.f32.xlu0 %v1384_v59  ;;  %v5555_v24 = vpop.xlane.xlu1 %1396 }
 0x57b   : > { %v5558_v31 = vpop.xlane.xlu0 %1411  ;;  %vm1398_vm11 = vcmp.eq.f32.partialorder %v5409_v6, %v5555_v24  ;;  %v1439_v6 = vcvt.s32.f32 %v1437_v44 }
 0x57c   : > { %v1399_v56 = vsel %vm1398_vm11, %v1394_v47, inf  ;;  %vm1413_vm12 = vcmp.eq.f32.partialorder %v5412_v38, %v5558_v31  ;;  %vm8349_vm11 = vcmask 523264  }
 0x57d   : > { %1400 = vmin.xlane.f32.xlu1 %v1399_v56  ;;  %v1414_v28 = vsel %vm1413_vm12, %v1409_v17, inf  ;;  %v1484_v17 = vcvt.s32.f32 %v1482_v39  ;;  %v1574_v39 = vcvt.s32.f32 %v1572_v30  ;;  %v8346_v30 = vld [vmem:[#allocation36_spill] sm:$0xff] }
 0x57e   : > { %1415 = vmin.xlane.f32.xlu0 %v1414_v28  ;;  %v5565_v42 = vpop.xlane.xlu1 %1426 }
 0x57f   : > { %vm1428_vm13 = vcmp.eq.f32.partialorder %v5433_v33, %v5565_v42  ;;  %v1469_v33 = vcvt.s32.f32 %v1467_v11 }
 0x580   : > { %v5568_v48 = vpop.xlane.xlu0 %1441  ;;  %v1429_v49 = vsel %vm1428_vm13, %v1424_v12, inf  ;;  %v1514_v12 = vcvt.s32.f32 %v1512_v5  ;;  %vm8352_vm13 = vmmov %vm8349_vm11 }
 0x581   : > { %vm1443_vm14 = vcmp.eq.f32.partialorder %v5436_v25, %v5568_v48  ;;  %1430 = vmin.xlane.f32.xlu1 %v1429_v49  ;;  %v1544_v49 = vcvt.s32.f32 %v1542_v26 }
 0x582   : > { %v1444_v38 = vsel %vm1443_vm14, %v1439_v6, inf }
 0x583   : > { %1445 = vmin.xlane.f32.xlu0 %v1444_v38  ;;  %v5575_v23 = vpop.xlane.xlu1 %1456 }
 0x584   : > { %v5578_v59 = vpop.xlane.xlu0 %1471  ;;  %vm1458_vm15 = vcmp.eq.f32.partialorder %v5457_v22, %v5575_v23  ;;  %v1499_v22 = vcvt.s32.f32 %v1497_v3  ;;  %v5639_v3 = vsel %vm2850_vm8, %v4599_v53, %v5147_v34  ;;  %v1373_v53 = vcvt.f32.s32 %v5545_v19  ;;  %v8343_v19 = vld [vmem:[#allocation61_spill] sm:$0xff] }
 0x585   : > { %v1459_v47 = vsel %vm1458_vm15, %v1454_v29, inf  ;;  %vm1473_vm0 = vcmp.eq.f32.partialorder %v5460_v60, %v5578_v59  ;;  %vm8355_vm15 = vmmov %vm8349_vm11 }
 0x586   : > { %1460 = vmin.xlane.f32.xlu1 %v1459_v47  ;;  %v1474_v25 = vsel %vm1473_vm0, %v1469_v33, inf  ;;  %v5629_v33 = vsel %vm2850_vm8, %v4575_v4, %v5132_v62  ;;  %v5654_v4 = vsel %vm2850_vm8, %v4649_v45, %v5198_v9  ;;  %v5669_v45 = vsel %vm2850_vm8, %v4675_v8, %v5226_v41  ;;  %v8341_v9 = vld [vmem:[#allocation58_spill] sm:$0xff] }
 0x587   : > { %1475 = vmin.xlane.f32.xlu0 %v1474_v25  ;;  %v5585_v43 = vpop.xlane.xlu1 %1486  ;;  %v1448_v62 = vcvt.f32.s32 %v5568_v48  ;;  %v1463_v8 = vcvt.f32.s32 %v5575_v23  ;;  %v1374_v47 = vshll.u32 %v1373_v53, 16  ;;  %v1478_v23 = vcvt.f32.s32 %v5578_v59 }
 0x588   : > { %v5588_v44 = vpop.xlane.xlu0 %1501  ;;  %vm1488_vm3 = vcmp.eq.f32.partialorder %v5481_v46, %v5585_v43  ;;  %v1529_v46 = vcvt.s32.f32 %v1527_v55 }
 0x589   : > { %v1489_v56 = vsel %vm1488_vm3, %v1484_v17, inf  ;;  %vm1503_vm2 = vcmp.eq.f32.partialorder %v5484_v10, %v5588_v44  ;;  %v5699_v55 = vshll.u32 %v1448_v62, 16  ;;  %v1508_v26 = vcvt.f32.s32 %v5588_v44 }
 0x58a   : > { %1490 = vmin.xlane.f32.xlu1 %v1489_v56  ;;  %v1504_v60 = vsel %vm1503_vm2, %v1499_v22, inf  ;;  %v8348_v44 = vmov 0.0   ;;  %vm8359_vm2 = vmmov %vm8349_vm11 }
 0x58b   : > { %1505 = vmin.xlane.f32.xlu0 %v1504_v60  ;;  %v5595_v28 = vpop.xlane.xlu1 %1516  ;;  %v5702_v60 = vshll.u32 %v1463_v8, 16  ;;  %v5727_v53 = vshll.u32 %v1508_v26, 16 }
 0x58c   : > { %v5598_v37 = vpop.xlane.xlu0 %1531  ;;  %vm1518_vm1 = vcmp.eq.f32.partialorder %v5505_v27, %v5595_v28  ;;  %v1559_v27 = vcvt.s32.f32 %v1557_v0 }
 0x58d   : > { %v1519_v6 = vsel %vm1518_vm1, %v1514_v12, inf  ;;  %vm1533_vm4 = vcmp.eq.f32.partialorder %v5508_v20, %v5598_v37  ;;  %v1493_v12 = vcvt.f32.s32 %v5585_v43  ;;  %v1538_v0 = vcvt.f32.s32 %v5598_v37  ;;  %vm8361_vm1 = vmmov %vm8359_vm2 }
 0x58e   : > { %1520 = vmin.xlane.f32.xlu1 %v1519_v6  ;;  %v1534_v10 = vsel %vm1533_vm4, %v1529_v46, inf  ;;  %v1523_v46 = vcvt.f32.s32 %v5595_v28  ;;  %v5718_v28 = vshll.u32 %v1478_v23, 16  ;;  %v8354_v23 = vld [vmem:[#allocation87_spill] sm:$0xff] }
 0x58f   : > { %1535 = vmin.xlane.f32.xlu0 %v1534_v10  ;;  %v5605_v11 = vpop.xlane.xlu1 %1546 }
 0x590   : > { %v5608_v38 = vpop.xlane.xlu0 %1561  ;;  %vm1548_vm5 = vcmp.eq.f32.partialorder %v5525_v2, %v5605_v11  ;;  %v2967_v2 = vsel %vm2850_vm8, %v4561_v35, %v5115_v50  ;;  %v5644_v35 = vsel %vm2850_vm8, %v4623_v54, %v5171_v14  ;;  %v1388_v50 = vcvt.f32.s32 %v5548_v7  ;;  %v8339_v14 = vld [vmem:[#allocation57_spill] sm:$0xff]  ;;  %v8342_v7 = vld [vmem:[#allocation103_spill] sm:$0xff] }
 0x591   : > { %v1549_v29 = vsel %vm1548_vm5, %v1544_v49, inf  ;;  %vm1563_vm6 = vcmp.eq.f32.partialorder %v5527_v13, %v5608_v38  ;;  %v5624_v13 = vsel %vm2850_vm8, %v4573_v36, %v5130_v63  ;;  %v5649_v36 = vsel %vm2850_vm8, %v4625_v61, %v5180_v52  ;;  %vm8364_vm5 = vmmov %vm8361_vm1 }
 0x592   : > { %1550 = vmin.xlane.f32.xlu1 %v1549_v29  ;;  %v1564_v40 = vsel %vm1563_vm6, %v1559_v27, inf  ;;  %v1403_v63 = vcvt.f32.s32 %v5555_v24  ;;  %v1418_v54 = vcvt.f32.s32 %v5558_v31  ;;  %v5664_v61 = vsel %vm2850_vm8, %v4651_v18, %v5200_v21  ;;  %v8340_v18 = vld [vmem:[#allocation100_spill] sm:$0xff]  ;;  %v8345_v31 = vld [vmem:[#allocation62_spill] sm:$0xff] }
 0x593   : > { %1565 = vmin.xlane.f32.xlu0 %v1564_v40  ;;  %v5614_v20 = vpop.xlane.xlu1 %1576  ;;  %v5681_v52 = vsel %vm2850_vm8, %v8339_v14, %v5253_v57  ;;  %v5686_v21 = vsel %vm2850_vm8, %v8341_v9, %v8340_v18  ;;  %v5692_v24 = vsel %vm2850_vm8, %v8343_v19, %v8342_v7  ;;  %v1389_v25 = vshll.u32 %v1388_v50, 16  ;;  %v8347_v40 = vld [vmem:[#allocation83_spill] sm:$0xff]  ;;  %v8351_v19 = vld [vmem:[#allocation85_spill] sm:$0xff] }
 0x594   : > { %vm1578_vm7 = vcmp.eq.f32.partialorder %v5535_v58, %v5614_v20  ;;  %v5634_v58 = vsel %vm2850_vm8, %v4597_v16, %v5145_v32  ;;  %v1358_v16 = vcvt.f32.s32 %v5539_v51  ;;  %v1433_v51 = vcvt.f32.s32 %v5565_v42  ;;  %v8338_v32 = vld [vmem:[#allocation54_spill] sm:$0xff] }
 0x595   : > { %v1579_v1 = vsel %vm1578_vm7, %v1574_v39, inf  ;;  %v5676_v34 = vsel %vm2850_vm8, %v8338_v32, %v5235_v15  ;;  %v8344_v15 = vld [vmem:[#allocation104_spill] sm:$0xff]  ;;  %v1404_v17 = vshll.u32 %v1403_v63, 16  ;;  %v1419_v5 = vshll.u32 %v1418_v54, 16  ;;  %vm8368_vm7 = vmmov %vm8361_vm1 }
 0x596   : > { %1580 = vmin.xlane.f32.xlu1 %v1579_v1  ;;  %v5697_v42 = vsel %vm2850_vm8, %v8345_v31, %v8344_v15  ;;  %v1359_v57 = vshll.u32 %v1358_v16, 16  ;;  %v1434_v22 = vshll.u32 %v1433_v51, 16  ;;  %v1553_v6 = vcvt.f32.s32 %v5605_v11  ;;  %v8350_v1 = vld [vmem:[#allocation84_spill] sm:$0xff] }
 0x597   : > { %v1568_v59 = vcvt.f32.s32 %v5608_v38  ;;  %v5725_v16 = vshll.u32 %v1493_v12, 16  ;;  %v5729_v38 = vshll.u32 %v1523_v46, 16  ;;  %v5731_v63 = vshll.u32 %v1538_v0, 16  ;;  %v8356_v0 = vld [vmem:[#allocation88_spill] sm:$0xff] }
 0x598   : > { %v5733_v54 = vshll.u32 %v1553_v6, 16  ;;  %v1583_v51 = vcvt.f32.s32 %v5614_v20 }
 0x599   : > { %v5736_v14 = vshll.u32 %v1568_v59, 16 }
 0x602   : > { %v1356_v41 = vpop.xlane.xlu0 %1355 }
 0x603   : > { %v1357_v48 = vcvt.f32.s32 %v1356_v41 }
 0x605   : > { %v1360_v56 = vadd.s32 %v1359_v57, %v1357_v48 }
 0x606   : > { %v1371_v49 = vpop.xlane.xlu1 %1370 }
 0x607   : > { %v5710_v10 = vsel %vm2867_vm9, %v2967_v2, %v1360_v56  ;;  %vm1586_vm10 = vcmp.eq.s32.totalorder %v8346_v30, %v1360_v56  ;;  %v1372_v27 = vcvt.f32.s32 %v1371_v49  ;;  %v1386_v29 = vpop.xlane.xlu0 %1385 }
 0x608   : > { %v5715_v43 = vsel %vm1586_vm10, -1.0, %v8347_v40  ;;  %v3494_v39 = vsel %vm1586_vm10, 1.0, %v8348_v44  ;;  %v1387_v37 = vcvt.f32.s32 %v1386_v29 }
 0x609   : > { %v1666_v11 = vsel %vm8349_vm11, %v5715_v43, -inf  ;;  %v5723_v2 = vadd.f32 %v3494_v39, %v8350_v1  ;;  %v1375_v50 = vadd.s32 %v1374_v47, %v1372_v27  ;;  %v5757_v47 = vshll.u32 %v1583_v51, 16  ;;  %v8357_v27 = vld [vmem:[#allocation89_spill] sm:$0xff]  ;;  %v8358_v39 = vld [vmem:[#allocation90_spill] sm:$0xff]  ;;  %v8360_v1 = vld [vmem:[#allocation91_spill] sm:$0xff] }
 0x60a   : > { %1667 = vmax.xlane.f32.xlu0 %v1666_v11  ;;  %v1390_v62 = vadd.s32 %v1389_v25, %v1387_v37  ;;  %v1401_v32 = vpop.xlane.xlu1 %1400 }
 0x60b   : > { %v5740_v18 = vsel %vm2867_vm9, %v5624_v13, %v1375_v50  ;;  %v1402_v9 = vcvt.f32.s32 %v1401_v32  ;;  %v1416_v8 = vpop.xlane.xlu0 %1415  ;;  %vm1587_vm12 = vcmp.eq.s32.totalorder %v8346_v30, %v1375_v50  ;;  %v8353_v13 = vld [vmem:[#allocation86_spill] sm:$0xff] }
 0x60c   : > { %v5745_v41 = vsel %vm2867_vm9, %v5629_v33, %v1390_v62  ;;  %v1417_v7 = vcvt.f32.s32 %v1416_v8  ;;  %v5748_v15 = vsel %vm1587_vm12, -1.0, %v8351_v19  ;;  %v3495_v20 = vsel %vm1587_vm12, 1.0, %v8348_v44  ;;  %vm8376_vm12 = vmmov %vm8361_vm1 }
 0x60d   : > { %v1405_v31 = vadd.s32 %v1404_v17, %v1402_v9  ;;  %v1669_v57 = vsel %vm8352_vm13, %v5748_v15, -inf  ;;  %v5754_v48 = vadd.f32 %v3495_v20, %v8353_v13  ;;  %vm1588_vm14 = vcmp.eq.s32.totalorder %v8346_v30, %v1390_v62  ;;  %vm8379_vm13 = vmmov %vm8361_vm1 }
 0x60e   : > { %v1420_v25 = vadd.s32 %v1419_v5, %v1417_v7  ;;  %1670 = vmax.xlane.f32.xlu1 %v1669_v57  ;;  %v1431_v33 = vpop.xlane.xlu1 %1430  ;;  %v5760_v56 = vsel %vm1588_vm14, -1.0, %v8354_v23  ;;  %v3496_v12 = vsel %vm1588_vm14, 1.0, %v8348_v44  ;;  %v8362_v7 = vld [vmem:[#allocation92_spill] sm:$0xff] }
 0x60f   : > { %v5765_v17 = vsel %vm2867_vm9, %v5634_v58, %v1405_v31  ;;  %v1432_v26 = vcvt.f32.s32 %v1431_v33  ;;  %v1672_v46 = vsel %vm8355_vm15, %v5760_v56, -inf  ;;  %v5770_v6 = vadd.f32 %v3496_v12, %v8356_v0  ;;  %v8365_v33 = vld [vmem:[#allocation94_spill] sm:$0xff]  ;;  %vm8386_vm15 = vmmov %vm8361_vm1 }
 0x610   : > { %v1446_v49 = vpop.xlane.xlu0 %1445  ;;  %v5774_v5 = vsel %vm2867_vm9, %v5639_v3, %v1420_v25  ;;  %1673 = vmax.xlane.f32.xlu0 %v1672_v46  ;;  %vm1589_vm0 = vcmp.eq.s32.totalorder %v8346_v30, %v1405_v31  ;;  %vm1590_vm3 = vcmp.eq.s32.totalorder %v8346_v30, %v1420_v25  ;;  %v8363_v31 = vld [vmem:[#allocation93_spill] sm:$0xff] }
 0x611   : > { %v1447_v59 = vcvt.f32.s32 %v1446_v49  ;;  %v1435_v58 = vadd.s32 %v1434_v22, %v1432_v26  ;;  %v5779_v29 = vsel %vm1589_vm0, -1.0, %v8357_v27  ;;  %v3497_v40 = vsel %vm1589_vm0, 1.0, %v8348_v44  ;;  %v8366_v26 = vld [vmem:[#allocation95_spill] sm:$0xff] }
 0x612   : > { %v5783_v37 = vsel %vm1590_vm3, -1.0, %v8358_v39  ;;  %v1675_v3 = vsel %vm8359_vm2, %v5779_v29, -inf  ;;  %v5789_v50 = vadd.f32 %v3497_v40, %v8360_v1  ;;  %v3498_v9 = vsel %vm1590_vm3, 1.0, %v8348_v44  ;;  %vm8392_vm3 = vmmov %vm8361_vm1 }
 0x613   : > { %v1450_v11 = vadd.s32 %v5699_v55, %v1447_v59  ;;  %v1461_v51 = vpop.xlane.xlu1 %1460  ;;  %v1678_v22 = vsel %vm8361_vm1, %v5783_v37, -inf  ;;  %v5795_v62 = vsel %vm2867_vm9, %v5644_v35, %v1435_v58  ;;  %1676 = vmax.xlane.f32.xlu1 %v1675_v3  ;;  %vm1591_vm4 = vcmp.eq.s32.totalorder %v8346_v30, %v1435_v58  ;;  %v8369_v58 = vld [vmem:[#allocation96_spill] sm:$0xff] }
 0x614   : > { %v1462_v32 = vcvt.f32.s32 %v1461_v51  ;;  %v1476_v8 = vpop.xlane.xlu0 %1475  ;;  %1679 = vmax.xlane.f32.xlu0 %v1678_v22  ;;  %v5804_v19 = vadd.f32 %v3498_v9, %v8362_v7  ;;  %v5807_v57 = vsel %vm1591_vm4, -1.0, %v8363_v31  ;;  %v3499_v25 = vsel %vm1591_vm4, 1.0, %v8348_v44  ;;  %v8374_v51 = vld [vmem:[#allocation53_spill] sm:$0xff]  ;;  %v8377_v9 = vld [vmem:[#allocation98_spill] sm:$0xff]  ;;  %vm8400_vm4 = vmmov %vm8392_vm3 }
 0x615   : > { %v5801_v55 = vsel %vm2867_vm9, %v5649_v36, %v1450_v11  ;;  %v1477_v20 = vcvt.f32.s32 %v1476_v8  ;;  %v1681_v13 = vsel %vm8364_vm5, %v5807_v57, -inf  ;;  %vm1592_vm6 = vcmp.eq.s32.totalorder %v8346_v30, %v1450_v11  ;;  %v8372_v11 = vld [vmem:[#allocation97_spill] sm:$0xff]  ;;  %vm8403_vm5 = vmmov %vm8392_vm3 }
 0x616   : > { %v1465_v35 = vadd.s32 %v5702_v60, %v1462_v32  ;;  %v5816_v23 = vadd.f32 %v3499_v25, %v8365_v33  ;;  %v5819_v46 = vsel %vm1592_vm6, -1.0, %v8366_v26  ;;  %v3500_v0 = vsel %vm1592_vm6, 1.0, %v8348_v44  ;;  %v8382_v25 = vld [vmem:[#allocation99_spill] sm:$0xff] }
 0x617   : > { %v1480_v36 = vadd.s32 %v5718_v28, %v1477_v20  ;;  %v1491_v12 = vpop.xlane.xlu1 %1490  ;;  %1682 = vmax.xlane.f32.xlu1 %v1681_v13  ;;  %v1684_v59 = vsel %vm8368_vm7, %v5819_v46, -inf  ;;  %v5829_v28 = vadd.f32 %v3500_v0, %v8369_v58  ;;  %vm8410_vm7 = vmmov %vm8392_vm3 }
 0x618   : > { %v5824_v60 = vsel %vm2867_vm9, %v5654_v4, %v1465_v35  ;;  %v1492_v49 = vcvt.f32.s32 %v1491_v12  ;;  %v1506_v27 = vpop.xlane.xlu0 %1505  ;;  %1685 = vmax.xlane.f32.xlu0 %v1684_v59  ;;  %vm1593_vm10 = vcmp.eq.s32.totalorder %v8346_v30, %v1465_v35  ;;  %v8384_v12 = vld [vmem:[#allocation55_spill] sm:$0xff]  ;;  %v8387_v59 = vld [vmem:[#allocation101_spill] sm:$0xff] }
 0x619   : > { %8367 = vst [vmem:[#allocation54_spill] sm:$0xff] %v5824_v60  ;;  %8370 = vst [vmem:[#allocation57_spill] sm:$0xff] %v5829_v28  ;;  %v5833_v40 = vsel %vm2867_vm9, %v5664_v61, %v1480_v36  ;;  %v1507_v39 = vcvt.f32.s32 %v1506_v27  ;;  %vm1594_vm11 = vcmp.eq.s32.totalorder %v8346_v30, %v1480_v36  ;;  %v5839_v3 = vsel %vm1593_vm10, -1.0, %v8372_v11 }
 0x61a   : > { %8371 = vst [vmem:[#allocation100_spill] sm:$0xff] %v5833_v40  ;;  %v1495_v4 = vadd.s32 %v5725_v16, %v1492_v49  ;;  %8373 = vst [vmem:[#allocation58_spill] sm:$0xff] %v5839_v3  ;;  %v3501_v1 = vsel %vm1593_vm10, 1.0, %v8348_v44  ;;  %v5843_v22 = vsel %vm1594_vm11, -1.0, %v8374_v51  ;;  %v1687_v61 = vsel %vm8376_vm12, %v5839_v3, -inf }
 0x61b   : > { %8375 = vst [vmem:[#allocation103_spill] sm:$0xff] %v5843_v22  ;;  %v1510_v32 = vadd.s32 %v5727_v53, %v1507_v39  ;;  %v5849_v8 = vadd.f32 %v3501_v1, %v8377_v9  ;;  %v1521_v7 = vpop.xlane.xlu1 %1520  ;;  %v1690_v16 = vsel %vm8379_vm13, %v5843_v22, -inf  ;;  %1688 = vmax.xlane.f32.xlu1 %v1687_v61  ;;  %v3502_v35 = vsel %vm1594_vm11, 1.0, %v8348_v44  ;;  %v8389_v39 = vld [vmem:[#allocation56_spill] sm:$0xff]  ;;  %vm8418_vm11 = vmmov %vm8392_vm3 }
 0x61c   : > { %v5855_v20 = vsel %vm2867_vm9, %v5669_v45, %v1495_v4  ;;  %v1522_v31 = vcvt.f32.s32 %v1521_v7  ;;  %v1536_v13 = vpop.xlane.xlu0 %1535  ;;  %vm1595_vm14 = vcmp.eq.s32.totalorder %v8346_v30, %v1495_v4  ;;  %1691 = vmax.xlane.f32.xlu0 %v1690_v16  ;;  %v5864_v36 = vadd.f32 %v3502_v35, %v8382_v25  ;;  %v8396_v16 = vld [vmem:[#allocation59_spill] sm:$0xff]  ;;  %vm8423_vm13 = vmmov %vm8392_vm3 }
 0x61d   : > { %8378 = vst [vmem:[#allocation61_spill] sm:$0xff] %v5849_v8  ;;  %8380 = vst [vmem:[#allocation104_spill] sm:$0xff] %v5855_v20  ;;  %v5861_v53 = vsel %vm2867_vm9, %v5676_v34, %v1510_v32  ;;  %v1537_v33 = vcvt.f32.s32 %v1536_v13  ;;  %v5867_v26 = vsel %vm1595_vm14, -1.0, %v8384_v12  ;;  %v3503_v49 = vsel %vm1595_vm14, 1.0, %v8348_v44  ;;  %v8398_v13 = vld [vmem:[#allocation60_spill] sm:$0xff]  ;;  %v8401_v12 = vld [vmem:[#allocation105_spill] sm:$0xff] }
 0x61e   : > { %8381 = vst [vmem:[#allocation62_spill] sm:$0xff] %v5861_v53  ;;  %8383 = vst [vmem:[#allocation36_spill] sm:$0xff] %v5864_v36  ;;  %v1525_v45 = vadd.s32 %v5729_v38, %v1522_v31  ;;  %v1693_v0 = vsel %vm8386_vm15, %v5867_v26, -inf  ;;  %vm1596_vm0 = vcmp.eq.s32.totalorder %v8346_v30, %v1510_v32  ;;  %v5876_v58 = vadd.f32 %v3503_v49, %v8387_v59  ;;  %v8393_v32 = vld [vmem:[#allocation102_spill] sm:$0xff] }
 0x61f   : > { %8385 = vst [vmem:[#allocation83_spill] sm:$0xff] %v5867_v26  ;;  %v1540_v34 = vadd.s32 %v5731_v63, %v1537_v33  ;;  %v1551_v27 = vpop.xlane.xlu1 %1550  ;;  %v5879_v4 = vsel %vm1596_vm0, -1.0, %v8389_v39  ;;  %v3504_v11 = vsel %vm1596_vm0, 1.0, %v8348_v44  ;;  %1694 = vmax.xlane.f32.xlu1 %v1693_v0  ;;  %vm8427_vm15 = vmmov %vm8392_vm3 }
 0x620   : > { %8388 = vst [vmem:[#allocation84_spill] sm:$0xff] %v5876_v58  ;;  %8390 = vst [vmem:[#allocation85_spill] sm:$0xff] %v5879_v4  ;;  %v5884_v38 = vsel %vm2867_vm9, %v5681_v52, %v1525_v45  ;;  %v1552_v1 = vcvt.f32.s32 %v1551_v27  ;;  %v1696_v51 = vsel %vm8392_vm3, %v5879_v4, -inf  ;;  %v5889_v63 = vadd.f32 %v3504_v11, %v8393_v32  ;;  %v1566_v61 = vpop.xlane.xlu0 %1565  ;;  %v8406_v27 = vld [vmem:[#allocation106_spill] sm:$0xff]  ;;  %v8408_v11 = vld [vmem:[#allocation63_spill] sm:$0xff] }
 0x621   : > { %8391 = vst [vmem:[#allocation86_spill] sm:$0xff] %v5884_v38  ;;  %v5893_v9 = vsel %vm2867_vm9, %v5686_v21, %v1540_v34  ;;  %1697 = vmax.xlane.f32.xlu0 %v1696_v51  ;;  %v1567_v7 = vcvt.f32.s32 %v1566_v61  ;;  %vm1597_vm2 = vcmp.eq.s32.totalorder %v8346_v30, %v1525_v45  ;;  %vm1598_vm1 = vcmp.eq.s32.totalorder %v8346_v30, %v1540_v34  ;;  %v8411_v61 = vld [vmem:[#allocation108_spill] sm:$0xff] }
 0x622   : > { %8394 = vst [vmem:[#allocation87_spill] sm:$0xff] %v5889_v63  ;;  %8395 = vst [vmem:[#allocation88_spill] sm:$0xff] %v5893_v9  ;;  %v1555_v52 = vadd.s32 %v5733_v54, %v1552_v1  ;;  %v5899_v31 = vsel %vm1597_vm2, -1.0, %v8396_v16  ;;  %v3505_v35 = vsel %vm1597_vm2, 1.0, %v8348_v44  ;;  %v5903_v25 = vsel %vm1598_vm1, -1.0, %v8398_v13 }
 0x623   : > { %8397 = vst [vmem:[#allocation89_spill] sm:$0xff] %v5899_v31  ;;  %8399 = vst [vmem:[#allocation90_spill] sm:$0xff] %v5903_v25  ;;  %v1570_v33 = vadd.s32 %v5736_v14, %v1567_v7  ;;  %v1699_v21 = vsel %vm8400_vm4, %v5899_v31, -inf  ;;  %v5909_v0 = vadd.f32 %v3505_v35, %v8401_v12  ;;  %v1581_v45 = vpop.xlane.xlu1 %1580  ;;  %v1702_v54 = vsel %vm8403_vm5, %v5903_v25, -inf  ;;  %v8415_v35 = vld [vmem:[#allocation64_spill] sm:$0xff] }
 0x624   : > { %v5915_v49 = vsel %vm2867_vm9, %v5692_v24, %v1555_v52  ;;  %1700 = vmax.xlane.f32.xlu1 %v1699_v21  ;;  %v1582_v34 = vcvt.f32.s32 %v1581_v45  ;;  %v3506_v59 = vsel %vm1598_vm1, 1.0, %v8348_v44  ;;  %vm1599_vm6 = vcmp.eq.s32.totalorder %v8346_v30, %v1555_v52  ;;  %v8414_v52 = vld [vmem:[#allocation65_spill] sm:$0xff]  ;;  %vm8430_vm2 = vmmov %vm8400_vm4 }
 0x625   : > { %8402 = vst [vmem:[#allocation91_spill] sm:$0xff] %v5909_v0  ;;  %8404 = vst [vmem:[#allocation92_spill] sm:$0xff] %v5915_v49  ;;  %v5921_v14 = vsel %vm2867_vm9, %v5697_v42, %v1570_v33  ;;  %1703 = vmax.xlane.f32.xlu0 %v1702_v54  ;;  %v5924_v39 = vadd.f32 %v3506_v59, %v8406_v27  ;;  %v5927_v1 = vsel %vm1599_vm6, -1.0, %v8408_v11  ;;  %v3507_v24 = vsel %vm1599_vm6, 1.0, %v8348_v44  ;;  %v8413_v42 = vld [vmem:[#allocation107_spill] sm:$0xff]  ;;  %v8419_v45 = vld [vmem:[#allocation109_spill] sm:$0xff] }
 0x626   : > { %8405 = vst [vmem:[#allocation93_spill] sm:$0xff] %v5921_v14  ;;  %8409 = vst [vmem:[#allocation95_spill] sm:$0xff] %v5927_v1  ;;  %v1585_v51 = vadd.s32 %v5757_v47, %v1582_v34  ;;  %v1705_v32 = vsel %vm8410_vm7, %v5927_v1, -inf  ;;  %v5934_v7 = vadd.f32 %v3507_v24, %v8411_v61  ;;  %vm1600_vm10 = vcmp.eq.s32.totalorder %v8346_v30, %v1570_v33  ;;  %v8421_v33 = vld [vmem:[#allocation66_spill] sm:$0xff] }
 0x627   : > { %8407 = vst [vmem:[#allocation94_spill] sm:$0xff] %v5924_v39  ;;  %v2982_v16 = vsel %vm2850_vm8, %v8414_v52, %v8413_v42  ;;  %v5941_v13 = vsel %vm1600_vm10, -1.0, %v8415_v35  ;;  %v3508_v21 = vsel %vm1600_vm10, 1.0, %v8348_v44  ;;  %v8424_v11 = vld [vmem:[#allocation110_spill] sm:$0xff]  ;;  %vm8432_vm1 = vmmov %vm8430_vm2 }
 0x628   : > { %8412 = vst [vmem:[#allocation96_spill] sm:$0xff] %v5934_v7  ;;  %8416 = vst [vmem:[#allocation97_spill] sm:$0xff] %v5941_v13  ;;  %v5945_v12 = vsel %vm2867_vm9, %v2982_v16, %v1585_v51  ;;  %1706 = vmax.xlane.f32.xlu1 %v1705_v32  ;;  %v1708_v47 = vsel %vm8418_vm11, %v5941_v13, -inf  ;;  %v5950_v54 = vadd.f32 %v3508_v21, %v8419_v45 }
 0x629   : > { %8417 = vst [vmem:[#allocation53_spill] sm:$0xff] %v5945_v12  ;;  %vm1601_vm12 = vcmp.eq.s32.totalorder %v8346_v30, %v1585_v51  ;;  %1709 = vmax.xlane.f32.xlu0 %v1708_v47  ;;  %vm8434_vm6 = vmmov %vm8432_vm1 }
 0x62a   : > { %8420 = vst [vmem:[#allocation98_spill] sm:$0xff] %v5950_v54  ;;  %v5954_v34 = vsel %vm1601_vm12, -1.0, %v8421_v33  ;;  %v3509_v59 = vsel %vm1601_vm12, 1.0, %v8348_v44  ;;  %vm8436_vm7 = vmmov %vm8432_vm1 }
 0x62b   : > { %8422 = vst [vmem:[#allocation99_spill] sm:$0xff] %v5954_v34  ;;  %v1711_v27 = vsel %vm8423_vm13, %v5954_v34, -inf  ;;  %v5960_v24 = vadd.f32 %v3509_v59, %v8424_v11  ;;  %vm8438_vm12 = vmmov %vm8432_vm1 }
 0x62c   : > { %1712 = vmax.xlane.f32.xlu1 %v1711_v27  ;;  %vm8440_vm13 = vmmov %vm8432_vm1 }
 0x62d   : > { %8425 = vst [vmem:[#allocation55_spill] sm:$0xff] %v5960_v24 }
 0x697   : > { %v5962_v32 = vpop.xlane.xlu0 %1667 }
 0x698   : > { %8426 = vst [vmem:[#allocation101_spill] sm:$0xff] %v5962_v32  ;;  %vm1714_vm14 = vcmp.eq.f32.partialorder %v5715_v43, %v5962_v32 }
 0x699   : > { %v1730_v51 = vsel %vm1714_vm14, %v8346_v30, 64 }
 0x69a   : > { %v5968_v61 = vsel %vm8427_vm15, %v1730_v51, 2147483647 }
 0x69b   : > { %v1748_v42 = vshra.s32 %v5968_v61, 16  ;;  %v5971_v52 = vpop.xlane.xlu1 %1670 }
 0x69c   : > { %8428 = vst [vmem:[#allocation56_spill] sm:$0xff] %v5971_v52  ;;  %vm1715_vm0 = vcmp.eq.f32.partialorder %v5748_v15, %v5971_v52 }
 0x69d   : > { %v5975_v16 = vcvt.s32.f32 %v1748_v42  ;;  %v1731_v35 = vsel %vm1715_vm0, %v8346_v30, 64  ;;  %v5978_v21 = vpop.xlane.xlu0 %1673  ;;  %vm8442_vm0 = vmmov %vm8432_vm1 }
 0x69e   : > { %8429 = vst [vmem:[#allocation102_spill] sm:$0xff] %v5978_v21  ;;  %vm1716_vm3 = vcmp.eq.f32.partialorder %v5760_v56, %v5978_v21  ;;  %v5984_v47 = vsel %vm8430_vm2, %v1731_v35, 2147483647 }
 0x69f   : > { %1751 = vmin.xlane.f32.xlu0 %v5975_v16  ;;  %v1732_v45 = vsel %vm1716_vm3, %v8346_v30, 64  ;;  %v1763_v33 = vshra.s32 %v5984_v47, 16  ;;  %vm8444_vm3 = vmmov %vm8442_vm0 }
 0x6a0   : > { %v5988_v59 = vpop.xlane.xlu1 %1676  ;;  %v5991_v27 = vsel %vm8432_vm1, %v1732_v45, 2147483647 }
 0x6a1   : > { %8431 = vst [vmem:[#allocation59_spill] sm:$0xff] %v5988_v59  ;;  %vm1717_vm4 = vcmp.eq.f32.partialorder %v5779_v29, %v5988_v59  ;;  %v5995_v11 = vpop.xlane.xlu0 %1679  ;;  %v5997_v51 = vcvt.s32.f32 %v1763_v33  ;;  %v1778_v42 = vshra.s32 %v5991_v27, 16 }
 0x6a2   : > { %8433 = vst [vmem:[#allocation60_spill] sm:$0xff] %v5995_v11  ;;  %v1733_v35 = vsel %vm1717_vm4, %v8346_v30, 64  ;;  %vm1718_vm5 = vcmp.eq.f32.partialorder %v5783_v37, %v5995_v11  ;;  %vm8446_vm4 = vmmov %vm8442_vm0 }
 0x6a3   : > { %v1734_v21 = vsel %vm1718_vm5, %v8346_v30, 64  ;;  %1766 = vmin.xlane.f32.xlu1 %v5997_v51  ;;  %v6005_v45 = vcvt.s32.f32 %v1778_v42  ;;  %v6008_v52 = vsel %vm8434_vm6, %v1733_v35, 2147483647  ;;  %vm8448_vm5 = vmmov %vm8442_vm0 }
 0x6a4   : > { %v6010_v59 = vpop.xlane.xlu1 %1682  ;;  %v1793_v33 = vshra.s32 %v6008_v52, 16  ;;  %v6014_v32 = vsel %vm8436_vm7, %v1734_v21, 2147483647 }
 0x6a5   : > { %8435 = vst [vmem:[#allocation105_spill] sm:$0xff] %v6010_v59  ;;  %vm1719_vm10 = vcmp.eq.f32.partialorder %v5807_v57, %v6010_v59  ;;  %1781 = vmin.xlane.f32.xlu0 %v6005_v45  ;;  %v6019_v11 = vpop.xlane.xlu0 %1685  ;;  %v1808_v42 = vshra.s32 %v6014_v32, 16 }
 0x6a6   : > { %8437 = vst [vmem:[#allocation106_spill] sm:$0xff] %v6019_v11  ;;  %v1735_v24 = vsel %vm1719_vm10, %v8346_v30, 64  ;;  %vm1720_vm11 = vcmp.eq.f32.partialorder %v5819_v46, %v6019_v11  ;;  %v6025_v35 = vcvt.s32.f32 %v1793_v33  ;;  %vm8450_vm10 = vmmov %vm8442_vm0 }
 0x6a7   : > { %v1736_v54 = vsel %vm1720_vm11, %v8346_v30, 64  ;;  %v6028_v21 = vcvt.s32.f32 %v1808_v42  ;;  %v6031_v12 = vsel %vm8438_vm12, %v1735_v24, 2147483647  ;;  %vm8452_vm11 = vmmov %vm8442_vm0 }
 0x6a8   : > { %1796 = vmin.xlane.f32.xlu1 %v6025_v35  ;;  %v6034_v59 = vpop.xlane.xlu1 %1688  ;;  %v1823_v7 = vshra.s32 %v6031_v12, 16  ;;  %v6038_v39 = vsel %vm8440_vm13, %v1736_v54, 2147483647 }
 0x6a9   : > { %8439 = vst [vmem:[#allocation63_spill] sm:$0xff] %v6034_v59  ;;  %vm1721_vm14 = vcmp.eq.f32.partialorder %v5839_v3, %v6034_v59  ;;  %1811 = vmin.xlane.f32.xlu0 %v6028_v21  ;;  %v6043_v33 = vpop.xlane.xlu0 %1691  ;;  %v1838_v42 = vshra.s32 %v6038_v39, 16  ;;  %v1777_v3 = vand.u32 65535, %v5991_v27 }
 0x6aa   : > { %8441 = vst [vmem:[#allocation108_spill] sm:$0xff] %v6043_v33  ;;  %v1737_v24 = vsel %vm1721_vm14, %v8346_v30, 64  ;;  %vm1722_vm15 = vcmp.eq.f32.partialorder %v5843_v22, %v6043_v33  ;;  %v6049_v11 = vcvt.s32.f32 %v1823_v7  ;;  %vm8454_vm14 = vmmov %vm8442_vm0 }
 0x6ab   : > { %v1738_v14 = vsel %vm1722_vm15, %v8346_v30, 64  ;;  %v6052_v54 = vcvt.s32.f32 %v1838_v42  ;;  %v6055_v49 = vsel %vm8442_vm0, %v1737_v24, 2147483647  ;;  %vm8456_vm15 = vmmov %vm8442_vm0  ;;  %v1779_v60 = vcvt.s32.f32 %v1777_v3 }
 0x6ac   : > { %1826 = vmin.xlane.f32.xlu1 %v6049_v11  ;;  %v6058_v59 = vpop.xlane.xlu1 %1694  ;;  %v1853_v0 = vshra.s32 %v6055_v49, 16  ;;  %v6062_v9 = vsel %vm8444_vm3, %v1738_v14, 2147483647  ;;  %v1837_v3 = vand.u32 65535, %v6038_v39 }
 0x6ad   : > { %8443 = vst [vmem:[#allocation107_spill] sm:$0xff] %v6058_v59  ;;  %vm1723_vm2 = vcmp.eq.f32.partialorder %v5867_v26, %v6058_v59  ;;  %1841 = vmin.xlane.f32.xlu0 %v6052_v54  ;;  %v1868_v42 = vshra.s32 %v6062_v9, 16  ;;  %v1867_v39 = vand.u32 65535, %v6062_v9 }
 0x6ae   : > { %v6067_v7 = vpop.xlane.xlu0 %1697  ;;  %v1739_v24 = vsel %vm1723_vm2, %v8346_v30, 64  ;;  %v6073_v33 = vcvt.s32.f32 %v1853_v0 }
 0x6af   : > { %8445 = vst [vmem:[#allocation65_spill] sm:$0xff] %v6067_v7  ;;  %vm1724_vm1 = vcmp.eq.f32.partialorder %v5879_v4, %v6067_v7  ;;  %v6076_v14 = vcvt.s32.f32 %v1868_v42  ;;  %v6079_v38 = vsel %vm8446_vm4, %v1739_v24, 2147483647 }
 0x6b0   : > { %v1740_v63 = vsel %vm1724_vm1, %v8346_v30, 64  ;;  %1856 = vmin.xlane.f32.xlu1 %v6073_v33  ;;  %v1883_v58 = vshra.s32 %v6079_v38, 16 }
 0x6b1   : > { %v6082_v59 = vpop.xlane.xlu1 %1700  ;;  %v6086_v26 = vsel %vm8448_vm5, %v1740_v63, 2147483647  ;;  %1871 = vmin.xlane.f32.xlu0 %v6076_v14 }
 0x6b2   : > { %8447 = vst [vmem:[#allocation64_spill] sm:$0xff] %v6082_v59  ;;  %vm1725_vm6 = vcmp.eq.f32.partialorder %v5899_v31, %v6082_v59  ;;  %v6091_v0 = vpop.xlane.xlu0 %1703  ;;  %v1898_v42 = vshra.s32 %v6086_v26, 16  ;;  %v6097_v7 = vcvt.s32.f32 %v1883_v58  ;;  %v1897_v9 = vand.u32 65535, %v6086_v26 }
 0x6b3   : > { %8449 = vst [vmem:[#allocation109_spill] sm:$0xff] %v6091_v0  ;;  %v1741_v24 = vsel %vm1725_vm6, %v8346_v30, 64  ;;  %vm1726_vm7 = vcmp.eq.f32.partialorder %v5903_v25, %v6091_v0 }
 0x6b4   : > { %v1742_v4 = vsel %vm1726_vm7, %v8346_v30, 64  ;;  %v6100_v63 = vcvt.s32.f32 %v1898_v42  ;;  %v6103_v36 = vsel %vm8450_vm10, %v1741_v24, 2147483647  ;;  %1886 = vmin.xlane.f32.xlu1 %v6097_v7 }
 0x6b5   : > { %v6106_v59 = vpop.xlane.xlu1 %1706  ;;  %v1913_v31 = vshra.s32 %v6103_v36, 16  ;;  %v6110_v53 = vsel %vm8452_vm11, %v1742_v4, 2147483647 }
 0x6b6   : > { %8451 = vst [vmem:[#allocation66_spill] sm:$0xff] %v6106_v59  ;;  %vm1727_vm12 = vcmp.eq.f32.partialorder %v5927_v1, %v6106_v59  ;;  %1901 = vmin.xlane.f32.xlu0 %v6100_v63  ;;  %v6115_v58 = vpop.xlane.xlu0 %1709  ;;  %v1928_v42 = vshra.s32 %v6110_v53, 16  ;;  %v1927_v26 = vand.u32 65535, %v6110_v53 }
 0x6b7   : > { %8453 = vst [vmem:[#allocation110_spill] sm:$0xff] %v6115_v58  ;;  %v1743_v24 = vsel %vm1727_vm12, %v8346_v30, 64  ;;  %vm1728_vm13 = vcmp.eq.f32.partialorder %v5941_v13, %v6115_v58  ;;  %v6121_v0 = vcvt.s32.f32 %v1913_v31 }
 0x6b8   : > { %v1744_v25 = vsel %vm1728_vm13, %v8346_v30, 64  ;;  %v6124_v4 = vcvt.s32.f32 %v1928_v42  ;;  %v6127_v20 = vsel %vm8454_vm14, %v1743_v24, 2147483647 }
 0x6b9   : > { %1916 = vmin.xlane.f32.xlu1 %v6121_v0  ;;  %v6130_v59 = vpop.xlane.xlu1 %1712  ;;  %v1943_v1 = vshra.s32 %v6127_v20, 16  ;;  %v6134_v8 = vsel %vm8456_vm15, %v1744_v25, 2147483647 }
 0x6ba   : > { %8455 = vst [vmem:[#allocation127_spill] sm:$0xff] %v6130_v59  ;;  %vm1729_vm0 = vcmp.eq.f32.partialorder %v5954_v34, %v6130_v59  ;;  %1931 = vmin.xlane.f32.xlu0 %v6124_v4  ;;  %v1958_v31 = vshra.s32 %v6134_v8, 16  ;;  %v1747_v34 = vand.u32 65535, %v5968_v61  ;;  %v1792_v61 = vand.u32 65535, %v6008_v52 }
 0x6bb   : > { %v1745_v42 = vsel %vm1729_vm0, %v8346_v30, 64  ;;  %v6141_v24 = vcvt.s32.f32 %v1943_v1  ;;  %v1957_v53 = vand.u32 65535, %v6134_v8 }
 0x6bc   : > { %v6143_v58 = vcvt.s32.f32 %v1958_v31  ;;  %v6146_v13 = vsel %vm8444_vm3, %v1745_v42, 2147483647  ;;  %v1749_v1 = vcvt.s32.f32 %v1747_v34  ;;  %v1762_v31 = vand.u32 65535, %v5984_v47 }
 0x6bd   : > { %1946 = vmin.xlane.f32.xlu1 %v6141_v24  ;;  %v1973_v25 = vshra.s32 %v6146_v13, 16 }
 0x6be   : > { %1961 = vmin.xlane.f32.xlu0 %v6143_v58 }
 0x6bf   : > { %v6151_v59 = vcvt.s32.f32 %v1973_v25  ;;  %v1764_v25 = vcvt.s32.f32 %v1762_v31  ;;  %v1822_v31 = vand.u32 65535, %v6031_v12  ;;  %v1852_v12 = vand.u32 65535, %v6055_v49 }
 0x6c0   : > { %v1882_v49 = vand.u32 65535, %v6079_v38  ;;  %v1912_v38 = vand.u32 65535, %v6103_v36  ;;  %v1942_v36 = vand.u32 65535, %v6127_v20  ;;  %v1972_v20 = vand.u32 65535, %v6146_v13 }
 0x6c1   : > { %1976 = vmin.xlane.f32.xlu1 %v6151_v59 }
 0x72c   : > { %v6155_v22 = vpop.xlane.xlu0 %1751 }
 0x72d   : > { %vm1753_vm2 = vcmp.eq.f32.partialorder %v5975_v16, %v6155_v22  ;;  %v1807_v16 = vand.u32 65535, %v6014_v32 }
 0x72e   : > { %v1754_v42 = vsel %vm1753_vm2, %v1749_v1, inf  ;;  %v1794_v1 = vcvt.s32.f32 %v1792_v61 }
 0x72f   : > { %1755 = vmin.xlane.f32.xlu0 %v1754_v42  ;;  %v1809_v52 = vcvt.s32.f32 %v1807_v16  ;;  %v1824_v42 = vcvt.s32.f32 %v1822_v31  ;;  %v1854_v16 = vcvt.s32.f32 %v1852_v12 }
 0x730   : > { %v6161_v40 = vpop.xlane.xlu1 %1766 }
 0x731   : > { %vm1768_vm1 = vcmp.eq.f32.partialorder %v5997_v51, %v6161_v40 }
 0x732   : > { %v6166_v28 = vpop.xlane.xlu0 %1781  ;;  %v1769_v34 = vsel %vm1768_vm1, %v1764_v25, inf }
 0x733   : > { %1770 = vmin.xlane.f32.xlu1 %v1769_v34  ;;  %vm1783_vm4 = vcmp.eq.f32.partialorder %v6005_v45, %v6166_v28 }
 0x734   : > { %v1784_v47 = vsel %vm1783_vm4, %v1779_v60, inf  ;;  %vm2884_vm4 = vcmask 23552  }
 0x735   : > { %1785 = vmin.xlane.f32.xlu0 %v1784_v47  ;;  %v6171_v27 = vpop.xlane.xlu1 %1796 }
 0x736   : > { %v6174_v51 = vpop.xlane.xlu0 %1811  ;;  %vm1798_vm5 = vcmp.eq.f32.partialorder %v6025_v35, %v6171_v27  ;;  %v1839_v35 = vcvt.s32.f32 %v1837_v3 }
 0x737   : > { %v1799_v32 = vsel %vm1798_vm5, %v1794_v1, inf  ;;  %vm1813_vm6 = vcmp.eq.f32.partialorder %v6028_v21, %v6174_v51 }
 0x738   : > { %1800 = vmin.xlane.f32.xlu1 %v1799_v32  ;;  %v1814_v60 = vsel %vm1813_vm6, %v1809_v52, inf  ;;  %v1884_v52 = vcvt.s32.f32 %v1882_v49  ;;  %v1974_v49 = vcvt.s32.f32 %v1972_v20  ;;  %vm8457_vm6 = vcmask 523264  }
 0x739   : > { %1815 = vmin.xlane.f32.xlu0 %v1814_v60  ;;  %v6181_v45 = vpop.xlane.xlu1 %1826 }
 0x73a   : > { %v6184_v25 = vpop.xlane.xlu0 %1841  ;;  %vm1828_vm7 = vcmp.eq.f32.partialorder %v6049_v11, %v6181_v45  ;;  %v1869_v11 = vcvt.s32.f32 %v1867_v39 }
 0x73b   : > { %v1829_v61 = vsel %vm1828_vm7, %v1824_v42, inf  ;;  %vm1843_vm10 = vcmp.eq.f32.partialorder %v6052_v54, %v6184_v25  ;;  %v1914_v42 = vcvt.s32.f32 %v1912_v38 }
 0x73c   : > { %1830 = vmin.xlane.f32.xlu1 %v1829_v61  ;;  %v1844_v21 = vsel %vm1843_vm10, %v1839_v35, inf  ;;  %v1944_v61 = vcvt.s32.f32 %v1942_v36  ;;  %vm8458_vm10 = vmmov %vm8457_vm6 }
 0x73d   : > { %1845 = vmin.xlane.f32.xlu0 %v1844_v21  ;;  %v6191_v34 = vpop.xlane.xlu1 %1856 }
 0x73e   : > { %v6194_v47 = vpop.xlane.xlu0 %1871  ;;  %vm1858_vm11 = vcmp.eq.f32.partialorder %v6073_v33, %v6191_v34  ;;  %v1899_v33 = vcvt.s32.f32 %v1897_v9  ;;  %v1788_v9 = vcvt.f32.s32 %v6166_v28 }
 0x73f   : > { %v1859_v1 = vsel %vm1858_vm11, %v1854_v16, inf  ;;  %vm1873_vm12 = vcmp.eq.f32.partialorder %v6076_v14, %v6194_v47 }
 0x740   : > { %1860 = vmin.xlane.f32.xlu1 %v1859_v1  ;;  %v1874_v54 = vsel %vm1873_vm12, %v1869_v11, inf  ;;  %v1758_v11 = vcvt.f32.s32 %v6155_v22  ;;  %v1803_v1 = vcvt.f32.s32 %v6171_v27  ;;  %v1863_v22 = vcvt.f32.s32 %v6191_v34  ;;  %vm8459_vm12 = vmmov %vm8457_vm6 }
 0x741   : > { %1875 = vmin.xlane.f32.xlu0 %v1874_v54  ;;  %v6201_v31 = vpop.xlane.xlu1 %1886  ;;  %v1833_v54 = vcvt.f32.s32 %v6181_v45  ;;  %v1878_v27 = vcvt.f32.s32 %v6194_v47 }
 0x742   : > { %vm1888_vm13 = vcmp.eq.f32.partialorder %v6097_v7, %v6201_v31  ;;  %v1929_v7 = vcvt.s32.f32 %v1927_v26  ;;  %v1759_v38 = vshll.u32 %v1758_v11, 16 }
 0x743   : > { %v6204_v3 = vpop.xlane.xlu0 %1901  ;;  %v1889_v32 = vsel %vm1888_vm13, %v1884_v52, inf  ;;  %v1834_v28 = vshll.u32 %v1833_v54, 16 }
 0x744   : > { %vm1903_vm14 = vcmp.eq.f32.partialorder %v6100_v63, %v6204_v3  ;;  %1890 = vmin.xlane.f32.xlu1 %v1889_v32  ;;  %v1789_v32 = vshll.u32 %v1788_v9, 16  ;;  %v1908_v45 = vcvt.f32.s32 %v6204_v3 }
 0x745   : > { %v1904_v14 = vsel %vm1903_vm14, %v1899_v33, inf }
 0x746   : > { %1905 = vmin.xlane.f32.xlu0 %v1904_v14  ;;  %v6211_v60 = vpop.xlane.xlu1 %1916  ;;  %v1804_v14 = vshll.u32 %v1803_v1, 16 }
 0x747   : > { %v6214_v12 = vpop.xlane.xlu0 %1931  ;;  %vm1918_vm15 = vcmp.eq.f32.partialorder %v6121_v0, %v6211_v60  ;;  %v1959_v0 = vcvt.s32.f32 %v1957_v53  ;;  %v1923_v36 = vcvt.f32.s32 %v6211_v60 }
 0x748   : > { %v1919_v35 = vsel %vm1918_vm15, %v1914_v42, inf  ;;  %vm1933_vm0 = vcmp.eq.f32.partialorder %v6124_v4, %v6214_v12  ;;  %vm8460_vm15 = vmmov %vm8457_vm6 }
 0x749   : > { %1920 = vmin.xlane.f32.xlu1 %v1919_v35  ;;  %v1934_v63 = vsel %vm1933_vm0, %v1929_v7, inf  ;;  %vm8461_vm0 = vmmov %vm8457_vm6 }
 0x74a   : > { %1935 = vmin.xlane.f32.xlu0 %v1934_v63  ;;  %v6221_v39 = vpop.xlane.xlu1 %1946  ;;  %v6255_v63 = vshll.u32 %v1863_v22, 16 }
 0x74b   : > { %v6224_v21 = vpop.xlane.xlu0 %1961  ;;  %vm1948_vm3 = vcmp.eq.f32.partialorder %v6141_v24, %v6221_v39  ;;  %v1773_v24 = vcvt.f32.s32 %v6161_v40 }
 0x74c   : > { %v1949_v16 = vsel %vm1948_vm3, %v1944_v61, inf  ;;  %vm1963_vm2 = vcmp.eq.f32.partialorder %v6143_v58, %v6224_v21  ;;  %v1818_v58 = vcvt.f32.s32 %v6174_v51  ;;  %v1893_v51 = vcvt.f32.s32 %v6201_v31 }
 0x74d   : > { %1950 = vmin.xlane.f32.xlu1 %v1949_v16  ;;  %v1964_v8 = vsel %vm1963_vm2, %v1959_v0, inf  ;;  %v1774_v26 = vshll.u32 %v1773_v24, 16  ;;  %v1938_v31 = vcvt.f32.s32 %v6214_v12  ;;  %v6263_v61 = vshll.u32 %v1878_v27, 16  ;;  %vm8462_vm2 = vmmov %vm8461_vm0 }
 0x74e   : > { %1965 = vmin.xlane.f32.xlu0 %v1964_v8  ;;  %v6230_v4 = vpop.xlane.xlu1 %1976  ;;  %v1819_v42 = vshll.u32 %v1818_v58, 16  ;;  %v6265_v20 = vshll.u32 %v1893_v51, 16  ;;  %v6267_v16 = vshll.u32 %v1908_v45, 16  ;;  %v6269_v8 = vshll.u32 %v1923_v36, 16 }
 0x74f   : > { %vm1978_vm1 = vcmp.eq.f32.partialorder %v6151_v59, %v6230_v4  ;;  %v1848_v59 = vcvt.f32.s32 %v6184_v25  ;;  %v1953_v12 = vcvt.f32.s32 %v6221_v39  ;;  %v6279_v9 = vshll.u32 %v1938_v31, 16 }
 0x750   : > { %v1979_v13 = vsel %vm1978_vm1, %v1974_v49, inf  ;;  %v1968_v49 = vcvt.f32.s32 %v6224_v21 }
 0x751   : > { %1980 = vmin.xlane.f32.xlu1 %v1979_v13  ;;  %v1849_v53 = vshll.u32 %v1848_v59, 16  ;;  %v1983_v13 = vcvt.f32.s32 %v6230_v4 }
 0x7bc   : > { %v1756_v52 = vpop.xlane.xlu0 %1755 }
 0x7bd   : > { %v1757_v33 = vcvt.f32.s32 %v1756_v52 }
 0x7bf   : > { %v1760_v40 = vadd.s32 %v1759_v38, %v1757_v33  ;;  %v6294_v38 = vshll.u32 %v1953_v12, 16  ;;  %v6296_v33 = vshll.u32 %v1968_v49, 16 }
 0x7c0   : > { %v1771_v25 = vpop.xlane.xlu1 %1770 }
 0x7c1   : > { %v6248_v7 = vsel %vm2884_vm4, %v5710_v10, %v1760_v40  ;;  %vm1986_vm5 = vcmp.eq.s32.totalorder %v8346_v30, %v1760_v40  ;;  %v1772_v34 = vcvt.f32.s32 %v1771_v25 }
 0x7c2   : > { %v6252_v35 = vsel %vm1986_vm5, -1.0, %v5715_v43  ;;  %v3510_v47 = vsel %vm1986_vm5, 1.0, %v8348_v44  ;;  %v1786_v3 = vpop.xlane.xlu0 %1785  ;;  %vm8465_vm5 = vmmov %vm8461_vm0 }
 0x7c3   : > { %v2066_v60 = vsel %vm8457_vm6, %v6252_v35, -inf  ;;  %v6261_v10 = vadd.f32 %v3510_v47, %v5723_v2  ;;  %v1775_v0 = vadd.s32 %v1774_v26, %v1772_v34  ;;  %v1787_v43 = vcvt.f32.s32 %v1786_v3 }
 0x7c4   : > { %2067 = vmax.xlane.f32.xlu0 %v2066_v60 }
 0x7c5   : > { %v6276_v2 = vsel %vm2884_vm4, %v5740_v18, %v1775_v0  ;;  %v1790_v11 = vadd.s32 %v1789_v32, %v1787_v43  ;;  %v1801_v24 = vpop.xlane.xlu1 %1800  ;;  %vm1987_vm7 = vcmp.eq.s32.totalorder %v8346_v30, %v1775_v0 }
 0x7c6   : > { %v1802_v1 = vcvt.f32.s32 %v1801_v24  ;;  %v1816_v58 = vpop.xlane.xlu0 %1815  ;;  %v6282_v54 = vsel %vm1987_vm7, -1.0, %v5748_v15  ;;  %v3511_v39 = vsel %vm1987_vm7, 1.0, %v8348_v44  ;;  %v6299_v15 = vshll.u32 %v1983_v13, 16 }
 0x7c7   : > { %v6287_v21 = vsel %vm2884_vm4, %v5745_v41, %v1790_v11  ;;  %v1817_v4 = vcvt.f32.s32 %v1816_v58  ;;  %v2069_v18 = vsel %vm8458_vm10, %v6282_v54, -inf  ;;  %v6292_v52 = vadd.f32 %v3511_v39, %v5754_v48  ;;  %v8466_v58 = vld [vmem:[#allocation57_spill] sm:$0xff]  ;;  %v8468_v39 = vld [vmem:[#allocation100_spill] sm:$0xff]  ;;  %vm8474_vm10 = vmmov %vm8461_vm0 }
 0x7c8   : > { %v1805_v26 = vadd.s32 %v1804_v14, %v1802_v1  ;;  %2070 = vmax.xlane.f32.xlu1 %v2069_v18  ;;  %vm1988_vm11 = vcmp.eq.s32.totalorder %v8346_v30, %v1790_v11  ;;  %v8463_v11 = vld [vmem:[#allocation54_spill] sm:$0xff] }
 0x7c9   : > { %v1820_v59 = vadd.s32 %v1819_v42, %v1817_v4  ;;  %v1831_v41 = vpop.xlane.xlu1 %1830  ;;  %v6302_v32 = vsel %vm1988_vm11, -1.0, %v5760_v56  ;;  %v3512_v22 = vsel %vm1988_vm11, 1.0, %v8348_v44  ;;  %vm8477_vm11 = vmmov %vm8461_vm0 }
 0x7ca   : > { %v6307_v48 = vsel %vm2884_vm4, %v5765_v17, %v1805_v26  ;;  %v1832_v40 = vcvt.f32.s32 %v1831_v41  ;;  %v2072_v14 = vsel %vm8459_vm12, %v6302_v32, -inf  ;;  %v6312_v27 = vadd.f32 %v3512_v22, %v5770_v6  ;;  %v1846_v51 = vpop.xlane.xlu0 %1845  ;;  %v8472_v22 = vld [vmem:[#allocation103_spill] sm:$0xff] }
 0x7cb   : > { %v6316_v42 = vsel %vm2884_vm4, %v5774_v5, %v1820_v59  ;;  %2073 = vmax.xlane.f32.xlu0 %v2072_v14  ;;  %v1847_v56 = vcvt.f32.s32 %v1846_v51  ;;  %vm1989_vm13 = vcmp.eq.s32.totalorder %v8346_v30, %v1805_v26  ;;  %vm1990_vm14 = vcmp.eq.s32.totalorder %v8346_v30, %v1820_v59  ;;  %v8470_v26 = vld [vmem:[#allocation58_spill] sm:$0xff] }
 0x7cc   : > { %v1835_v17 = vadd.s32 %v1834_v28, %v1832_v40  ;;  %v6321_v45 = vsel %vm1989_vm13, -1.0, %v5779_v29  ;;  %v3513_v36 = vsel %vm1989_vm13, 1.0, %v8348_v44  ;;  %v6325_v6 = vsel %vm1990_vm14, -1.0, %v5783_v37  ;;  %vm8486_vm13 = vmmov %vm8461_vm0 }
 0x7cd   : > { %v1850_v25 = vadd.s32 %v1849_v53, %v1847_v56  ;;  %v2075_v5 = vsel %vm8460_vm15, %v6321_v45, -inf  ;;  %v6330_v34 = vadd.f32 %v3513_v36, %v5789_v50  ;;  %v1861_v47 = vpop.xlane.xlu1 %1860  ;;  %v2078_v31 = vsel %vm8461_vm0, %v6325_v6, -inf  ;;  %v8475_v56 = vld [vmem:[#allocation61_spill] sm:$0xff]  ;;  %vm8493_vm15 = vmmov %vm8461_vm0 }
 0x7ce   : > { %v6336_v29 = vsel %vm2884_vm4, %v5795_v62, %v1835_v17  ;;  %2076 = vmax.xlane.f32.xlu1 %v2075_v5  ;;  %v1862_v28 = vcvt.f32.s32 %v1861_v47  ;;  %v3514_v37 = vsel %vm1990_vm14, 1.0, %v8348_v44  ;;  %v1876_v3 = vpop.xlane.xlu0 %1875  ;;  %vm1991_vm3 = vcmp.eq.s32.totalorder %v8346_v30, %v1835_v17 }
 0x7cf   : > { %v6342_v53 = vsel %vm2884_vm4, %v5801_v55, %v1850_v25  ;;  %2079 = vmax.xlane.f32.xlu0 %v2078_v31  ;;  %v6345_v50 = vadd.f32 %v3514_v37, %v5804_v19  ;;  %v1877_v60 = vcvt.f32.s32 %v1876_v3  ;;  %v6348_v0 = vsel %vm1991_vm3, -1.0, %v5807_v57  ;;  %v8482_v3 = vld [vmem:[#allocation36_spill] sm:$0xff] }
 0x7d0   : > { %v1865_v62 = vadd.s32 %v6255_v63, %v1862_v28  ;;  %v2081_v43 = vsel %vm8462_vm2, %v6348_v0, -inf  ;;  %v3515_v12 = vsel %vm1991_vm3, 1.0, %v8348_v44  ;;  %vm1992_vm1 = vcmp.eq.s32.totalorder %v8346_v30, %v1850_v25  ;;  %v8478_v25 = vld [vmem:[#allocation104_spill] sm:$0xff] }
 0x7d1   : > { %v1880_v55 = vadd.s32 %v6263_v61, %v1877_v60  ;;  %v6357_v49 = vadd.f32 %v3515_v12, %v5816_v23  ;;  %v1891_v19 = vpop.xlane.xlu1 %1890  ;;  %v6360_v13 = vsel %vm1992_vm1, -1.0, %v5819_v46  ;;  %v3516_v57 = vsel %vm1992_vm1, 1.0, %v8348_v44  ;;  %vm8504_vm1 = vmmov %vm8462_vm2 }
 0x7d2   : > { %v6365_v63 = vsel %vm2884_vm4, %v8463_v11, %v1865_v62  ;;  %2082 = vmax.xlane.f32.xlu1 %v2081_v43  ;;  %v1892_v24 = vcvt.f32.s32 %v1891_v19  ;;  %v2084_v1 = vsel %vm8465_vm5, %v6360_v13, -inf  ;;  %v6370_v61 = vadd.f32 %v3516_v57, %v8466_v58  ;;  %v8484_v43 = vld [vmem:[#allocation83_spill] sm:$0xff] }
 0x7d3   : > { %8464 = vst [vmem:[#allocation54_spill] sm:$0xff] %v6365_v63  ;;  %v1906_v23 = vpop.xlane.xlu0 %1905  ;;  %v6374_v4 = vsel %vm2884_vm4, %v8468_v39, %v1880_v55  ;;  %2085 = vmax.xlane.f32.xlu0 %v2084_v1  ;;  %vm1993_vm6 = vcmp.eq.s32.totalorder %v8346_v30, %v1865_v62  ;;  %vm1994_vm7 = vcmp.eq.s32.totalorder %v8346_v30, %v1880_v55 }
 0x7d4   : > { %8467 = vst [vmem:[#allocation57_spill] sm:$0xff] %v6370_v61  ;;  %8469 = vst [vmem:[#allocation100_spill] sm:$0xff] %v6374_v4  ;;  %v1907_v46 = vcvt.f32.s32 %v1906_v23  ;;  %v1895_v18 = vadd.s32 %v6265_v20, %v1892_v24  ;;  %v6380_v59 = vsel %vm1993_vm6, -1.0, %v8470_v26  ;;  %v3517_v41 = vsel %vm1993_vm6, 1.0, %v8348_v44  ;;  %v8487_v24 = vld [vmem:[#allocation84_spill] sm:$0xff]  ;;  %v8489_v23 = vld [vmem:[#allocation85_spill] sm:$0xff] }
 0x7d5   : > { %8471 = vst [vmem:[#allocation58_spill] sm:$0xff] %v6380_v59  ;;  %v6384_v40 = vsel %vm1994_vm7, -1.0, %v8472_v22  ;;  %v2087_v51 = vsel %vm8474_vm10, %v6380_v59, -inf  ;;  %v6390_v17 = vadd.f32 %v3517_v41, %v8475_v56  ;;  %v3518_v31 = vsel %vm1994_vm7, 1.0, %v8348_v44  ;;  %v8494_v22 = vld [vmem:[#allocation87_spill] sm:$0xff]  ;;  %vm8513_vm6 = vmmov %vm8504_vm1 }
 0x7d6   : > { %8473 = vst [vmem:[#allocation103_spill] sm:$0xff] %v6384_v40  ;;  %v1910_v14 = vadd.s32 %v6267_v16, %v1907_v46  ;;  %v1921_v36 = vpop.xlane.xlu1 %1920  ;;  %v2090_v20 = vsel %vm8477_vm11, %v6384_v40, -inf  ;;  %v6396_v5 = vsel %vm2884_vm4, %v8478_v25, %v1895_v18  ;;  %2088 = vmax.xlane.f32.xlu1 %v2087_v51  ;;  %vm1995_vm12 = vcmp.eq.s32.totalorder %v8346_v30, %v1895_v18  ;;  %v8480_v16 = vld [vmem:[#allocation62_spill] sm:$0xff]  ;;  %v8496_v51 = vld [vmem:[#allocation88_spill] sm:$0xff]  ;;  %v8498_v25 = vld [vmem:[#allocation89_spill] sm:$0xff] }
 0x7d7   : > { %8476 = vst [vmem:[#allocation61_spill] sm:$0xff] %v6390_v17  ;;  %8479 = vst [vmem:[#allocation104_spill] sm:$0xff] %v6396_v5  ;;  %v1922_v47 = vcvt.f32.s32 %v1921_v36  ;;  %v1936_v28 = vpop.xlane.xlu0 %1935  ;;  %2091 = vmax.xlane.f32.xlu0 %v2090_v20  ;;  %v6405_v60 = vadd.f32 %v3518_v31, %v8482_v3  ;;  %v6408_v12 = vsel %vm1995_vm12, -1.0, %v8484_v43  ;;  %v3519_v57 = vsel %vm1995_vm12, 1.0, %v8348_v44  ;;  %v8491_v18 = vld [vmem:[#allocation86_spill] sm:$0xff]  ;;  %v8502_v43 = vld [vmem:[#allocation91_spill] sm:$0xff] }
 0x7d8   : > { %v6402_v37 = vsel %vm2884_vm4, %v8480_v16, %v1910_v14  ;;  %v1937_v62 = vcvt.f32.s32 %v1936_v28  ;;  %8485 = vst [vmem:[#allocation83_spill] sm:$0xff] %v6408_v12  ;;  %v2093_v19 = vsel %vm8486_vm13, %v6408_v12, -inf  ;;  %vm1996_vm14 = vcmp.eq.s32.totalorder %v8346_v30, %v1910_v14  ;;  %v8500_v28 = vld [vmem:[#allocation90_spill] sm:$0xff]  ;;  %vm8520_vm10 = vmmov %vm8504_vm1 }
 0x7d9   : > { %8481 = vst [vmem:[#allocation62_spill] sm:$0xff] %v6402_v37  ;;  %8483 = vst [vmem:[#allocation36_spill] sm:$0xff] %v6405_v60  ;;  %v1925_v55 = vadd.s32 %v6269_v8, %v1922_v47  ;;  %v6417_v1 = vadd.f32 %v3519_v57, %v8487_v24  ;;  %v6420_v39 = vsel %vm1996_vm14, -1.0, %v8489_v23  ;;  %v3520_v46 = vsel %vm1996_vm14, 1.0, %v8348_v44  ;;  %v8505_v57 = vld [vmem:[#allocation92_spill] sm:$0xff] }
 0x7da   : > { %v1940_v11 = vadd.s32 %v6279_v9, %v1937_v62  ;;  %v1951_v58 = vpop.xlane.xlu1 %1950  ;;  %8490 = vst [vmem:[#allocation85_spill] sm:$0xff] %v6420_v39  ;;  %2094 = vmax.xlane.f32.xlu1 %v2093_v19  ;;  %v2096_v41 = vsel %vm8493_vm15, %v6420_v39, -inf  ;;  %v6430_v9 = vadd.f32 %v3520_v46, %v8494_v22  ;;  %v8509_v46 = vld [vmem:[#allocation94_spill] sm:$0xff]  ;;  %vm8525_vm12 = vmmov %vm8504_vm1 }
 0x7db   : > { %8488 = vst [vmem:[#allocation84_spill] sm:$0xff] %v6417_v1  ;;  %v6425_v8 = vsel %vm2884_vm4, %v8491_v18, %v1925_v55  ;;  %v1952_v26 = vcvt.f32.s32 %v1951_v58  ;;  %v1966_v14 = vpop.xlane.xlu0 %1965  ;;  %2097 = vmax.xlane.f32.xlu0 %v2096_v41  ;;  %vm1997_vm0 = vcmp.eq.s32.totalorder %v8346_v30, %v1925_v55  ;;  %vm8529_vm14 = vmmov %vm8504_vm1 }
 0x7dc   : > { %8492 = vst [vmem:[#allocation86_spill] sm:$0xff] %v6425_v8  ;;  %8495 = vst [vmem:[#allocation87_spill] sm:$0xff] %v6430_v9  ;;  %v6434_v56 = vsel %vm2884_vm4, %v8496_v51, %v1940_v11  ;;  %v1967_v36 = vcvt.f32.s32 %v1966_v14  ;;  %vm1998_vm3 = vcmp.eq.s32.totalorder %v8346_v30, %v1940_v11  ;;  %v6440_v47 = vsel %vm1997_vm0, -1.0, %v8498_v25  ;;  %v8516_v25 = vld [vmem:[#allocation97_spill] sm:$0xff] }
 0x7dd   : > { %8497 = vst [vmem:[#allocation88_spill] sm:$0xff] %v6434_v56  ;;  %v1955_v20 = vadd.s32 %v6294_v38, %v1952_v26  ;;  %8499 = vst [vmem:[#allocation89_spill] sm:$0xff] %v6440_v47  ;;  %v3521_v31 = vsel %vm1997_vm0, 1.0, %v8348_v44  ;;  %v6444_v16 = vsel %vm1998_vm3, -1.0, %v8500_v28  ;;  %v2099_v62 = vsel %vm8462_vm2, %v6440_v47, -inf  ;;  %v8511_v26 = vld [vmem:[#allocation95_spill] sm:$0xff] }
 0x7de   : > { %8501 = vst [vmem:[#allocation90_spill] sm:$0xff] %v6444_v16  ;;  %v1970_v3 = vadd.s32 %v6296_v33, %v1967_v36  ;;  %v6450_v19 = vadd.f32 %v3521_v31, %v8502_v43  ;;  %v1981_v55 = vpop.xlane.xlu1 %1980  ;;  %v2102_v38 = vsel %vm8504_vm1, %v6444_v16, -inf  ;;  %2100 = vmax.xlane.f32.xlu1 %v2099_v62  ;;  %v3522_v58 = vsel %vm1998_vm3, 1.0, %v8348_v44  ;;  %v8507_v33 = vld [vmem:[#allocation93_spill] sm:$0xff]  ;;  %v8514_v36 = vld [vmem:[#allocation96_spill] sm:$0xff]  ;;  %vm8532_vm0 = vmmov %vm8504_vm1 }
 0x7df   : > { %v6456_v11 = vsel %vm2884_vm4, %v8505_v57, %v1955_v20  ;;  %v1982_v24 = vcvt.f32.s32 %v1981_v55  ;;  %vm1999_vm5 = vcmp.eq.s32.totalorder %v8346_v30, %v1955_v20  ;;  %2103 = vmax.xlane.f32.xlu0 %v2102_v38  ;;  %v6465_v18 = vadd.f32 %v3522_v58, %v8509_v46  ;;  %v8518_v62 = vld [vmem:[#allocation53_spill] sm:$0xff]  ;;  %v8521_v55 = vld [vmem:[#allocation98_spill] sm:$0xff]  ;;  %vm8534_vm2 = vmmov %vm8532_vm0 }
 0x7e0   : > { %8503 = vst [vmem:[#allocation91_spill] sm:$0xff] %v6450_v19  ;;  %8506 = vst [vmem:[#allocation92_spill] sm:$0xff] %v6456_v11  ;;  %v6462_v23 = vsel %vm2884_vm4, %v8507_v33, %v1970_v3  ;;  %v6468_v41 = vsel %vm1999_vm5, -1.0, %v8511_v26  ;;  %v3523_v22 = vsel %vm1999_vm5, 1.0, %v8348_v44  ;;  %vm2000_vm7 = vcmp.eq.s32.totalorder %v8346_v30, %v1970_v3  ;;  %v8523_v3 = vld [vmem:[#allocation99_spill] sm:$0xff] }
 0x7e1   : > { %8508 = vst [vmem:[#allocation93_spill] sm:$0xff] %v6462_v23  ;;  %8510 = vst [vmem:[#allocation94_spill] sm:$0xff] %v6465_v18  ;;  %v1985_v14 = vadd.s32 %v6299_v15, %v1982_v24  ;;  %v2105_v51 = vsel %vm8513_vm6, %v6468_v41, -inf  ;;  %v6475_v20 = vadd.f32 %v3523_v22, %v8514_v36  ;;  %v6479_v31 = vsel %vm2000_vm7, -1.0, %v8516_v25  ;;  %v8526_v33 = vld [vmem:[#allocation55_spill] sm:$0xff] }
 0x7e2   : > { %8512 = vst [vmem:[#allocation95_spill] sm:$0xff] %v6468_v41  ;;  %8517 = vst [vmem:[#allocation97_spill] sm:$0xff] %v6479_v31  ;;  %v3524_v28 = vsel %vm2000_vm7, 1.0, %v8348_v44  ;;  %2106 = vmax.xlane.f32.xlu1 %v2105_v51  ;;  %v2108_v15 = vsel %vm8520_vm10, %v6479_v31, -inf }
 0x7e3   : > { %8515 = vst [vmem:[#allocation96_spill] sm:$0xff] %v6475_v20  ;;  %v6484_v43 = vsel %vm2884_vm4, %v8518_v62, %v1985_v14  ;;  %v6489_v38 = vadd.f32 %v3524_v28, %v8521_v55  ;;  %vm2001_vm11 = vcmp.eq.s32.totalorder %v8346_v30, %v1985_v14  ;;  %2109 = vmax.xlane.f32.xlu0 %v2108_v15  ;;  %vm8536_vm6 = vmmov %vm8532_vm0 }
 0x7e4   : > { %8519 = vst [vmem:[#allocation53_spill] sm:$0xff] %v6484_v43  ;;  %v6493_v57 = vsel %vm2001_vm11, -1.0, %v8523_v3  ;;  %v3525_v24 = vsel %vm2001_vm11, 1.0, %v8348_v44  ;;  %vm8538_vm7 = vmmov %vm8532_vm0 }
 0x7e5   : > { %8522 = vst [vmem:[#allocation98_spill] sm:$0xff] %v6489_v38  ;;  %8524 = vst [vmem:[#allocation99_spill] sm:$0xff] %v6493_v57  ;;  %v2111_v58 = vsel %vm8525_vm12, %v6493_v57, -inf  ;;  %v6499_v46 = vadd.f32 %v3525_v24, %v8526_v33 }
 0x7e6   : > { %2112 = vmax.xlane.f32.xlu1 %v2111_v58  ;;  %vm8540_vm12 = vmmov %vm8532_vm0 }
 0x7e7   : > { %8527 = vst [vmem:[#allocation55_spill] sm:$0xff] %v6499_v46 }
 0x851   : > { %v6501_v26 = vpop.xlane.xlu0 %2067 }
 0x852   : > { %8528 = vst [vmem:[#allocation128_spill] sm:$0xff] %v6501_v26  ;;  %vm2114_vm13 = vcmp.eq.f32.partialorder %v6252_v35, %v6501_v26 }
 0x853   : > { %v2130_v22 = vsel %vm2114_vm13, %v8346_v30, 64  ;;  %vm8542_vm13 = vmmov %vm8532_vm0 }
 0x854   : > { %v6507_v14 = vsel %vm8529_vm14, %v2130_v22, 2147483647 }
 0x855   : > { %v2148_v51 = vshra.s32 %v6507_v14, 16  ;;  %v6510_v36 = vpop.xlane.xlu1 %2070 }
 0x856   : > { %8530 = vst [vmem:[#allocation129_spill] sm:$0xff] %v6510_v36  ;;  %vm2115_vm15 = vcmp.eq.f32.partialorder %v6282_v54, %v6510_v36 }
 0x857   : > { %v6514_v25 = vcvt.s32.f32 %v2148_v51  ;;  %v2131_v28 = vsel %vm2115_vm15, %v8346_v30, 64 }
 0x858   : > { %v6517_v62 = vpop.xlane.xlu0 %2073  ;;  %v6521_v15 = vsel %vm8532_vm0, %v2131_v28, 2147483647 }
 0x859   : > { %8531 = vst [vmem:[#allocation130_spill] sm:$0xff] %v6517_v62  ;;  %2151 = vmin.xlane.f32.xlu0 %v6514_v25  ;;  %vm2116_vm3 = vcmp.eq.f32.partialorder %v6302_v32, %v6517_v62  ;;  %v2163_v55 = vshra.s32 %v6521_v15, 16 }
 0x85a   : > { %v2132_v3 = vsel %vm2116_vm3, %v8346_v30, 64  ;;  %vm8545_vm3 = vmmov %vm8532_vm0 }
 0x85b   : > { %v6527_v24 = vpop.xlane.xlu1 %2076  ;;  %v6529_v58 = vcvt.s32.f32 %v2163_v55  ;;  %v6532_v33 = vsel %vm8534_vm2, %v2132_v3, 2147483647 }
 0x85c   : > { %8533 = vst [vmem:[#allocation131_spill] sm:$0xff] %v6527_v24  ;;  %vm2117_vm1 = vcmp.eq.f32.partialorder %v6321_v45, %v6527_v24  ;;  %v6536_v22 = vpop.xlane.xlu0 %2079  ;;  %v2178_v51 = vshra.s32 %v6532_v33, 16 }
 0x85d   : > { %8535 = vst [vmem:[#allocation132_spill] sm:$0xff] %v6536_v22  ;;  %v2133_v28 = vsel %vm2117_vm1, %v8346_v30, 64  ;;  %vm2118_vm5 = vcmp.eq.f32.partialorder %v6325_v6, %v6536_v22  ;;  %2166 = vmin.xlane.f32.xlu1 %v6529_v58 }
 0x85e   : > { %v2134_v55 = vsel %vm2118_vm5, %v8346_v30, 64  ;;  %v6544_v62 = vcvt.s32.f32 %v2178_v51  ;;  %v6547_v3 = vsel %vm8536_vm6, %v2133_v28, 2147483647  ;;  %vm8547_vm5 = vmmov %vm8532_vm0 }
 0x85f   : > { %v6549_v36 = vpop.xlane.xlu1 %2082  ;;  %v2193_v24 = vshra.s32 %v6547_v3, 16  ;;  %v6553_v26 = vsel %vm8538_vm7, %v2134_v55, 2147483647  ;;  %vm8549_vm6 = vmmov %vm8532_vm0 }
 0x860   : > { %8537 = vst [vmem:[#allocation133_spill] sm:$0xff] %v6549_v36  ;;  %vm2119_vm10 = vcmp.eq.f32.partialorder %v6348_v0, %v6549_v36  ;;  %2181 = vmin.xlane.f32.xlu0 %v6544_v62  ;;  %v6558_v22 = vpop.xlane.xlu0 %2085  ;;  %v2208_v51 = vshra.s32 %v6553_v26, 16 }
 0x861   : > { %8539 = vst [vmem:[#allocation134_spill] sm:$0xff] %v6558_v22  ;;  %v2135_v46 = vsel %vm2119_vm10, %v8346_v30, 64  ;;  %vm2120_vm11 = vcmp.eq.f32.partialorder %v6360_v13, %v6558_v22  ;;  %v6564_v28 = vcvt.s32.f32 %v2193_v24 }
 0x862   : > { %v2136_v38 = vsel %vm2120_vm11, %v8346_v30, 64  ;;  %v6567_v55 = vcvt.s32.f32 %v2208_v51  ;;  %v6570_v43 = vsel %vm8540_vm12, %v2135_v46, 2147483647  ;;  %vm8551_vm11 = vmmov %vm8532_vm0 }
 0x863   : > { %2196 = vmin.xlane.f32.xlu1 %v6564_v28  ;;  %v6573_v36 = vpop.xlane.xlu1 %2088  ;;  %v2223_v20 = vshra.s32 %v6570_v43, 16  ;;  %v6577_v23 = vsel %vm8542_vm13, %v2136_v38, 2147483647  ;;  %vm8553_vm12 = vmmov %vm8532_vm0 }
 0x864   : > { %8541 = vst [vmem:[#allocation135_spill] sm:$0xff] %v6573_v36  ;;  %vm2121_vm14 = vcmp.eq.f32.partialorder %v6380_v59, %v6573_v36  ;;  %2211 = vmin.xlane.f32.xlu0 %v6567_v55  ;;  %v6582_v24 = vpop.xlane.xlu0 %2091  ;;  %v2238_v51 = vshra.s32 %v6577_v23, 16  ;;  %v2177_v59 = vand.u32 65535, %v6532_v33 }
 0x865   : > { %8543 = vst [vmem:[#allocation136_spill] sm:$0xff] %v6582_v24  ;;  %v2137_v46 = vsel %vm2121_vm14, %v8346_v30, 64  ;;  %vm2122_vm15 = vcmp.eq.f32.partialorder %v6384_v40, %v6582_v24  ;;  %v6588_v22 = vcvt.s32.f32 %v2223_v20 }
 0x866   : > { %v2138_v18 = vsel %vm2122_vm15, %v8346_v30, 64  ;;  %v6591_v38 = vcvt.s32.f32 %v2238_v51  ;;  %v6594_v11 = vsel %vm8532_vm0, %v2137_v46, 2147483647  ;;  %vm8555_vm15 = vmmov %vm8532_vm0 }
 0x867   : > { %2226 = vmin.xlane.f32.xlu1 %v6588_v22  ;;  %v6597_v36 = vpop.xlane.xlu1 %2094  ;;  %v2253_v19 = vshra.s32 %v6594_v11, 16  ;;  %v6601_v9 = vsel %vm8545_vm3, %v2138_v18, 2147483647 }
 0x868   : > { %8544 = vst [vmem:[#allocation137_spill] sm:$0xff] %v6597_v36  ;;  %vm2123_vm2 = vcmp.eq.f32.partialorder %v6408_v12, %v6597_v36  ;;  %2241 = vmin.xlane.f32.xlu0 %v6591_v38  ;;  %v6606_v20 = vpop.xlane.xlu0 %2097  ;;  %v2268_v51 = vshra.s32 %v6601_v9, 16 }
 0x869   : > { %8546 = vst [vmem:[#allocation138_spill] sm:$0xff] %v6606_v20  ;;  %v2139_v46 = vsel %vm2123_vm2, %v8346_v30, 64  ;;  %vm2124_vm1 = vcmp.eq.f32.partialorder %v6420_v39, %v6606_v20  ;;  %v6612_v24 = vcvt.s32.f32 %v2253_v19  ;;  %vm8557_vm2 = vmmov %vm8532_vm0 }
 0x86a   : > { %v2140_v56 = vsel %vm2124_vm1, %v8346_v30, 64  ;;  %v6615_v18 = vcvt.s32.f32 %v2268_v51  ;;  %v6618_v8 = vsel %vm8547_vm5, %v2139_v46, 2147483647 }
 0x86b   : > { %2256 = vmin.xlane.f32.xlu1 %v6612_v24  ;;  %v6621_v36 = vpop.xlane.xlu1 %2100  ;;  %v2283_v1 = vshra.s32 %v6618_v8, 16  ;;  %v6625_v12 = vsel %vm8549_vm6, %v2140_v56, 2147483647 }
 0x86c   : > { %8548 = vst [vmem:[#allocation139_spill] sm:$0xff] %v6621_v36  ;;  %vm2125_vm7 = vcmp.eq.f32.partialorder %v6440_v47, %v6621_v36  ;;  %2271 = vmin.xlane.f32.xlu0 %v6615_v18  ;;  %v6630_v19 = vpop.xlane.xlu0 %2103  ;;  %v2298_v51 = vshra.s32 %v6625_v12, 16 }
 0x86d   : > { %8550 = vst [vmem:[#allocation140_spill] sm:$0xff] %v6630_v19  ;;  %v2141_v46 = vsel %vm2125_vm7, %v8346_v30, 64  ;;  %vm2126_vm10 = vcmp.eq.f32.partialorder %v6444_v16, %v6630_v19  ;;  %v6636_v20 = vcvt.s32.f32 %v2283_v1 }
 0x86e   : > { %v2142_v39 = vsel %vm2126_vm10, %v8346_v30, 64  ;;  %v6639_v56 = vcvt.s32.f32 %v2298_v51  ;;  %v6642_v37 = vsel %vm8551_vm11, %v2141_v46, 2147483647 }
 0x86f   : > { %2286 = vmin.xlane.f32.xlu1 %v6636_v20  ;;  %v6645_v36 = vpop.xlane.xlu1 %2106  ;;  %v2313_v47 = vshra.s32 %v6642_v37, 16  ;;  %v6649_v60 = vsel %vm8553_vm12, %v2142_v39, 2147483647 }
 0x870   : > { %8552 = vst [vmem:[#allocation141_spill] sm:$0xff] %v6645_v36  ;;  %vm2127_vm13 = vcmp.eq.f32.partialorder %v6468_v41, %v6645_v36  ;;  %2301 = vmin.xlane.f32.xlu0 %v6639_v56  ;;  %v6654_v1 = vpop.xlane.xlu0 %2109  ;;  %v2328_v51 = vshra.s32 %v6649_v60, 16 }
 0x871   : > { %8554 = vst [vmem:[#allocation142_spill] sm:$0xff] %v6654_v1  ;;  %v2143_v46 = vsel %vm2127_vm13, %v8346_v30, 64  ;;  %vm2128_vm14 = vcmp.eq.f32.partialorder %v6479_v31, %v6654_v1  ;;  %v6660_v19 = vcvt.s32.f32 %v2313_v47 }
 0x872   : > { %v2144_v16 = vsel %vm2128_vm14, %v8346_v30, 64  ;;  %v6663_v39 = vcvt.s32.f32 %v2328_v51  ;;  %v6666_v5 = vsel %vm8555_vm15, %v2143_v46, 2147483647 }
 0x873   : > { %v6669_v36 = vsel %vm8532_vm0, %v2144_v16, 2147483647  ;;  %2316 = vmin.xlane.f32.xlu1 %v6660_v19  ;;  %v6672_v41 = vpop.xlane.xlu1 %2112  ;;  %v2343_v40 = vshra.s32 %v6666_v5, 16 }
 0x874   : > { %8556 = vst [vmem:[#allocation143_spill] sm:$0xff] %v6672_v41  ;;  %vm2129_vm3 = vcmp.eq.f32.partialorder %v6493_v57, %v6672_v41  ;;  %2331 = vmin.xlane.f32.xlu0 %v6663_v39  ;;  %v2358_v47 = vshra.s32 %v6669_v36, 16  ;;  %v2147_v57 = vand.u32 65535, %v6507_v14  ;;  %v2192_v14 = vand.u32 65535, %v6547_v3 }
 0x875   : > { %v2145_v51 = vsel %vm2129_vm3, %v8346_v30, 64  ;;  %v6680_v46 = vcvt.s32.f32 %v2343_v40 }
 0x876   : > { %v6683_v16 = vsel %vm8557_vm2, %v2145_v51, 2147483647  ;;  %v6685_v1 = vcvt.s32.f32 %v2358_v47  ;;  %v2149_v40 = vcvt.s32.f32 %v2147_v57  ;;  %v2162_v47 = vand.u32 65535, %v6521_v15 }
 0x877   : > { %2346 = vmin.xlane.f32.xlu1 %v6680_v46  ;;  %v2373_v31 = vshra.s32 %v6683_v16, 16  ;;  %v2179_v57 = vcvt.s32.f32 %v2177_v59 }
 0x878   : > { %2361 = vmin.xlane.f32.xlu0 %v6685_v1 }
 0x879   : > { %v6690_v41 = vcvt.s32.f32 %v2373_v31  ;;  %v2164_v31 = vcvt.s32.f32 %v2162_v47  ;;  %v2222_v47 = vand.u32 65535, %v6570_v43  ;;  %v2252_v43 = vand.u32 65535, %v6594_v11 }
 0x87a   : > { %v2282_v11 = vand.u32 65535, %v6618_v8  ;;  %v2312_v8 = vand.u32 65535, %v6642_v37  ;;  %v2342_v37 = vand.u32 65535, %v6666_v5  ;;  %v2372_v5 = vand.u32 65535, %v6683_v16 }
 0x87b   : > { %2376 = vmin.xlane.f32.xlu1 %v6690_v41 }
 0x8e6   : > { %v6694_v17 = vpop.xlane.xlu0 %2151 }
 0x8e7   : > { %vm2153_vm1 = vcmp.eq.f32.partialorder %v6514_v25, %v6694_v17  ;;  %v2207_v25 = vand.u32 65535, %v6553_v26 }
 0x8e8   : > { %v2154_v51 = vsel %vm2153_vm1, %v2149_v40, inf  ;;  %v2194_v40 = vcvt.s32.f32 %v2192_v14 }
 0x8e9   : > { %2155 = vmin.xlane.f32.xlu0 %v2154_v51  ;;  %v2209_v3 = vcvt.s32.f32 %v2207_v25  ;;  %v2224_v51 = vcvt.s32.f32 %v2222_v47  ;;  %v2254_v25 = vcvt.s32.f32 %v2252_v43 }
 0x8ea   : > { %v6700_v61 = vpop.xlane.xlu1 %2166 }
 0x8eb   : > { %vm2168_vm5 = vcmp.eq.f32.partialorder %v6529_v58, %v6700_v61 }
 0x8ec   : > { %v2169_v4 = vsel %vm2168_vm5, %v2164_v31, inf }
 0x8ed   : > { %v6705_v63 = vpop.xlane.xlu0 %2181  ;;  %2170 = vmin.xlane.f32.xlu1 %v2169_v4  ;;  %v2237_v4 = vand.u32 65535, %v6577_v23  ;;  %v2267_v23 = vand.u32 65535, %v6601_v9  ;;  %v2297_v9 = vand.u32 65535, %v6625_v12  ;;  %v2327_v12 = vand.u32 65535, %v6649_v60 }
 0x8ee   : > { %vm2183_vm6 = vcmp.eq.f32.partialorder %v6544_v62, %v6705_v63  ;;  %v2357_v60 = vand.u32 65535, %v6669_v36 }
 0x8ef   : > { %v2184_v15 = vsel %vm2183_vm6, %v2179_v57, inf  ;;  %v2239_v31 = vcvt.s32.f32 %v2237_v4  ;;  %v2299_v4 = vcvt.s32.f32 %v2297_v9  ;;  %v2329_v43 = vcvt.s32.f32 %v2327_v12 }
 0x8f0   : > { %2185 = vmin.xlane.f32.xlu0 %v2184_v15  ;;  %v6710_v33 = vpop.xlane.xlu1 %2196  ;;  %v2269_v15 = vcvt.s32.f32 %v2267_v23  ;;  %v2188_v9 = vcvt.f32.s32 %v6705_v63 }
 0x8f1   : > { %vm2198_vm7 = vcmp.eq.f32.partialorder %v6564_v28, %v6710_v33  ;;  %v6715_v58 = vpop.xlane.xlu0 %2211 }
 0x8f2   : > { %vm2213_vm10 = vcmp.eq.f32.partialorder %v6567_v55, %v6715_v58  ;;  %v2199_v59 = vsel %vm2198_vm7, %v2194_v40, inf  ;;  %vm2901_vm7 = vcmask 31744   ;;  %v2218_v12 = vcvt.f32.s32 %v6715_v58 }
 0x8f3   : > { %2200 = vmin.xlane.f32.xlu1 %v2199_v59  ;;  %v2214_v26 = vsel %vm2213_vm10, %v2209_v3, inf  ;;  %v2284_v3 = vcvt.s32.f32 %v2282_v11  ;;  %v2374_v11 = vcvt.s32.f32 %v2372_v5 }
 0x8f4   : > { %2215 = vmin.xlane.f32.xlu0 %v2214_v26  ;;  %v6720_v62 = vpop.xlane.xlu1 %2226 }
 0x8f5   : > { %vm2228_vm11 = vcmp.eq.f32.partialorder %v6588_v22, %v6720_v62  ;;  %v6725_v28 = vpop.xlane.xlu0 %2241 }
 0x8f6   : > { %vm2243_vm12 = vcmp.eq.f32.partialorder %v6591_v38, %v6725_v28  ;;  %v2229_v55 = vsel %vm2228_vm11, %v2224_v51, inf  ;;  %v2314_v51 = vcvt.s32.f32 %v2312_v8  ;;  %vm8558_vm11 = vcmask 523264  }
 0x8f7   : > { %2230 = vmin.xlane.f32.xlu1 %v2229_v55  ;;  %v2244_v14 = vsel %vm2243_vm12, %v2239_v31, inf  ;;  %v2344_v55 = vcvt.s32.f32 %v2342_v37 }
 0x8f8   : > { %2245 = vmin.xlane.f32.xlu0 %v2244_v14  ;;  %v6730_v57 = vpop.xlane.xlu1 %2256  ;;  %v2359_v14 = vcvt.s32.f32 %v2357_v60 }
 0x8f9   : > { %vm2258_vm13 = vcmp.eq.f32.partialorder %v6612_v24, %v6730_v57  ;;  %v6735_v22 = vpop.xlane.xlu0 %2271 }
 0x8fa   : > { %vm2273_vm14 = vcmp.eq.f32.partialorder %v6615_v18, %v6735_v22  ;;  %v2259_v38 = vsel %vm2258_vm13, %v2254_v25, inf  ;;  %v2278_v63 = vcvt.f32.s32 %v6735_v22  ;;  %vm8561_vm13 = vmmov %vm8558_vm11 }
 0x8fb   : > { %2260 = vmin.xlane.f32.xlu1 %v2259_v38  ;;  %v2274_v40 = vsel %vm2273_vm14, %v2269_v15, inf  ;;  %v2173_v15 = vcvt.f32.s32 %v6700_v61  ;;  %v2263_v61 = vcvt.f32.s32 %v6730_v57  ;;  %v2219_v57 = vshll.u32 %v2218_v12, 16 }
 0x8fc   : > { %2275 = vmin.xlane.f32.xlu0 %v2274_v40  ;;  %v6740_v47 = vpop.xlane.xlu1 %2286 }
 0x8fd   : > { %vm2288_vm15 = vcmp.eq.f32.partialorder %v6636_v20, %v6740_v47  ;;  %v6745_v24 = vpop.xlane.xlu0 %2301  ;;  %v2174_v8 = vshll.u32 %v2173_v15, 16 }
 0x8fe   : > { %vm2303_vm0 = vcmp.eq.f32.partialorder %v6639_v56, %v6745_v24  ;;  %v2289_v18 = vsel %vm2288_vm15, %v2284_v3, inf  ;;  %v2308_v58 = vcvt.f32.s32 %v6745_v24  ;;  %vm8564_vm15 = vmmov %vm8558_vm11 }
 0x8ff   : > { %2290 = vmin.xlane.f32.xlu1 %v2289_v18  ;;  %v2304_v59 = vsel %vm2303_vm0, %v2299_v4, inf  ;;  %v2189_v4 = vshll.u32 %v2188_v9, 16 }
 0x900   : > { %2305 = vmin.xlane.f32.xlu0 %v2304_v59  ;;  %v6750_v26 = vpop.xlane.xlu1 %2316  ;;  %v2233_v59 = vcvt.f32.s32 %v6720_v62 }
 0x901   : > { %vm2318_vm3 = vcmp.eq.f32.partialorder %v6660_v19, %v6750_v26  ;;  %v6755_v20 = vpop.xlane.xlu0 %2331  ;;  %v2323_v22 = vcvt.f32.s32 %v6750_v26 }
 0x902   : > { %vm2333_vm2 = vcmp.eq.f32.partialorder %v6663_v39, %v6755_v20  ;;  %v2319_v56 = vsel %vm2318_vm3, %v2314_v51, inf  ;;  %v2234_v60 = vshll.u32 %v2233_v59, 16  ;;  %vm8568_vm3 = vmmov %vm8558_vm11 }
 0x903   : > { %2320 = vmin.xlane.f32.xlu1 %v2319_v56  ;;  %v2334_v31 = vsel %vm2333_vm2, %v2329_v43, inf }
 0x904   : > { %2335 = vmin.xlane.f32.xlu0 %v2334_v31  ;;  %v6760_v23 = vpop.xlane.xlu1 %2346  ;;  %v6799_v31 = vshll.u32 %v2263_v61, 16 }
 0x905   : > { %vm2348_vm1 = vcmp.eq.f32.partialorder %v6680_v46, %v6760_v23  ;;  %v6765_v19 = vpop.xlane.xlu0 %2361  ;;  %v2158_v46 = vcvt.f32.s32 %v6694_v17  ;;  %v2248_v17 = vcvt.f32.s32 %v6725_v28 }
 0x906   : > { %vm2363_vm5 = vcmp.eq.f32.partialorder %v6685_v1, %v6765_v19  ;;  %v2349_v36 = vsel %vm2348_vm1, %v2344_v55, inf  ;;  %v2203_v1 = vcvt.f32.s32 %v6710_v33  ;;  %v2293_v33 = vcvt.f32.s32 %v6740_v47  ;;  %vm8571_vm1 = vmmov %vm8568_vm3 }
 0x907   : > { %2350 = vmin.xlane.f32.xlu1 %v2349_v36  ;;  %v2364_v39 = vsel %vm2363_vm5, %v2359_v14, inf  ;;  %v2159_v40 = vshll.u32 %v2158_v46, 16  ;;  %v2249_v56 = vshll.u32 %v2248_v17, 16  ;;  %v2338_v14 = vcvt.f32.s32 %v6755_v20 }
 0x908   : > { %2365 = vmin.xlane.f32.xlu0 %v2364_v39  ;;  %v6769_v25 = vpop.xlane.xlu1 %2376  ;;  %v6803_v5 = vshll.u32 %v2293_v33, 16  ;;  %v6806_v36 = vshll.u32 %v2308_v58, 16  ;;  %v2353_v39 = vcvt.f32.s32 %v6760_v23  ;;  %v2368_v9 = vcvt.f32.s32 %v6765_v19 }
 0x909   : > { %vm2378_vm6 = vcmp.eq.f32.partialorder %v6690_v41, %v6769_v25  ;;  %v2204_v41 = vshll.u32 %v2203_v1, 16 }
 0x90a   : > { %v2379_v16 = vsel %vm2378_vm6, %v2374_v11, inf  ;;  %v6814_v11 = vshll.u32 %v2323_v22, 16  ;;  %v6845_v61 = vshll.u32 %v2368_v9, 16 }
 0x90b   : > { %2380 = vmin.xlane.f32.xlu1 %v2379_v16 }
 0x976   : > { %v2156_v38 = vpop.xlane.xlu0 %2155 }
 0x977   : > { %v2157_v3 = vcvt.f32.s32 %v2156_v38 }
 0x979   : > { %v2160_v18 = vadd.s32 %v2159_v40, %v2157_v3  ;;  %v6826_v40 = vshll.u32 %v2338_v14, 16 }
 0x97a   : > { %v2171_v37 = vpop.xlane.xlu1 %2170 }
 0x97b   : > { %v6785_v51 = vsel %vm2901_vm7, %v6248_v7, %v2160_v18  ;;  %vm2386_vm10 = vcmp.eq.s32.totalorder %v8346_v30, %v2160_v18  ;;  %v2172_v43 = vcvt.f32.s32 %v2171_v37 }
 0x97c   : > { %v6790_v62 = vsel %vm2386_vm10, -1.0, %v6252_v35  ;;  %v3526_v28 = vsel %vm2386_vm10, 1.0, %v8348_v44  ;;  %v6801_v35 = vshll.u32 %v2278_v63, 16  ;;  %vm8574_vm10 = vmmov %vm8571_vm1 }
 0x97d   : > { %v2466_v47 = vsel %vm8558_vm11, %v6790_v62, -inf  ;;  %v6797_v7 = vadd.f32 %v3526_v28, %v6261_v10  ;;  %v2175_v24 = vadd.s32 %v2174_v8, %v2172_v43  ;;  %v2186_v55 = vpop.xlane.xlu0 %2185  ;;  %v6833_v8 = vshll.u32 %v2353_v39, 16  ;;  %vm8576_vm11 = vmmov %vm8571_vm1 }
 0x97e   : > { %2467 = vmax.xlane.f32.xlu0 %v2466_v47  ;;  %v2187_v26 = vcvt.f32.s32 %v2186_v55 }
 0x97f   : > { %8559 = vst [vmem:[#allocation144_spill] sm:$0xff] %v6797_v7  ;;  %v6811_v10 = vsel %vm2901_vm7, %v6276_v2, %v2175_v24  ;;  %vm2387_vm12 = vcmp.eq.s32.totalorder %v8346_v30, %v2175_v24 }
 0x980   : > { %8560 = vst [vmem:[#allocation145_spill] sm:$0xff] %v6811_v10  ;;  %v2190_v16 = vadd.s32 %v2189_v4, %v2187_v26  ;;  %v2201_v46 = vpop.xlane.xlu1 %2200  ;;  %v6817_v15 = vsel %vm2387_vm12, -1.0, %v6282_v54  ;;  %v3527_v20 = vsel %vm2387_vm12, 1.0, %v8348_v44 }
 0x981   : > { %v2202_v1 = vcvt.f32.s32 %v2201_v46  ;;  %v2216_v38 = vpop.xlane.xlu0 %2215  ;;  %v2469_v23 = vsel %vm8561_vm13, %v6817_v15, -inf  ;;  %v6824_v2 = vadd.f32 %v3527_v20, %v6292_v52  ;;  %v2383_v52 = vcvt.f32.s32 %v6769_v25  ;;  %v8577_v20 = vld [vmem:[#allocation54_spill] sm:$0xff]  ;;  %vm8584_vm13 = vmmov %vm8571_vm1 }
 0x982   : > { %v6830_v3 = vsel %vm2901_vm7, %v6287_v21, %v2190_v16  ;;  %v2217_v54 = vcvt.f32.s32 %v2216_v38  ;;  %2470 = vmax.xlane.f32.xlu1 %v2469_v23  ;;  %vm2388_vm14 = vcmp.eq.s32.totalorder %v8346_v30, %v2190_v16 }
 0x983   : > { %8562 = vst [vmem:[#allocation146_spill] sm:$0xff] %v6824_v2  ;;  %8563 = vst [vmem:[#allocation147_spill] sm:$0xff] %v6830_v3  ;;  %v2205_v19 = vadd.s32 %v2204_v41, %v2202_v1  ;;  %v6836_v4 = vsel %vm2388_vm14, -1.0, %v6302_v32  ;;  %v3528_v12 = vsel %vm2388_vm14, 1.0, %v8348_v44  ;;  %v6866_v28 = vshll.u32 %v2383_v52, 16  ;;  %v8661_v2 = vld [vmem:[#allocation25_spill] sm:$0xff] }
 0x984   : > { %v2220_v18 = vadd.s32 %v2219_v57, %v2217_v54  ;;  %v2231_v59 = vpop.xlane.xlu1 %2230  ;;  %v2472_v21 = vsel %vm8564_vm15, %v6836_v4, -inf  ;;  %v6843_v17 = vadd.f32 %v3528_v12, %v6312_v27  ;;  %vm8590_vm15 = vmmov %vm8571_vm1 }
 0x985   : > { %v6849_v41 = vsel %vm2901_vm7, %v6307_v48, %v2205_v19  ;;  %v2232_v32 = vcvt.f32.s32 %v2231_v59  ;;  %2473 = vmax.xlane.f32.xlu0 %v2472_v21  ;;  %v2246_v63 = vpop.xlane.xlu0 %2245  ;;  %vm2389_vm0 = vcmp.eq.s32.totalorder %v8346_v30, %v2205_v19  ;;  %v8583_v19 = vld [vmem:[#allocation58_spill] sm:$0xff] }
 0x986   : > { %8565 = vst [vmem:[#allocation148_spill] sm:$0xff] %v6843_v17  ;;  %8566 = vst [vmem:[#allocation149_spill] sm:$0xff] %v6849_v41  ;;  %v6854_v25 = vsel %vm2901_vm7, %v6316_v42, %v2220_v18  ;;  %v2247_v33 = vcvt.f32.s32 %v2246_v63  ;;  %v6857_v37 = vsel %vm2389_vm0, -1.0, %v6321_v45  ;;  %v3529_v27 = vsel %vm2389_vm0, 1.0, %v8348_v44  ;;  %v8657_v41 = vld [vmem:[#allocation23_spill] sm:$0xff] }
 0x987   : > { %8567 = vst [vmem:[#allocation150_spill] sm:$0xff] %v6854_v25  ;;  %v2235_v58 = vadd.s32 %v2234_v60, %v2232_v32  ;;  %v2475_v48 = vsel %vm8568_vm3, %v6857_v37, -inf  ;;  %v6863_v43 = vadd.f32 %v3529_v27, %v6330_v34  ;;  %vm2390_vm2 = vcmp.eq.s32.totalorder %v8346_v30, %v2220_v18  ;;  %v8585_v32 = vld [vmem:[#allocation61_spill] sm:$0xff]  ;;  %v8587_v27 = vld [vmem:[#allocation103_spill] sm:$0xff] }
 0x988   : > { %v2250_v57 = vadd.s32 %v2249_v56, %v2247_v33  ;;  %2476 = vmax.xlane.f32.xlu1 %v2475_v48  ;;  %v2261_v42 = vpop.xlane.xlu1 %2260  ;;  %v6869_v22 = vsel %vm2390_vm2, -1.0, %v6325_v6  ;;  %v3530_v45 = vsel %vm2390_vm2, 1.0, %v8348_v44  ;;  %vm8597_vm2 = vmmov %vm8571_vm1 }
 0x989   : > { %8569 = vst [vmem:[#allocation151_spill] sm:$0xff] %v6863_v43  ;;  %v6874_v47 = vsel %vm2901_vm7, %v6336_v29, %v2235_v58  ;;  %v2262_v60 = vcvt.f32.s32 %v2261_v42  ;;  %v2478_v34 = vsel %vm8571_vm1, %v6869_v22, -inf  ;;  %v6879_v24 = vadd.f32 %v3530_v45, %v6345_v50  ;;  %v2276_v55 = vpop.xlane.xlu0 %2275 }
 0x98a   : > { %8570 = vst [vmem:[#allocation152_spill] sm:$0xff] %v6874_v47  ;;  %v6883_v56 = vsel %vm2901_vm7, %v6342_v53, %v2250_v57  ;;  %2479 = vmax.xlane.f32.xlu0 %v2478_v34  ;;  %v2277_v6 = vcvt.f32.s32 %v2276_v55  ;;  %vm2391_vm5 = vcmp.eq.s32.totalorder %v8346_v30, %v2235_v58  ;;  %vm2392_vm6 = vcmp.eq.s32.totalorder %v8346_v30, %v2250_v57  ;;  %v8588_v57 = vld [vmem:[#allocation104_spill] sm:$0xff]  ;;  %v8593_v55 = vld [vmem:[#allocation62_spill] sm:$0xff] }
 0x98b   : > { %8572 = vst [vmem:[#allocation153_spill] sm:$0xff] %v6879_v24  ;;  %8573 = vst [vmem:[#allocation154_spill] sm:$0xff] %v6883_v56  ;;  %v2265_v29 = vadd.s32 %v6799_v31, %v2262_v60  ;;  %v6889_v14 = vsel %vm2391_vm5, -1.0, %v6348_v0  ;;  %v3531_v26 = vsel %vm2391_vm5, 1.0, %v8348_v44  ;;  %v6893_v50 = vsel %vm2392_vm6, -1.0, %v6360_v13  ;;  %v8591_v60 = vld [vmem:[#allocation36_spill] sm:$0xff] }
 0x98c   : > { %v2280_v39 = vadd.s32 %v6801_v35, %v2277_v6  ;;  %v2481_v53 = vsel %vm8574_vm10, %v6889_v14, -inf  ;;  %v6899_v16 = vadd.f32 %v3531_v26, %v6357_v49  ;;  %v2291_v46 = vpop.xlane.xlu1 %2290  ;;  %v2484_v31 = vsel %vm8576_vm11, %v6893_v50, -inf  ;;  %v8579_v35 = vld [vmem:[#allocation100_spill] sm:$0xff]  ;;  %v8581_v49 = vld [vmem:[#allocation57_spill] sm:$0xff]  ;;  %vm8613_vm11 = vmmov %vm8571_vm1 }
 0x98d   : > { %v6905_v0 = vsel %vm2901_vm7, %v8577_v20, %v2265_v29  ;;  %2482 = vmax.xlane.f32.xlu1 %v2481_v53  ;;  %v2292_v9 = vcvt.f32.s32 %v2291_v46  ;;  %v3532_v13 = vsel %vm2392_vm6, 1.0, %v8348_v44  ;;  %v2306_v1 = vpop.xlane.xlu0 %2305  ;;  %vm2393_vm12 = vcmp.eq.s32.totalorder %v8346_v30, %v2265_v29  ;;  %vm8607_vm6 = vmmov %vm8571_vm1  ;;  %v8651_v24 = vld [vmem:[#allocation20_spill] sm:$0xff] }
 0x98e   : > { %8575 = vst [vmem:[#allocation155_spill] sm:$0xff] %v6899_v16  ;;  %8578 = vst [vmem:[#allocation54_spill] sm:$0xff] %v6905_v0  ;;  %v6911_v38 = vsel %vm2901_vm7, %v8579_v35, %v2280_v39  ;;  %2485 = vmax.xlane.f32.xlu0 %v2484_v31  ;;  %v6914_v23 = vadd.f32 %v3532_v13, %v8581_v49  ;;  %v2307_v54 = vcvt.f32.s32 %v2306_v1  ;;  %v6917_v12 = vsel %vm2393_vm12, -1.0, %v8583_v19  ;;  %v8596_v31 = vld [vmem:[#allocation85_spill] sm:$0xff]  ;;  %v8598_v1 = vld [vmem:[#allocation84_spill] sm:$0xff] }
 0x98f   : > { %8580 = vst [vmem:[#allocation100_spill] sm:$0xff] %v6911_v38  ;;  %v2295_v52 = vadd.s32 %v6803_v5, %v2292_v9  ;;  %v2487_v18 = vsel %vm8584_vm13, %v6917_v12, -inf  ;;  %v3533_v59 = vsel %vm2393_vm12, 1.0, %v8348_v44  ;;  %vm2394_vm14 = vcmp.eq.s32.totalorder %v8346_v30, %v2280_v39  ;;  %v8595_v39 = vld [vmem:[#allocation83_spill] sm:$0xff] }
 0x990   : > { %8582 = vst [vmem:[#allocation57_spill] sm:$0xff] %v6914_v23  ;;  %v2310_v21 = vadd.s32 %v6806_v36, %v2307_v54  ;;  %v6926_v63 = vadd.f32 %v3533_v59, %v8585_v32  ;;  %v2321_v33 = vpop.xlane.xlu1 %2320  ;;  %v6929_v58 = vsel %vm2394_vm14, -1.0, %v8587_v27  ;;  %v3534_v48 = vsel %vm2394_vm14, 1.0, %v8348_v44  ;;  %v8600_v54 = vld [vmem:[#allocation86_spill] sm:$0xff]  ;;  %v8604_v32 = vld [vmem:[#allocation87_spill] sm:$0xff]  ;;  %vm8620_vm14 = vmmov %vm8571_vm1 }
 0x991   : > { %v6934_v5 = vsel %vm2901_vm7, %v8588_v57, %v2295_v52  ;;  %2488 = vmax.xlane.f32.xlu1 %v2487_v18  ;;  %v2322_v42 = vcvt.f32.s32 %v2321_v33  ;;  %v2490_v45 = vsel %vm8590_vm15, %v6929_v58, -inf  ;;  %v6939_v36 = vadd.f32 %v3534_v48, %v8591_v60  ;;  %v2336_v34 = vpop.xlane.xlu0 %2335  ;;  %v8606_v48 = vld [vmem:[#allocation89_spill] sm:$0xff]  ;;  %vm8623_vm15 = vmmov %vm8571_vm1 }
 0x992   : > { %8586 = vst [vmem:[#allocation58_spill] sm:$0xff] %v6926_v63  ;;  %8589 = vst [vmem:[#allocation61_spill] sm:$0xff] %v6934_v5  ;;  %v6943_v6 = vsel %vm2901_vm7, %v8593_v55, %v2310_v21  ;;  %2491 = vmax.xlane.f32.xlu0 %v2490_v45  ;;  %v2337_v29 = vcvt.f32.s32 %v2336_v34  ;;  %vm2395_vm0 = vcmp.eq.s32.totalorder %v8346_v30, %v2295_v52  ;;  %v8608_v55 = vld [vmem:[#allocation91_spill] sm:$0xff] }
 0x993   : > { %8592 = vst [vmem:[#allocation103_spill] sm:$0xff] %v6939_v36  ;;  %8594 = vst [vmem:[#allocation104_spill] sm:$0xff] %v6943_v6  ;;  %vm2396_vm3 = vcmp.eq.s32.totalorder %v8346_v30, %v2310_v21  ;;  %v2325_v26 = vadd.s32 %v6814_v11, %v2322_v42  ;;  %v6949_v53 = vsel %vm2395_vm0, -1.0, %v8595_v39  ;;  %v3535_v46 = vsel %vm2395_vm0, 1.0, %v8348_v44  ;;  %v8610_v39 = vld [vmem:[#allocation90_spill] sm:$0xff] }
 0x994   : > { %v6953_v20 = vsel %vm2396_vm3, -1.0, %v8596_v31  ;;  %v2340_v9 = vadd.s32 %v6826_v40, %v2337_v29  ;;  %v2493_v13 = vsel %vm8597_vm2, %v6949_v53, -inf  ;;  %v6959_v35 = vadd.f32 %v3535_v46, %v8598_v1  ;;  %v2351_v49 = vpop.xlane.xlu1 %2350  ;;  %v8602_v40 = vld [vmem:[#allocation88_spill] sm:$0xff] }
 0x995   : > { %v2496_v11 = vsel %vm8571_vm1, %v6953_v20, -inf  ;;  %v6965_v19 = vsel %vm2901_vm7, %v8600_v54, %v2325_v26  ;;  %2494 = vmax.xlane.f32.xlu1 %v2493_v13  ;;  %v2352_v52 = vcvt.f32.s32 %v2351_v49  ;;  %v3536_v18 = vsel %vm2396_vm3, 1.0, %v8348_v44  ;;  %v2366_v59 = vpop.xlane.xlu0 %2365  ;;  %v8611_v13 = vld [vmem:[#allocation92_spill] sm:$0xff]  ;;  %v8614_v49 = vld [vmem:[#allocation94_spill] sm:$0xff]  ;;  %vm8629_vm3 = vmmov %vm8571_vm1 }
 0x996   : > { %8599 = vst [vmem:[#allocation36_spill] sm:$0xff] %v6959_v35  ;;  %8601 = vst [vmem:[#allocation62_spill] sm:$0xff] %v6965_v19  ;;  %vm2397_vm5 = vcmp.eq.s32.totalorder %v8346_v30, %v2325_v26  ;;  %v6971_v21 = vsel %vm2901_vm7, %v8602_v40, %v2340_v9  ;;  %2497 = vmax.xlane.f32.xlu0 %v2496_v11  ;;  %v6974_v33 = vadd.f32 %v3536_v18, %v8604_v32  ;;  %v8616_v11 = vld [vmem:[#allocation93_spill] sm:$0xff]  ;;  %v8618_v18 = vld [vmem:[#allocation95_spill] sm:$0xff] }
 0x997   : > { %8603 = vst [vmem:[#allocation83_spill] sm:$0xff] %v6971_v21  ;;  %v2367_v27 = vcvt.f32.s32 %v2366_v59  ;;  %v6977_v57 = vsel %vm2397_vm5, -1.0, %v8606_v48  ;;  %v2355_v42 = vadd.s32 %v6833_v8, %v2352_v52  ;;  %v3537_v60 = vsel %vm2397_vm5, 1.0, %v8348_v44  ;;  %v8619_v32 = vld [vmem:[#allocation97_spill] sm:$0xff] }
 0x998   : > { %8605 = vst [vmem:[#allocation85_spill] sm:$0xff] %v6974_v33  ;;  %v2499_v45 = vsel %vm8607_vm6, %v6977_v57, -inf  ;;  %vm2398_vm10 = vcmp.eq.s32.totalorder %v8346_v30, %v2340_v9  ;;  %v6986_v29 = vadd.f32 %v3537_v60, %v8608_v55  ;;  %v2381_v26 = vpop.xlane.xlu1 %2380  ;;  %vm8632_vm6 = vmmov %vm8571_vm1 }
 0x999   : > { %v2370_v34 = vadd.s32 %v6845_v61, %v2367_v27  ;;  %v6989_v46 = vsel %vm2398_vm10, -1.0, %v8610_v39  ;;  %v3538_v31 = vsel %vm2398_vm10, 1.0, %v8348_v44  ;;  %v6994_v8 = vsel %vm2901_vm7, %v8611_v13, %v2355_v42  ;;  %2500 = vmax.xlane.f32.xlu1 %v2499_v45  ;;  %v8621_v45 = vld [vmem:[#allocation96_spill] sm:$0xff] }
 0x99a   : > { %8609 = vst [vmem:[#allocation84_spill] sm:$0xff] %v6986_v29  ;;  %8612 = vst [vmem:[#allocation86_spill] sm:$0xff] %v6994_v8  ;;  %v2382_v1 = vcvt.f32.s32 %v2381_v26  ;;  %v2502_v9 = vsel %vm8613_vm11, %v6989_v46, -inf  ;;  %v6999_v61 = vadd.f32 %v3538_v31, %v8614_v49  ;;  %vm2399_vm12 = vcmp.eq.s32.totalorder %v8346_v30, %v2355_v42  ;;  %v8626_v26 = vld [vmem:[#allocation98_spill] sm:$0xff]  ;;  %v8628_v31 = vld [vmem:[#allocation99_spill] sm:$0xff] }
 0x99b   : > { %v7003_v54 = vsel %vm2901_vm7, %v8616_v11, %v2370_v34  ;;  %2503 = vmax.xlane.f32.xlu0 %v2502_v9  ;;  %vm2400_vm13 = vcmp.eq.s32.totalorder %v8346_v30, %v2370_v34  ;;  %v7009_v59 = vsel %vm2399_vm12, -1.0, %v8618_v18  ;;  %v3539_v40 = vsel %vm2399_vm12, 1.0, %v8348_v44  ;;  %v8630_v49 = vld [vmem:[#allocation55_spill] sm:$0xff]  ;;  %vm8633_vm11 = vmmov %vm8571_vm1 }
 0x99c   : > { %8615 = vst [vmem:[#allocation88_spill] sm:$0xff] %v6999_v61  ;;  %8617 = vst [vmem:[#allocation87_spill] sm:$0xff] %v7003_v54  ;;  %v2385_v52 = vadd.s32 %v6866_v28, %v2382_v1  ;;  %v7013_v27 = vsel %vm2400_vm13, -1.0, %v8619_v32  ;;  %v2505_v48 = vsel %vm8620_vm14, %v7009_v59, -inf  ;;  %v7018_v60 = vadd.f32 %v3539_v40, %v8621_v45  ;;  %v8624_v28 = vld [vmem:[#allocation53_spill] sm:$0xff] }
 0x99d   : > { %v2508_v42 = vsel %vm8623_vm15, %v7013_v27, -inf  ;;  %v3540_v34 = vsel %vm2400_vm13, 1.0, %v8348_v44  ;;  %2506 = vmax.xlane.f32.xlu1 %v2505_v48  ;;  %vm8634_vm13 = vmmov %vm8571_vm1 }
 0x99e   : > { %8622 = vst [vmem:[#allocation89_spill] sm:$0xff] %v7018_v60  ;;  %v7025_v55 = vsel %vm2901_vm7, %v8624_v28, %v2385_v52  ;;  %v7028_v39 = vadd.f32 %v3540_v34, %v8626_v26  ;;  %vm2401_vm0 = vcmp.eq.s32.totalorder %v8346_v30, %v2385_v52  ;;  %vm8635_vm15 = vmmov %vm8571_vm1 }
 0x99f   : > { %8625 = vst [vmem:[#allocation91_spill] sm:$0xff] %v7025_v55  ;;  %2509 = vmax.xlane.f32.xlu0 %v2508_v42  ;;  %v7032_v13 = vsel %vm2401_vm0, -1.0, %v8628_v31  ;;  %v3541_v1 = vsel %vm2401_vm0, 1.0, %v8348_v44 }
 0x9a0   : > { %8627 = vst [vmem:[#allocation90_spill] sm:$0xff] %v7028_v39  ;;  %v2511_v9 = vsel %vm8629_vm3, %v7032_v13, -inf  ;;  %v7038_v11 = vadd.f32 %v3541_v1, %v8630_v49 }
 0x9a1   : > { %2512 = vmax.xlane.f32.xlu1 %v2511_v9 }
 0x9a2   : > { %8631 = vst [vmem:[#allocation92_spill] sm:$0xff] %v7038_v11 }
 0xa0b   : > { %v7040_v18 = vpop.xlane.xlu0 %2467 }
 0xa0c   : > { %vm2514_vm2 = vcmp.eq.f32.partialorder %v6790_v62, %v7040_v18 }
 0xa0d   : > { %v2530_v52 = vsel %vm2514_vm2, %v8346_v30, 64  ;;  %vm8636_vm2 = vmmov %vm8571_vm1 }
 0xa0e   : > { %v7046_v40 = vsel %vm8571_vm1, %v2530_v52, 2147483647 }
 0xa0f   : > { %v2548_v32 = vshra.s32 %v7046_v40, 16  ;;  %v7049_v48 = vpop.xlane.xlu1 %2470 }
 0xa10   : > { %vm2515_vm5 = vcmp.eq.f32.partialorder %v6817_v15, %v7049_v48 }
 0xa11   : > { %v7053_v45 = vcvt.s32.f32 %v2548_v32  ;;  %v2531_v42 = vsel %vm2515_vm5, %v8346_v30, 64 }
 0xa12   : > { %v7057_v34 = vsel %vm8632_vm6, %v2531_v42, 2147483647  ;;  %v7059_v62 = vpop.xlane.xlu0 %2473 }
 0xa13   : > { %2551 = vmin.xlane.f32.xlu0 %v7053_v45  ;;  %vm2516_vm10 = vcmp.eq.f32.partialorder %v6836_v4, %v7059_v62  ;;  %v2563_v28 = vshra.s32 %v7057_v34, 16 }
 0xa14   : > { %v2532_v26 = vsel %vm2516_vm10, %v8346_v30, 64  ;;  %vm8637_vm10 = vmmov %vm8571_vm1 }
 0xa15   : > { %v7067_v15 = vsel %vm8633_vm11, %v2532_v26, 2147483647  ;;  %v7069_v31 = vpop.xlane.xlu1 %2476  ;;  %v7071_v1 = vcvt.s32.f32 %v2563_v28  ;;  %vm8638_vm11 = vmmov %vm8571_vm1 }
 0xa16   : > { %vm2517_vm12 = vcmp.eq.f32.partialorder %v6857_v37, %v7069_v31  ;;  %v2578_v9 = vshra.s32 %v7067_v15, 16 }
 0xa17   : > { %v2533_v49 = vsel %vm2517_vm12, %v8346_v30, 64  ;;  %v7077_v52 = vpop.xlane.xlu0 %2479  ;;  %2566 = vmin.xlane.f32.xlu1 %v7071_v1 }
 0xa18   : > { %v7081_v4 = vsel %vm8634_vm13, %v2533_v49, 2147483647  ;;  %vm2518_vm14 = vcmp.eq.f32.partialorder %v6869_v22, %v7077_v52  ;;  %v7085_v32 = vcvt.s32.f32 %v2578_v9 }
 0xa19   : > { %v2534_v42 = vsel %vm2518_vm14, %v8346_v30, 64  ;;  %v2593_v37 = vshra.s32 %v7081_v4, 16  ;;  %vm8640_vm14 = vmmov %vm8571_vm1 }
 0xa1a   : > { %v7090_v28 = vsel %vm8635_vm15, %v2534_v42, 2147483647  ;;  %v7092_v26 = vpop.xlane.xlu1 %2482  ;;  %2581 = vmin.xlane.f32.xlu0 %v7085_v32  ;;  %vm8641_vm15 = vmmov %vm8571_vm1 }
 0xa1b   : > { %vm2519_vm0 = vcmp.eq.f32.partialorder %v6889_v14, %v7092_v26  ;;  %v7097_v49 = vpop.xlane.xlu0 %2485  ;;  %v7099_v11 = vcvt.s32.f32 %v2593_v37  ;;  %v2608_v22 = vshra.s32 %v7090_v28, 16 }
 0xa1c   : > { %v2535_v9 = vsel %vm2519_vm0, %v8346_v30, 64  ;;  %vm2520_vm3 = vcmp.eq.f32.partialorder %v6893_v50, %v7097_v49 }
 0xa1d   : > { %v7106_v42 = vsel %vm8636_vm2, %v2535_v9, 2147483647  ;;  %v2536_v55 = vsel %vm2520_vm3, %v8346_v30, 64  ;;  %2596 = vmin.xlane.f32.xlu1 %v7099_v11  ;;  %v7110_v39 = vcvt.s32.f32 %v2608_v22  ;;  %vm8644_vm2 = vmmov %vm8571_vm1 }
 0xa1e   : > { %v7113_v14 = vsel %vm8571_vm1, %v2536_v55, 2147483647  ;;  %v7115_v37 = vpop.xlane.xlu1 %2488  ;;  %v2623_v54 = vshra.s32 %v7106_v42, 16 }
 0xa1f   : > { %vm2521_vm5 = vcmp.eq.f32.partialorder %v6917_v12, %v7115_v37  ;;  %2611 = vmin.xlane.f32.xlu0 %v7110_v39  ;;  %v7121_v50 = vpop.xlane.xlu0 %2491  ;;  %v2638_v9 = vshra.s32 %v7113_v14, 16 }
 0xa20   : > { %v2537_v60 = vsel %vm2521_vm5, %v8346_v30, 64  ;;  %vm2522_vm6 = vcmp.eq.f32.partialorder %v6929_v58, %v7121_v50  ;;  %v7127_v55 = vcvt.s32.f32 %v2623_v54 }
 0xa21   : > { %v7130_v22 = vsel %vm8637_vm10, %v2537_v60, 2147483647  ;;  %v2538_v8 = vsel %vm2522_vm6, %v8346_v30, 64  ;;  %v7133_v61 = vcvt.s32.f32 %v2638_v9  ;;  %vm8647_vm10 = vmmov %vm8571_vm1 }
 0xa22   : > { %v7136_v12 = vsel %vm8638_vm11, %v2538_v8, 2147483647  ;;  %2626 = vmin.xlane.f32.xlu1 %v7127_v55  ;;  %v7139_v21 = vpop.xlane.xlu1 %2494  ;;  %v2653_v29 = vshra.s32 %v7130_v22, 16  ;;  %vm8648_vm11 = vmmov %vm8571_vm1 }
 0xa23   : > { %vm2523_vm12 = vcmp.eq.f32.partialorder %v6949_v53, %v7139_v21  ;;  %2641 = vmin.xlane.f32.xlu0 %v7133_v61  ;;  %v7145_v58 = vpop.xlane.xlu0 %2497  ;;  %v2668_v54 = vshra.s32 %v7136_v12, 16 }
 0xa24   : > { %8639 = vst [vmem:[#allocation94_spill] sm:$0xff] %v7145_v58  ;;  %v2539_v60 = vsel %vm2523_vm12, %v8346_v30, 64  ;;  %vm2524_vm13 = vcmp.eq.f32.partialorder %v6953_v20, %v7145_v58  ;;  %v7151_v8 = vcvt.s32.f32 %v2653_v29 }
 0xa25   : > { %v7154_v9 = vsel %vm8640_vm14, %v2539_v60, 2147483647  ;;  %v2540_v19 = vsel %vm2524_vm13, %v8346_v30, 64  ;;  %v7157_v33 = vcvt.s32.f32 %v2668_v54  ;;  %vm8650_vm13 = vmmov %vm8571_vm1 }
 0xa26   : > { %v7160_v53 = vsel %vm8641_vm15, %v2540_v19, 2147483647  ;;  %2656 = vmin.xlane.f32.xlu1 %v7151_v8  ;;  %v7163_v6 = vpop.xlane.xlu1 %2500  ;;  %v2683_v35 = vshra.s32 %v7154_v9, 16  ;;  %vm8652_vm14 = vmmov %vm8571_vm1 }
 0xa27   : > { %8642 = vst [vmem:[#allocation93_spill] sm:$0xff] %v7163_v6  ;;  %vm2525_vm0 = vcmp.eq.f32.partialorder %v6977_v57, %v7163_v6  ;;  %2671 = vmin.xlane.f32.xlu0 %v7157_v33  ;;  %v2698_v29 = vshra.s32 %v7160_v53, 16  ;;  %v384_v25 = vsel %vm8652_vm14, %v8651_v24, 0.0  ;;  %vm8654_vm15 = vmmov %vm8571_vm1 }
 0xa28   : > { %v7169_v20 = vpop.xlane.xlu0 %2503  ;;  %v2541_v54 = vsel %vm2525_vm0, %v8346_v30, 64  ;;  %v7175_v19 = vcvt.s32.f32 %v2683_v35  ;;  %vm8656_vm0 = vmmov %vm8571_vm1 }
 0xa29   : > { %8643 = vst [vmem:[#allocation95_spill] sm:$0xff] %v7169_v20  ;;  %vm2526_vm3 = vcmp.eq.f32.partialorder %v6989_v46, %v7169_v20  ;;  %v7178_v60 = vsel %vm8644_vm2, %v2541_v54, 2147483647  ;;  %v7181_v36 = vcvt.s32.f32 %v2698_v29  ;;  %vm8660_vm2 = vmmov %vm8656_vm0 }
 0xa2a   : > { %v2542_v5 = vsel %vm2526_vm3, %v8346_v30, 64  ;;  %2686 = vmin.xlane.f32.xlu1 %v7175_v19  ;;  %v7187_v38 = vpop.xlane.xlu1 %2506  ;;  %v2713_v63 = vshra.s32 %v7178_v60, 16  ;;  %vm8658_vm3 = vmmov %vm8656_vm0 }
 0xa2b   : > { %v7184_v57 = vsel %vm8571_vm1, %v2542_v5, 2147483647  ;;  %8645 = vst [vmem:[#allocation97_spill] sm:$0xff] %v7187_v38  ;;  %vm2527_vm5 = vcmp.eq.f32.partialorder %v7009_v59, %v7187_v38  ;;  %2701 = vmin.xlane.f32.xlu0 %v7181_v36  ;;  %v393_v17 = vsel %vm8658_vm3, %v8657_v41, 0.0  ;;  %vm8662_vm1 = vmmov %vm8656_vm0 }
 0xa2c   : > { %v7193_v35 = vpop.xlane.xlu0 %2509  ;;  %v2728_v46 = vshra.s32 %v7184_v57, 16  ;;  %v2543_v29 = vsel %vm2527_vm5, %v8346_v30, 64  ;;  %v7199_v5 = vcvt.s32.f32 %v2713_v63  ;;  %vm8664_vm5 = vmmov %vm8656_vm0 }
 0xa2d   : > { %8646 = vst [vmem:[#allocation96_spill] sm:$0xff] %v7193_v35  ;;  %vm2528_vm6 = vcmp.eq.f32.partialorder %v7013_v27, %v7193_v35  ;;  %v7202_v54 = vsel %vm8647_vm10, %v2543_v29, 2147483647  ;;  %vm8668_vm10 = vmmov %vm8656_vm0 }
 0xa2e   : > { %v2544_v0 = vsel %vm2528_vm6, %v8346_v30, 64  ;;  %v7205_v23 = vcvt.s32.f32 %v2728_v46  ;;  %2716 = vmin.xlane.f32.xlu1 %v7199_v5  ;;  %v7211_v56 = vpop.xlane.xlu1 %2512  ;;  %v2743_v16 = vshra.s32 %v7202_v54, 16  ;;  %vm8666_vm6 = vmmov %vm8656_vm0 }
 0xa2f   : > { %v7208_v59 = vsel %vm8648_vm11, %v2544_v0, 2147483647  ;;  %8649 = vst [vmem:[#allocation53_spill] sm:$0xff] %v7211_v56  ;;  %vm2529_vm12 = vcmp.eq.f32.partialorder %v7032_v13, %v7211_v56  ;;  %v399_v56 = vsel %vm8662_vm1, %v8661_v2, 0.0  ;;  %vm8674_vm3 = vmmov %vm8662_vm1 }
 0xa30   : > { %2731 = vmin.xlane.f32.xlu0 %v7205_v23  ;;  %v2758_v63 = vshra.s32 %v7208_v59, 16  ;;  %v2545_v27 = vsel %vm2529_vm12, %v8346_v30, 64  ;;  %v7219_v46 = vcvt.s32.f32 %v2743_v16  ;;  %v8653_v16 = vld [vmem:[#allocation22_spill] sm:$0xff] }
 0xa31   : > { %v7222_v0 = vsel %vm8650_vm13, %v2545_v27, 2147483647  ;;  %v387_v27 = vsel %vm8654_vm15, %v8653_v16, 0.0  ;;  %vm8670_vm13 = vmmov %vm8656_vm0 }
 0xa32   : > { %v7224_v29 = vcvt.s32.f32 %v2758_v63  ;;  %2746 = vmin.xlane.f32.xlu1 %v7219_v46  ;;  %v2773_v47 = vshra.s32 %v7222_v0, 16  ;;  %v8655_v63 = vld [vmem:[#allocation21_spill] sm:$0xff]  ;;  %vm8672_vm15 = vmmov %vm8656_vm0 }
 0xa33   : > { %v390_v43 = vsel %vm8656_vm0, %v8655_v63, 0.0 }
 0xa34   : > { %2761 = vmin.xlane.f32.xlu0 %v7224_v29  ;;  %v7229_v13 = vcvt.s32.f32 %v2773_v47  ;;  %v8659_v47 = vld [vmem:[#allocation24_spill] sm:$0xff] }
 0xa35   : > { %v396_v3 = vsel %vm8660_vm2, %v8659_v47, 0.0 }
 0xa36   : > { %2776 = vmin.xlane.f32.xlu1 %v7229_v13 }
 0xa38   : > { %385 = vadd.xlane.f32.xlu0 %v384_v25  ;;  %v8663_v25 = vld [vmem:[#allocation26_spill] sm:$0xff] }
 0xa39   : > { %v402_v10 = vsel %vm8664_vm5, %v8663_v25, 0.0 }
 0xa3a   : > { %388 = vadd.xlane.f32.xlu1 %v387_v27  ;;  %v8665_v27 = vld [vmem:[#allocation27_spill] sm:$0xff] }
 0xa3b   : > { %v405_v35 = vsel %vm8666_vm6, %v8665_v27, 0.0  ;;  %vm8678_vm6 = vmmov %vm8662_vm1 }
 0xa3c   : > { %391 = vadd.xlane.f32.xlu0 %v390_v43  ;;  %v8667_v43 = vld [vmem:[#allocation28_spill] sm:$0xff] }
 0xa3d   : > { %v408_v38 = vsel %vm8668_vm10, %v8667_v43, 0.0 }
 0xa40   : > { %394 = vadd.xlane.f32.xlu0 %v393_v17  ;;  %v2547_v17 = vand.u32 65535, %v7046_v40 }
 0xa44   : > { %397 = vadd.xlane.f32.xlu0 %v396_v3  ;;  %v2549_v3 = vcvt.s32.f32 %v2547_v17 }
 0xa48   : > { %400 = vadd.xlane.f32.xlu0 %v399_v56  ;;  %v2562_v56 = vand.u32 65535, %v7057_v34  ;;  %v8671_v34 = vld [vmem:[#allocation30_spill] sm:$0xff] }
 0xa4a   : > { %v2564_v58 = vcvt.s32.f32 %v2562_v56  ;;  %v2607_v56 = vand.u32 65535, %v7090_v28 }
 0xa4c   : > { %403 = vadd.xlane.f32.xlu0 %v402_v10 }
 0xa50   : > { %406 = vadd.xlane.f32.xlu0 %v405_v35  ;;  %v2577_v35 = vand.u32 65535, %v7067_v15  ;;  %v414_v15 = vsel %vm8672_vm15, %v8671_v34, 0.0  ;;  %v8695_v34 = vld [vmem:[#allocation41_spill] sm:$0xff] }
 0xa54   : > { %409 = vadd.xlane.f32.xlu0 %v408_v38  ;;  %v8669_v38 = vld [vmem:[#allocation29_spill] sm:$0xff] }
 0xa55   : > { %v411_v40 = vsel %vm8670_vm13, %v8669_v38, 0.0  ;;  %vm8685_vm13 = vmmov %vm8662_vm1  ;;  %v8696_v38 = vld [vmem:[#allocation111_spill] sm:$0xff] }
 0xaa0   : > { %v7251_v20 = vpop.xlane.xlu0 %2551 }
 0xaa1   : > { %vm2553_vm11 = vcmp.eq.f32.partialorder %v7053_v45, %v7251_v20  ;;  %v2592_v45 = vand.u32 65535, %v7081_v4 }
 0xaa2   : > { %v2554_v6 = vsel %vm2553_vm11, %v2549_v3, inf  ;;  %vm8682_vm11 = vmmov %vm8662_vm1 }
 0xaa3   : > { %2555 = vmin.xlane.f32.xlu0 %v2554_v6  ;;  %v2579_v6 = vcvt.s32.f32 %v2577_v35 }
 0xaa4   : > { %v7256_v10 = vpop.xlane.xlu1 %2566 }
 0xaa5   : > { %vm2568_vm12 = vcmp.eq.f32.partialorder %v7071_v1, %v7256_v10 }
 0xaa6   : > { %v2569_v7 = vsel %vm2568_vm12, %v2564_v58, inf }
 0xaa7   : > { %412 = vadd.xlane.f32.xlu0 %v411_v40  ;;  %v7263_v17 = vpop.xlane.xlu0 %2581  ;;  %2570 = vmin.xlane.f32.xlu1 %v2569_v7  ;;  %v2594_v7 = vcvt.s32.f32 %v2592_v45 }
 0xaa8   : > { %vm2583_vm14 = vcmp.eq.f32.partialorder %v7085_v32, %v7263_v17  ;;  %v8673_v32 = vld [vmem:[#allocation31_spill] sm:$0xff] }
 0xaa9   : > { %v2584_v1 = vsel %vm2583_vm14, %v2579_v6, inf  ;;  %v417_v35 = vsel %vm8674_vm3, %v8673_v32, 0.0  ;;  %v8677_v32 = vld [vmem:[#allocation33_spill] sm:$0xff] }
 0xaaa   : > { %v7270_v3 = vpop.xlane.xlu1 %2596 }
 0xaab   : > { %415 = vadd.xlane.f32.xlu0 %v414_v15  ;;  %vm2598_vm0 = vcmp.eq.f32.partialorder %v7099_v11, %v7270_v3  ;;  %2585 = vmin.xlane.f32.xlu1 %v2584_v1  ;;  %v2609_v11 = vcvt.s32.f32 %v2607_v56  ;;  %v2622_v15 = vand.u32 65535, %v7106_v42  ;;  %v8675_v1 = vld [vmem:[#allocation32_spill] sm:$0xff]  ;;  %v423_v56 = vsel %vm8678_vm6, %v8677_v32, 0.0  ;;  %v8684_v32 = vld [vmem:[#allocation35_spill] sm:$0xff] }
 0xaac   : > { %v7274_v58 = vpop.xlane.xlu0 %2611  ;;  %v2599_v4 = vsel %vm2598_vm0, %v2594_v7, inf  ;;  %v420_v45 = vsel %vm8662_vm1, %v8675_v1, 0.0  ;;  %v8681_v1 = vld [vmem:[#allocation34_spill] sm:$0xff] }
 0xaad   : > { %vm2613_vm2 = vcmp.eq.f32.partialorder %v7110_v39, %v7274_v58 }
 0xaae   : > { %v2614_v28 = vsel %vm2613_vm2, %v2609_v11, inf  ;;  %vm2918_vm2 = vcmask 39936  }
 0xaaf   : > { %418 = vadd.xlane.f32.xlu0 %v417_v35  ;;  %v7281_v40 = vpop.xlane.xlu1 %2626  ;;  %2600 = vmin.xlane.f32.xlu1 %v2599_v4  ;;  %v2624_v35 = vcvt.s32.f32 %v2622_v15  ;;  %v2637_v4 = vand.u32 65535, %v7113_v14  ;;  %v426_v15 = vsel %vm8682_vm11, %v8681_v1, 0.0 }
 0xab0   : > { %v7283_v6 = vpop.xlane.xlu0 %2641  ;;  %vm2628_vm5 = vcmp.eq.f32.partialorder %v7127_v55, %v7281_v40 }
 0xab1   : > { %v2629_v42 = vsel %vm2628_vm5, %v2624_v35, inf  ;;  %vm2643_vm10 = vcmp.eq.f32.partialorder %v7133_v61, %v7283_v6  ;;  %vm3047_vm5 = vcmask 48128  }
 0xab3   : > { %421 = vadd.xlane.f32.xlu0 %v420_v45  ;;  %v7290_v7 = vpop.xlane.xlu1 %2656  ;;  %2615 = vmin.xlane.f32.xlu1 %v2614_v28  ;;  %v2639_v45 = vcvt.s32.f32 %v2637_v4  ;;  %v2652_v28 = vand.u32 65535, %v7130_v22  ;;  %v429_v4 = vsel %vm8685_vm13, %v8684_v32, 0.0  ;;  %v8687_v32 = vld [vmem:[#allocation37_spill] sm:$0xff] }
 0xab4   : > { %v7292_v39 = vpop.xlane.xlu0 %2671  ;;  %vm2658_vm12 = vcmp.eq.f32.partialorder %v7151_v8, %v7290_v7 }
 0xab5   : > { %8676 = vst [vmem:[#allocation98_spill] sm:$0xff] %v7292_v39  ;;  %v2644_v14 = vsel %vm2643_vm10, %v2639_v45, inf  ;;  %vm2673_vm14 = vcmp.eq.f32.partialorder %v7157_v33, %v7292_v39  ;;  %vm8709_vm10 = vmmov %vm8682_vm11 }
 0xab6   : > { %vm8710_vm11 = vmmov %vm8709_vm10 }
 0xab7   : > { %424 = vadd.xlane.f32.xlu0 %v423_v56  ;;  %v7299_v11 = vpop.xlane.xlu1 %2686  ;;  %2630 = vmin.xlane.f32.xlu1 %v2629_v42  ;;  %v2654_v56 = vcvt.s32.f32 %v2652_v28  ;;  %v2667_v42 = vand.u32 65535, %v7136_v12  ;;  %vm8711_vm13 = vmmov %vm8709_vm10 }
 0xab8   : > { %8679 = vst [vmem:[#allocation99_spill] sm:$0xff] %v7299_v11  ;;  %v7301_v55 = vpop.xlane.xlu0 %2701  ;;  %vm2688_vm15 = vcmp.eq.f32.partialorder %v7175_v19, %v7299_v11  ;;  %v8686_v19 = vld [vmem:[#allocation67_spill] sm:$0xff]  ;;  %v8688_v11 = vld [vmem:[#allocation68_spill] sm:$0xff] }
 0xab9   : > { %8680 = vst [vmem:[#allocation55_spill] sm:$0xff] %v7301_v55  ;;  %v2659_v22 = vsel %vm2658_vm12, %v2654_v56, inf  ;;  %vm2703_vm0 = vcmp.eq.f32.partialorder %v7181_v36, %v7301_v55  ;;  %v8692_v55 = vld [vmem:[#allocation70_spill] sm:$0xff] }
 0xabb   : > { %427 = vadd.xlane.f32.xlu0 %v426_v15  ;;  %v7308_v35 = vpop.xlane.xlu1 %2716  ;;  %2645 = vmin.xlane.f32.xlu1 %v2644_v14  ;;  %v2669_v15 = vcvt.s32.f32 %v2667_v42  ;;  %v2682_v14 = vand.u32 65535, %v7154_v9 }
 0xabc   : > { %8683 = vst [vmem:[#allocation20_spill] sm:$0xff] %v7308_v35  ;;  %vm2718_vm3 = vcmp.eq.f32.partialorder %v7199_v5, %v7308_v35  ;;  %v8703_v5 = vld [vmem:[#allocation102_spill] sm:$0xff]  ;;  %v8706_v35 = vld [vmem:[#allocation129_spill] sm:$0xff] }
 0xabd   : > { %v7310_v61 = vpop.xlane.xlu0 %2731  ;;  %v2674_v1 = vsel %vm2673_vm14, %v2669_v15, inf  ;;  %v2684_v56 = vcvt.s32.f32 %v2682_v14  ;;  %v2712_v15 = vand.u32 65535, %v7178_v60  ;;  %v8689_v14 = vld [vmem:[#allocation38_spill] sm:$0xff]  ;;  %vm8716_vm14 = vmmov %vm8709_vm10 }
 0xabe   : > { %vm2733_vm1 = vcmp.eq.f32.partialorder %v7205_v23, %v7310_v61 }
 0xabf   : > { %430 = vadd.xlane.f32.xlu0 %v429_v4  ;;  %v7317_v45 = vpop.xlane.xlu1 %2746  ;;  %2660 = vmin.xlane.f32.xlu1 %v2659_v22  ;;  %v2697_v4 = vand.u32 65535, %v7160_v53  ;;  %v2689_v33 = vsel %vm2688_vm15, %v2684_v56, inf  ;;  %v2852_v53 = vsel %vm2850_vm8, %v8689_v14, %v8688_v11  ;;  %v8691_v56 = vld [vmem:[#allocation39_spill] sm:$0xff] }
 0xac0   : > { %vm2748_vm6 = vcmp.eq.f32.partialorder %v7219_v46, %v7317_v45 }
 0xac1   : > { %v7319_v8 = vpop.xlane.xlu0 %2761  ;;  %v2699_v42 = vcvt.s32.f32 %v2697_v4  ;;  %v8694_v4 = vld [vmem:[#allocation71_spill] sm:$0xff] }
 0xac2   : > { %v2855_v60 = vsel %vm2850_vm8, %v8695_v34, %v8694_v4  ;;  %v2714_v34 = vcvt.s32.f32 %v2712_v15  ;;  %v8702_v4 = vld [vmem:[#allocation56_spill] sm:$0xff]  ;;  %vm2763_vm12 = vcmp.eq.f32.partialorder %v7224_v29, %v7319_v8 }
 0xac3   : > { %v7324_v12 = vpop.xlane.xlu1 %2776  ;;  %2675 = vmin.xlane.f32.xlu1 %v2674_v1  ;;  %v2851_v1 = vsel %vm2850_vm8, %v8687_v32, %v8686_v19  ;;  %v2704_v39 = vsel %vm2703_vm0, %v2699_v42, inf  ;;  %v8697_v19 = vld [vmem:[#allocation112_spill] sm:$0xff]  ;;  %v2727_v42 = vand.u32 65535, %v7184_v57  ;;  %vm8720_vm0 = vmmov %vm8709_vm10 }
 0xac4   : > { %v2868_v32 = vsel %vm2867_vm9, %v2851_v1, %v8696_v38  ;;  %v2869_v11 = vsel %vm2867_vm9, %v2852_v53, %v8697_v19  ;;  %v8701_v1 = vld [vmem:[#allocation101_spill] sm:$0xff]  ;;  %v8704_v19 = vld [vmem:[#allocation59_spill] sm:$0xff]  ;;  %v2719_v57 = vsel %vm2718_vm3, %v2714_v34, inf  ;;  %vm2778_vm15 = vcmp.eq.f32.partialorder %v7229_v13, %v7324_v12  ;;  %vm8726_vm3 = vmmov %vm8720_vm0 }
 0xac5   : > { %v386_v28 = vpop.xlane.xlu0 %385  ;;  %v2885_v53 = vsel %vm2884_vm4, %v2868_v32, %v8701_v1  ;;  %v2729_v34 = vcvt.s32.f32 %v2727_v42 }
 0xac6   : > { %3721 = vrcp.f32 %v386_v28  ;;  %v8690_v28 = vld [vmem:[#allocation69_spill] sm:$0xff] }
 0xac7   : > { %v389_v22 = vpop.xlane.xlu1 %388  ;;  %2690 = vmin.xlane.f32.xlu1 %v2689_v33  ;;  %v2853_v36 = vsel %vm2850_vm8, %v8691_v56, %v8690_v28  ;;  %v8693_v33 = vld [vmem:[#allocation40_spill] sm:$0xff]  ;;  %v8699_v28 = vld [vmem:[#allocation114_spill] sm:$0xff] }
 0xac8   : > { %3723 = vrcp.f32 %v389_v22  ;;  %v2854_v22 = vsel %vm2850_vm8, %v8693_v33, %v8692_v55  ;;  %v8700_v33 = vld [vmem:[#allocation115_spill] sm:$0xff] }
 0xac9   : > { %v392_v9 = vpop.xlane.xlu0 %391  ;;  %v2871_v55 = vsel %vm2867_vm9, %v2854_v22, %v8699_v28  ;;  %v2872_v38 = vsel %vm2867_vm9, %v2855_v60, %v8700_v33  ;;  %v8707_v33 = vld [vmem:[#allocation130_spill] sm:$0xff] }
 0xaca   : > { %3725 = vrcp.f32 %v392_v9  ;;  %v8698_v9 = vld [vmem:[#allocation113_spill] sm:$0xff]  ;;  %v2888_v22 = vsel %vm2884_vm4, %v2871_v55, %v8704_v19 }
 0xacb   : > { %v2870_v14 = vsel %vm2867_vm9, %v2853_v36, %v8698_v9  ;;  %2705 = vmin.xlane.f32.xlu1 %v2704_v39  ;;  %v2886_v36 = vsel %vm2884_vm4, %v2869_v11, %v8702_v4  ;;  %v8705_v9 = vld [vmem:[#allocation128_spill] sm:$0xff] }
 0xacc   : > { %v2887_v39 = vsel %vm2884_vm4, %v2870_v14, %v8703_v5  ;;  %v2902_v15 = vsel %vm2901_vm7, %v2885_v53, %v8705_v9  ;;  %v2903_v60 = vsel %vm2901_vm7, %v2886_v36, %v8706_v35  ;;  %v8708_v14 = vld [vmem:[#allocation131_spill] sm:$0xff]  ;;  %v2742_v53 = vand.u32 65535, %v7202_v54 }
 0xacd   : > { %v395_v56 = vpop.xlane.xlu0 %394  ;;  %v2904_v32 = vsel %vm2901_vm7, %v2887_v39, %v8707_v33  ;;  %v2919_v11 = vsel %vm2918_vm2, %v2902_v15, %v7040_v18  ;;  %v2905_v55 = vsel %vm2901_vm7, %v2888_v22, %v8708_v14  ;;  %v2920_v35 = vsel %vm2918_vm2, %v2903_v60, %v7049_v48 }
 0xace   : > { %3727 = vrcp.f32 %v395_v56  ;;  %v2921_v23 = vsel %vm2918_vm2, %v2904_v32, %v7059_v62  ;;  %v2734_v5 = vsel %vm2733_vm1, %v2729_v34, inf  ;;  %v2757_v39 = vand.u32 65535, %v7208_v59  ;;  %vm8732_vm1 = vmmov %vm8720_vm0 }
 0xacf   : > { %2720 = vmin.xlane.f32.xlu1 %v2719_v57  ;;  %v2922_v54 = vsel %vm2918_vm2, %v2905_v55, %v7069_v31  ;;  %v2744_v15 = vcvt.s32.f32 %v2742_v53  ;;  %v2772_v14 = vand.u32 65535, %v7222_v0  ;;  %v8712_v53 = vld [vmem:[#allocation72_spill] sm:$0xff] }
 0xad0   : > { %v3722_v28 = vpop.eup %3721  ;;  %v2759_v33 = vcvt.s32.f32 %v2757_v39 }
 0xad1   : > { %v2935_v56 = vmul.f32 %v3722_v28, %v2919_v11  ;;  %v398_v1 = vpop.xlane.xlu0 %397  ;;  %v3150_v4 = vmul.f32 %v3722_v28, %v8651_v24  ;;  %v2774_v29 = vcvt.s32.f32 %v2772_v14 }
 0xad2   : > { %3729 = vrcp.f32 %v398_v1  ;;  %v3724_v18 = vpop.eup %3723 }
 0xad3   : > { %v2951_v36 = vmul.f32 16.0, %v2935_v56  ;;  %v2936_v48 = vmul.f32 %v3724_v18, %v2920_v35  ;;  %v3151_v24 = vmul.f32 %v3724_v18, %v8653_v16  ;;  %2735 = vmin.xlane.f32.xlu1 %v2734_v5  ;;  %v3166_v59 = vsel %vm8709_vm10, %v3150_v4, 0.0  ;;  %v8713_v35 = vld [vmem:[#allocation42_spill] sm:$0xff]  ;;  %v8714_v18 = vld [vmem:[#allocation60_spill] sm:$0xff]  ;;  %vm8739_vm10 = vmmov %vm8720_vm0 }
 0xad4   : > { %v3726_v19 = vpop.eup %3725  ;;  %v2749_v16 = vsel %vm2748_vm6, %v2744_v15, inf  ;;  %v2856_v4 = vsel %vm2850_vm8, %v8713_v35, %v8712_v53  ;;  %v8718_v15 = vld [vmem:[#allocation105_spill] sm:$0xff]  ;;  %v8725_v35 = vld [vmem:[#allocation134_spill] sm:$0xff]  ;;  %vm8738_vm6 = vmmov %vm8720_vm0 }
 0xad5   : > { %v3048_v42 = vsel %vm3047_vm5, %v2951_v36, 0.0  ;;  %v2937_v22 = vmul.f32 %v3726_v19, %v2921_v23  ;;  %v3152_v62 = vmul.f32 %v3726_v19, %v8655_v63  ;;  %v401_v9 = vpop.xlane.xlu0 %400  ;;  %v2952_v57 = vmul.f32 16.0, %v2936_v48  ;;  %v8715_v36 = vld [vmem:[#allocation132_spill] sm:$0xff] }
 0xad6   : > { %3064 = vst [vmem:[%s4143_s28] sm:$0xff] %v3048_v42  ;;  %v3167_v31 = vsel %vm8710_vm11, %v3151_v24, 0.0  ;;  %3731 = vrcp.f32 %v401_v9  ;;  %v2889_v23 = vsel %vm2884_vm4, %v2872_v38, %v8714_v18 }
 0xad7   : > { %v3168_v28 = vadd.f32 %v3167_v31, %v3166_v59  ;;  %v2953_v60 = vmul.f32 16.0, %v2937_v22  ;;  %v3049_v63 = vsel %vm3047_vm5, %v2952_v57, 0.0  ;;  %v3169_v11 = vsel %vm8711_vm13, %v3152_v62, 0.0  ;;  %2750 = vmin.xlane.f32.xlu1 %v2749_v16  ;;  %v8719_v57 = vld [vmem:[#allocation133_spill] sm:$0xff] }
 0xad8   : > { %v3728_v32 = vpop.eup %3727  ;;  %3065 = vst [vmem:[%s4143_s28 + $0x8] sm:$0xff] %v3049_v63  ;;  %v2906_v0 = vsel %vm2901_vm7, %v2889_v23, %v8715_v36  ;;  %v8721_v16 = vld [vmem:[#allocation73_spill] sm:$0xff]  ;;  %v8727_v36 = vld [vmem:[#allocation74_spill] sm:$0xff] }
 0xad9   : > { %v3050_v55 = vsel %vm3047_vm5, %v2953_v60, 0.0  ;;  %v3170_v56 = vadd.f32 %v3169_v11, %v3168_v28  ;;  %v2938_v1 = vmul.f32 %v3728_v32, %v2922_v54  ;;  %v3153_v46 = vmul.f32 %v3728_v32, %v8657_v41  ;;  %v404_v34 = vpop.xlane.xlu0 %403  ;;  %v8717_v54 = vld [vmem:[#allocation116_spill] sm:$0xff]  ;;  %v8723_v11 = vld [vmem:[#allocation117_spill] sm:$0xff] }
 0xada   : > { %3066 = vst [vmem:[%s4143_s28 + $0x10] sm:$0xff] %v3050_v55  ;;  %3733 = vrcp.f32 %v404_v34  ;;  %v2764_v41 = vsel %vm2763_vm12, %v2759_v33, inf  ;;  %v2873_v48 = vsel %vm2867_vm9, %v2856_v4, %v8717_v54  ;;  %v2923_v38 = vsel %vm2918_vm2, %v2906_v0, %v7077_v52  ;;  %v8722_v33 = vld [vmem:[#allocation43_spill] sm:$0xff]  ;;  %v8724_v34 = vld [vmem:[#allocation106_spill] sm:$0xff]  ;;  %v8728_v0 = vld [vmem:[#allocation44_spill] sm:$0xff] }
 0xadb   : > { %v2954_v5 = vmul.f32 16.0, %v2938_v1  ;;  %v3171_v39 = vsel %vm8716_vm14, %v3153_v46, 0.0  ;;  %2765 = vmin.xlane.f32.xlu1 %v2764_v41  ;;  %v2890_v59 = vsel %vm2884_vm4, %v2873_v48, %v8718_v15  ;;  %v2779_v28 = vsel %vm2778_vm15, %v2774_v29, inf  ;;  %v8729_v41 = vld [vmem:[#allocation118_spill] sm:$0xff]  ;;  %v8733_v15 = vld [vmem:[#allocation75_spill] sm:$0xff]  ;;  %vm8790_vm12 = vmmov %vm8720_vm0 }
 0xadc   : > { %v3730_v19 = vpop.eup %3729  ;;  %v3172_v24 = vadd.f32 %v3171_v39, %v3170_v56  ;;  %v2907_v52 = vsel %vm2901_vm7, %v2890_v59, %v8719_v57  ;;  %v8734_v59 = vld [vmem:[#allocation45_spill] sm:$0xff]  ;;  %vm8791_vm14 = vmmov %vm8720_vm0 }
 0xadd   : > { %v3051_v42 = vsel %vm3047_vm5, %v2954_v5, 0.0  ;;  %v2939_v22 = vmul.f32 %v3730_v19, %v2923_v38  ;;  %v3154_v62 = vmul.f32 %v3730_v19, %v8659_v47  ;;  %v407_v9 = vpop.xlane.xlu0 %406  ;;  %v2857_v47 = vsel %vm2850_vm8, %v8722_v33, %v8721_v16  ;;  %v8736_v33 = vld [vmem:[#allocation108_spill] sm:$0xff]  ;;  %vm8796_vm15 = vmmov %vm8720_vm0 }
 0xade   : > { %3067 = vst [vmem:[%s4143_s28 + $0x18] sm:$0xff] %v3051_v42  ;;  %3735 = vrcp.f32 %v407_v9  ;;  %v2924_v32 = vsel %vm2918_vm2, %v2907_v52, %v7092_v26  ;;  %v2874_v14 = vsel %vm2867_vm9, %v2857_v47, %v8723_v11  ;;  %v2858_v5 = vsel %vm2850_vm8, %v8728_v0, %v8727_v36  ;;  %v8743_v36 = vld [vmem:[#allocation47_spill] sm:$0xff] }
 0xadf   : > { %v2955_v31 = vmul.f32 16.0, %v2939_v22  ;;  %v3173_v13 = vsel %vm8720_vm0, %v3154_v62, 0.0  ;;  %2780 = vmin.xlane.f32.xlu1 %v2779_v28  ;;  %v2891_v53 = vsel %vm2884_vm4, %v2874_v14, %v8724_v34  ;;  %v2875_v19 = vsel %vm2867_vm9, %v2858_v5, %v8729_v41  ;;  %v8731_v22 = vld [vmem:[#allocation135_spill] sm:$0xff] }
 0xae0   : > { %v3732_v60 = vpop.eup %3731  ;;  %v3174_v63 = vadd.f32 %v3173_v13, %v3172_v24  ;;  %v2908_v26 = vsel %vm2901_vm7, %v2891_v53, %v8725_v35  ;;  %v8730_v24 = vld [vmem:[#allocation63_spill] sm:$0xff]  ;;  %v2859_v57 = vsel %vm2850_vm8, %v8734_v59, %v8733_v15  ;;  %v2558_v5 = vcvt.f32.s32 %v7251_v20  ;;  %v8755_v59 = vld [vmem:[#allocation121_spill] sm:$0xff] }
 0xae1   : > { %v3052_v55 = vsel %vm3047_vm5, %v2955_v31, 0.0  ;;  %v2940_v56 = vmul.f32 %v3732_v60, %v2924_v32  ;;  %v3155_v1 = vmul.f32 %v3732_v60, %v8661_v2  ;;  %v410_v46 = vpop.xlane.xlu0 %409  ;;  %v2925_v2 = vsel %vm2918_vm2, %v2908_v26, %v7097_v49  ;;  %v8737_v32 = vld [vmem:[#allocation136_spill] sm:$0xff]  ;;  %v8746_v41 = vld [vmem:[#allocation79_spill] sm:$0xff] }
 0xae2   : > { %3068 = vst [vmem:[%s4143_s28 + $0x20] sm:$0xff] %v3052_v55  ;;  %3737 = vrcp.f32 %v410_v46  ;;  %v2892_v42 = vsel %vm2884_vm4, %v2875_v19, %v8730_v24  ;;  %v8747_v19 = vld [vmem:[#allocation49_spill] sm:$0xff] }
 0xae3   : > { %v2956_v4 = vmul.f32 16.0, %v2940_v56  ;;  %v3175_v18 = vsel %vm8726_vm3, %v3155_v1, 0.0  ;;  %v2909_v62 = vsel %vm2901_vm7, %v2892_v42, %v8731_v22  ;;  %v8750_v42 = vld [vmem:[#allocation81_spill] sm:$0xff]  ;;  %v8751_v22 = vld [vmem:[#allocation51_spill] sm:$0xff] }
 0xae4   : > { %v3734_v23 = vpop.eup %3733  ;;  %v3176_v39 = vadd.f32 %v3175_v18, %v3174_v63  ;;  %v2926_v52 = vsel %vm2918_vm2, %v2909_v62, %v7115_v37  ;;  %v8741_v18 = vld [vmem:[#allocation46_spill] sm:$0xff]  ;;  %v2865_v62 = vsel %vm2850_vm8, %v8751_v22, %v8750_v42 }
 0xae5   : > { %v3053_v54 = vsel %vm3047_vm5, %v2956_v4, 0.0  ;;  %v2941_v48 = vmul.f32 %v3734_v23, %v2925_v2  ;;  %v3156_v38 = vmul.f32 %v3734_v23, %v8663_v25  ;;  %v8735_v25 = vld [vmem:[#allocation119_spill] sm:$0xff]  ;;  %v8740_v4 = vld [vmem:[#allocation76_spill] sm:$0xff] }
 0xae6   : > { %3069 = vst [vmem:[%s4143_s28 + $0x28] sm:$0xff] %v3053_v54  ;;  %v2876_v13 = vsel %vm2867_vm9, %v2859_v57, %v8735_v25  ;;  %v2860_v23 = vsel %vm2850_vm8, %v8741_v18, %v8740_v4  ;;  %v8745_v2 = vld [vmem:[#allocation48_spill] sm:$0xff]  ;;  %v2863_v54 = vsel %vm2850_vm8, %v8747_v19, %v8746_v41  ;;  %v8757_v25 = vld [vmem:[#allocation123_spill] sm:$0xff]  ;;  %v8765_v4 = vld [vmem:[#allocation66_spill] sm:$0xff] }
 0xae7   : > { %v2957_v9 = vmul.f32 16.0, %v2941_v48  ;;  %v3177_v49 = vsel %vm8732_vm1, %v3156_v38, 0.0  ;;  %v2893_v47 = vsel %vm2884_vm4, %v2876_v13, %v8736_v33  ;;  %v8748_v48 = vld [vmem:[#allocation80_spill] sm:$0xff]  ;;  %v8749_v38 = vld [vmem:[#allocation50_spill] sm:$0xff]  ;;  %v2880_v13 = vsel %vm2867_vm9, %v2863_v54, %v8757_v25  ;;  %v8770_v41 = vld [vmem:[#allocation139_spill] sm:$0xff] }
 0xae8   : > { %v3736_v29 = vpop.eup %3735  ;;  %v3178_v31 = vadd.f32 %v3177_v49, %v3176_v39  ;;  %v2910_v63 = vsel %vm2901_vm7, %v2893_v47, %v8737_v32  ;;  %v2864_v24 = vsel %vm2850_vm8, %v8749_v38, %v8748_v48  ;;  %v8753_v49 = vld [vmem:[#allocation52_spill] sm:$0xff]  ;;  %v8760_v47 = vld [vmem:[#allocation126_spill] sm:$0xff]  ;;  %v8772_v38 = vld [vmem:[#allocation141_spill] sm:$0xff] }
 0xae9   : > { %v3054_v28 = vsel %vm3047_vm5, %v2957_v9, 0.0  ;;  %v2942_v60 = vmul.f32 %v3736_v29, %v2926_v52  ;;  %v3157_v16 = vmul.f32 %v3736_v29, %v8665_v27  ;;  %v2927_v55 = vsel %vm2918_vm2, %v2910_v63, %v7121_v50  ;;  %v8742_v50 = vld [vmem:[#allocation77_spill] sm:$0xff]  ;;  %v8752_v9 = vld [vmem:[#allocation82_spill] sm:$0xff]  ;;  %v8754_v29 = vld [vmem:[#allocation120_spill] sm:$0xff] }
 0xaea   : > { %3070 = vst [vmem:[%s4143_s28 + $0x30] sm:$0xff] %v3054_v28  ;;  %v2861_v0 = vsel %vm2850_vm8, %v8743_v36, %v8742_v50  ;;  %v2866_v20 = vsel %vm2850_vm8, %v8753_v49, %v8752_v9  ;;  %v2877_v15 = vsel %vm2867_vm9, %v2860_v23, %v8754_v29  ;;  %v8756_v52 = vld [vmem:[#allocation122_spill] sm:$0xff]  ;;  %v8758_v28 = vld [vmem:[#allocation124_spill] sm:$0xff]  ;;  %v8767_v36 = vld [vmem:[#allocation127_spill] sm:$0xff]  ;;  %v2588_v49 = vcvt.f32.s32 %v7263_v17 }
 0xaeb   : > { %v2958_v11 = vmul.f32 16.0, %v2942_v60  ;;  %v3179_v37 = vsel %vm8738_vm6, %v3157_v16, 0.0  ;;  %v2878_v57 = vsel %vm2867_vm9, %v2861_v0, %v8755_v59  ;;  %v2881_v60 = vsel %vm2867_vm9, %v2864_v24, %v8758_v28  ;;  %v8759_v16 = vld [vmem:[#allocation125_spill] sm:$0xff]  ;;  %v8766_v23 = vld [vmem:[#allocation110_spill] sm:$0xff]  ;;  %v8771_v54 = vld [vmem:[#allocation140_spill] sm:$0xff] }
 0xaec   : > { %v3738_v14 = vpop.eup %3737  ;;  %v3180_v56 = vadd.f32 %v3179_v37, %v3178_v31  ;;  %v2882_v33 = vsel %vm2867_vm9, %v2865_v62, %v8759_v16  ;;  %v2883_v32 = vsel %vm2867_vm9, %v2866_v20, %v8760_v47  ;;  %v2898_v18 = vsel %vm2884_vm4, %v2881_v60, %v8765_v4  ;;  %v8773_v59 = vld [vmem:[#allocation142_spill] sm:$0xff]  ;;  %v8777_v60 = vld [vmem:[#allocation93_spill] sm:$0xff]  ;;  %vm8800_vm1 = vmmov %vm8720_vm0 }
 0xaed   : > { %v3055_v1 = vsel %vm3047_vm5, %v2958_v11, 0.0  ;;  %v2943_v46 = vmul.f32 %v3738_v14, %v2927_v55  ;;  %v3158_v27 = vmul.f32 %v3738_v14, %v8667_v43  ;;  %v8744_v43 = vld [vmem:[#allocation78_spill] sm:$0xff]  ;;  %v8761_v11 = vld [vmem:[#allocation107_spill] sm:$0xff]  ;;  %v2559_v14 = vshll.u32 %v2558_v5, 16 }
 0xaee   : > { %3071 = vst [vmem:[%s4143_s28 + $0x38] sm:$0xff] %v3055_v1  ;;  %v2862_v39 = vsel %vm2850_vm8, %v8745_v2, %v8744_v43  ;;  %v2894_v37 = vsel %vm2884_vm4, %v2877_v15, %v8761_v11  ;;  %v2573_v55 = vcvt.f32.s32 %v7256_v10  ;;  %v8762_v1 = vld [vmem:[#allocation65_spill] sm:$0xff]  ;;  %v2899_v50 = vsel %vm2884_vm4, %v2882_v33, %v8766_v23  ;;  %v8769_v2 = vld [vmem:[#allocation138_spill] sm:$0xff] }
 0xaef   : > { %v2959_v34 = vmul.f32 16.0, %v2943_v46  ;;  %v3181_v53 = vsel %vm8739_vm10, %v3158_v27, 0.0  ;;  %v2879_v31 = vsel %vm2867_vm9, %v2862_v39, %v8756_v52  ;;  %v2895_v46 = vsel %vm2884_vm4, %v2878_v57, %v8762_v1  ;;  %v8763_v27 = vld [vmem:[#allocation64_spill] sm:$0xff]  ;;  %v8768_v10 = vld [vmem:[#allocation137_spill] sm:$0xff]  ;;  %v8774_v52 = vld [vmem:[#allocation143_spill] sm:$0xff] }
 0xaf0   : > { %v7483_v35 = vadd.f32 %v3181_v53, %v3180_v56  ;;  %v8764_v53 = vld [vmem:[#allocation109_spill] sm:$0xff]  ;;  %v2900_v0 = vsel %vm2884_vm4, %v2883_v32, %v8767_v36  ;;  %v2911_v5 = vsel %vm2901_vm7, %v2894_v37, %v8768_v10  ;;  %v2912_v39 = vsel %vm2901_vm7, %v2895_v46, %v8769_v2  ;;  %v8776_v28 = vld [vmem:[#allocation94_spill] sm:$0xff]  ;;  %vm8804_vm10 = vmmov %vm8720_vm0 }
 0xaf1   : > { %v3056_v26 = vsel %vm3047_vm5, %v2959_v34, 0.0  ;;  %v2896_v34 = vsel %vm2884_vm4, %v2879_v31, %v8763_v27  ;;  %v2915_v24 = vsel %vm2901_vm7, %v2898_v18, %v8772_v38  ;;  %v2574_v22 = vshll.u32 %v2573_v55, 16  ;;  %v8779_v37 = vld [vmem:[#allocation97_spill] sm:$0xff]  ;;  %v8783_v36 = vld [vmem:[#allocation146_spill] sm:$0xff] }
 0xaf2   : > { %3072 = vst [vmem:[%s4143_s28 + $0x40] sm:$0xff] %v3056_v26  ;;  %v2897_v26 = vsel %vm2884_vm4, %v2880_v13, %v8764_v53  ;;  %v2913_v19 = vsel %vm2901_vm7, %v2896_v34, %v8770_v41  ;;  %v2916_v57 = vsel %vm2901_vm7, %v2899_v50, %v8773_v59  ;;  %v2917_v31 = vsel %vm2901_vm7, %v2900_v0, %v8774_v52  ;;  %v8775_v13 = vld [vmem:[#allocation144_spill] sm:$0xff]  ;;  %v8782_v34 = vld [vmem:[#allocation53_spill] sm:$0xff]  ;;  %vm8784_vm4 = vmmov %vm8720_vm0 }
 0xaf3   : > { %v2914_v48 = vsel %vm2901_vm7, %v2897_v26, %v8771_v54  ;;  %v2928_v25 = vsel %vm2918_vm2, %v2911_v5, %v7139_v21  ;;  %v2929_v17 = vsel %vm2918_vm2, %v2912_v39, %v8776_v28  ;;  %v7566_v16 = vsel %vm2918_vm2, %v2913_v19, %v8777_v60  ;;  %vm8785_vm7 = vmmov %vm8720_vm0  ;;  %v8786_v19 = vld [vmem:[#allocation147_spill] sm:$0xff] }
 0xaf4   : > { %v2603_v33 = vcvt.f32.s32 %v7270_v3  ;;  %v7575_v21 = vsel %vm2918_vm2, %v2915_v24, %v8779_v37  ;;  %v2589_v1 = vshll.u32 %v2588_v49, 16  ;;  %v8781_v3 = vld [vmem:[#allocation145_spill] sm:$0xff]  ;;  %v7586_v53 = vsel %vm2918_vm2, %v2917_v31, %v8782_v34 }
 0xaf5   : > { %v2618_v26 = vcvt.f32.s32 %v7274_v58  ;;  %v2633_v50 = vcvt.f32.s32 %v7281_v40  ;;  %v2663_v2 = vcvt.f32.s32 %v7290_v7 }
 0xaf6   : > { %v2604_v23 = vshll.u32 %v2603_v33, 16 }
 0xaf7   : > { %v2619_v38 = vshll.u32 %v2618_v26, 16 }
 0xb30   : > { %v2556_v63 = vpop.xlane.xlu0 %2555 }
 0xb31   : > { %v2557_v56 = vcvt.f32.s32 %v2556_v63  ;;  %v8778_v63 = vld [vmem:[#allocation95_spill] sm:$0xff] }
 0xb32   : > { %v7571_v11 = vsel %vm2918_vm2, %v2914_v48, %v8778_v63 }
 0xb33   : > { %v2560_v43 = vadd.s32 %v2559_v14, %v2557_v56  ;;  %v8780_v14 = vld [vmem:[#allocation96_spill] sm:$0xff] }
 0xb34   : > { %v413_v42 = vpop.xlane.xlu0 %412  ;;  %v2571_v9 = vpop.xlane.xlu1 %2570  ;;  %v7579_v55 = vsel %vm2918_vm2, %v2916_v57, %v8780_v14  ;;  %v8789_v57 = vld [vmem:[#allocation98_spill] sm:$0xff] }
 0xb35   : > { %vm2786_vm8 = vcmp.eq.s32.totalorder %v8346_v30, %v2560_v43  ;;  %v3031_v62 = vsel %vm2918_vm2, %v6785_v51, %v2560_v43  ;;  %3739 = vrcp.f32 %v413_v42  ;;  %v2572_v15 = vcvt.f32.s32 %v2571_v9  ;;  %v8788_v9 = vld [vmem:[#allocation148_spill] sm:$0xff] }
 0xb36   : > { %v3542_v20 = vsel %vm2786_vm8, 1.0, %v8348_v44  ;;  %v3080_v29 = vsel %vm3047_vm5, %v3031_v62, 0  ;;  %v2648_v43 = vcvt.f32.s32 %v7283_v6  ;;  %v2678_v52 = vcvt.f32.s32 %v8789_v57  ;;  %vm8806_vm8 = vmmov %vm8720_vm0 }
 0xb37   : > { %v2834_v51 = vadd.f32 %v3542_v20, %v8775_v13  ;;  %3096 = vst [vmem:[%s4145_s24] sm:$0xff] %v3080_v29  ;;  %v2575_v47 = vadd.s32 %v2574_v22, %v2572_v15  ;;  %v8787_v22 = vld [vmem:[#allocation29_spill] sm:$0xff]  ;;  %v2634_v15 = vshll.u32 %v2633_v50, 16  ;;  %v7609_v13 = vshll.u32 %v2663_v2, 16 }
 0xb38   : > { %v416_v32 = vpop.xlane.xlu0 %415  ;;  %v2586_v56 = vpop.xlane.xlu1 %2585  ;;  %v7606_v59 = vshll.u32 %v2648_v43, 16  ;;  %v7620_v34 = vshll.u32 %v2678_v52, 16 }
 0xb39   : > { %3741 = vrcp.f32 %v416_v32  ;;  %vm2787_vm9 = vcmp.eq.s32.totalorder %v8346_v30, %v2575_v47  ;;  %v3032_v46 = vsel %vm2918_vm2, %v8781_v3, %v2575_v47  ;;  %v2587_v27 = vcvt.f32.s32 %v2586_v56  ;;  %v8792_v32 = vld [vmem:[#allocation149_spill] sm:$0xff]  ;;  %v8793_v56 = vld [vmem:[#allocation30_spill] sm:$0xff]  ;;  %v8794_v3 = vld [vmem:[#allocation151_spill] sm:$0xff] }
 0xb3a   : > { %v3543_v4 = vsel %vm2787_vm9, 1.0, %v8348_v44  ;;  %v3081_v18 = vsel %vm3047_vm5, %v3032_v46, 0  ;;  %v3112_v39 = vsel %vm8784_vm4, %v2834_v51, 0.0  ;;  %vm8807_vm9 = vmmov %vm8720_vm0 }
 0xb3b   : > { %v2835_v0 = vadd.f32 %v3543_v4, %v8783_v36  ;;  %3097 = vst [vmem:[%s4145_s24 + $0x8] sm:$0xff] %v3081_v18  ;;  %v2590_v10 = vadd.s32 %v2589_v1, %v2587_v27 }
 0xb3c   : > { %v419_v5 = vpop.xlane.xlu0 %418  ;;  %v2601_v58 = vpop.xlane.xlu1 %2600 }
 0xb3d   : > { %3743 = vrcp.f32 %v419_v5  ;;  %v3113_v41 = vsel %vm8785_vm7, %v2835_v0, 0.0  ;;  %vm2788_vm11 = vcmp.eq.s32.totalorder %v8346_v30, %v2590_v10  ;;  %v3033_v40 = vsel %vm2918_vm2, %v8786_v19, %v2590_v10  ;;  %v8797_v19 = vld [vmem:[#allocation31_spill] sm:$0xff]  ;;  %vm8810_vm7 = vmmov %vm8720_vm0 }
 0xb3e   : > { %v2602_v54 = vcvt.f32.s32 %v2601_v58  ;;  %v3114_v24 = vadd.f32 %v3113_v41, %v3112_v39  ;;  %v3544_v6 = vsel %vm2788_vm11, 1.0, %v8348_v44  ;;  %v3082_v7 = vsel %vm3047_vm5, %v3033_v40, 0 }
 0xb3f   : > { %v3740_v48 = vpop.eup %3739  ;;  %v2836_v49 = vadd.f32 %v3544_v6, %v8788_v9  ;;  %3098 = vst [vmem:[%s4145_s24 + $0x10] sm:$0xff] %v3082_v7  ;;  %v8799_v7 = vld [vmem:[#allocation150_spill] sm:$0xff] }
 0xb40   : > { %v2944_v42 = vmul.f32 %v3740_v48, %v2928_v25  ;;  %v3159_v62 = vmul.f32 %v3740_v48, %v8787_v22  ;;  %v2605_v20 = vadd.s32 %v2604_v23, %v2602_v54  ;;  %v422_v29 = vpop.xlane.xlu0 %421  ;;  %v2616_v31 = vpop.xlane.xlu1 %2615  ;;  %v8795_v23 = vld [vmem:[#allocation99_spill] sm:$0xff] }
 0xb41   : > { %3745 = vrcp.f32 %v422_v29  ;;  %v3115_v25 = vsel %vm8790_vm12, %v2836_v49, 0.0  ;;  %v2617_v4 = vcvt.f32.s32 %v2616_v31  ;;  %v2693_v50 = vcvt.f32.s32 %v8795_v23  ;;  %vm8814_vm12 = vmmov %vm8720_vm0 }
 0xb42   : > { %v2960_v51 = vmul.f32 16.0, %v2944_v42  ;;  %vm2789_vm13 = vcmp.eq.s32.totalorder %v8346_v30, %v2605_v20  ;;  %v3183_v60 = vsel %vm8791_vm14, %v3159_v62, 0.0  ;;  %v3116_v33 = vadd.f32 %v3115_v25, %v3114_v24  ;;  %v8798_v24 = vld [vmem:[#allocation55_spill] sm:$0xff]  ;;  %vm8817_vm14 = vmmov %vm8720_vm0 }
 0xb43   : > { %v3742_v28 = vpop.eup %3741  ;;  %v3545_v47 = vsel %vm2789_vm13, 1.0, %v8348_v44  ;;  %v3034_v63 = vsel %vm2918_vm2, %v8792_v32, %v2605_v20  ;;  %v3184_v5 = vadd.f32 %v3183_v60, %v7483_v35  ;;  %v2620_v39 = vadd.s32 %v2619_v38, %v2617_v4  ;;  %v8801_v20 = vld [vmem:[#allocation153_spill] sm:$0xff]  ;;  %vm8816_vm13 = vmmov %vm8720_vm0 }
 0xb44   : > { %v3057_v37 = vsel %vm3047_vm5, %v2960_v51, 0.0  ;;  %v2945_v14 = vmul.f32 %v3742_v28, %v2929_v17  ;;  %v3160_v1 = vmul.f32 %v3742_v28, %v8793_v56  ;;  %v2837_v46 = vadd.f32 %v3545_v47, %v8794_v3  ;;  %v425_v27 = vpop.xlane.xlu0 %424  ;;  %v2631_v18 = vpop.xlane.xlu1 %2630  ;;  %v8803_v51 = vld [vmem:[#allocation32_spill] sm:$0xff]  ;;  %v8805_v47 = vld [vmem:[#allocation155_spill] sm:$0xff] }
 0xb45   : > { %3073 = vst [vmem:[%s4143_s28 + $0x48] sm:$0xff] %v3057_v37  ;;  %v3083_v26 = vsel %vm3047_vm5, %v3034_v63, 0  ;;  %3747 = vrcp.f32 %v425_v27  ;;  %v2632_v0 = vcvt.f32.s32 %v2631_v18  ;;  %v2708_v6 = vcvt.f32.s32 %v8798_v24 }
 0xb46   : > { %v2961_v36 = vmul.f32 16.0, %v2945_v14  ;;  %3099 = vst [vmem:[%s4145_s24 + $0x18] sm:$0xff] %v3083_v26  ;;  %v3117_v17 = vsel %vm8796_vm15, %v2837_v46, 0.0  ;;  %v3185_v43 = vsel %vm8720_vm0, %v3160_v1, 0.0  ;;  %vm2790_vm3 = vcmp.eq.s32.totalorder %v8346_v30, %v2620_v39 }
 0xb47   : > { %v3744_v10 = vpop.eup %3743  ;;  %v3118_v2 = vadd.f32 %v3117_v17, %v3116_v33  ;;  %v2635_v54 = vadd.s32 %v2634_v15, %v2632_v0  ;;  %v3035_v35 = vsel %vm2918_vm2, %v8799_v7, %v2620_v39  ;;  %v3186_v38 = vadd.f32 %v3185_v43, %v3184_v5  ;;  %v8802_v15 = vld [vmem:[#allocation152_spill] sm:$0xff]  ;;  %v8808_v17 = vld [vmem:[#allocation33_spill] sm:$0xff]  ;;  %v8809_v5 = vld [vmem:[#allocation154_spill] sm:$0xff] }
 0xb48   : > { %v3058_v58 = vsel %vm3047_vm5, %v2961_v36, 0.0  ;;  %v2946_v41 = vmul.f32 %v3744_v10, %v7566_v16  ;;  %v3161_v40 = vmul.f32 %v3744_v10, %v8797_v19  ;;  %v428_v48 = vpop.xlane.xlu0 %427  ;;  %v2646_v42 = vpop.xlane.xlu1 %2645  ;;  %v3546_v16 = vsel %vm2790_vm3, 1.0, %v8348_v44  ;;  %vm8823_vm3 = vmmov %vm8800_vm1 }
 0xb49   : > { %3074 = vst [vmem:[%s4143_s28 + $0x50] sm:$0xff] %v3058_v58  ;;  %3749 = vrcp.f32 %v428_v48  ;;  %v3084_v62 = vsel %vm3047_vm5, %v3035_v35, 0  ;;  %v2838_v29 = vadd.f32 %v3546_v16, %v8801_v20  ;;  %vm2791_vm6 = vcmp.eq.s32.totalorder %v8346_v30, %v2635_v54  ;;  %v8812_v48 = vld [vmem:[#allocation54_spill] sm:$0xff] }
 0xb4a   : > { %v2962_v22 = vmul.f32 16.0, %v2946_v41  ;;  %v3187_v49 = vsel %vm8800_vm1, %v3161_v40, 0.0  ;;  %3100 = vst [vmem:[%s4145_s24 + $0x20] sm:$0xff] %v3084_v62  ;;  %v3036_v57 = vsel %vm2918_vm2, %v8802_v15, %v2635_v54  ;;  %v3547_v28 = vsel %vm2791_vm6, 1.0, %v8348_v44  ;;  %v8815_v62 = vld [vmem:[#allocation58_spill] sm:$0xff]  ;;  %vm8825_vm6 = vmmov %vm8800_vm1 }
 0xb4b   : > { %v3746_v9 = vpop.eup %3745  ;;  %v3119_v33 = vsel %vm8804_vm10, %v2838_v29, 0.0  ;;  %v2839_v32 = vadd.f32 %v3547_v28, %v8805_v47  ;;  %v3085_v63 = vsel %vm3047_vm5, %v3036_v57, 0  ;;  %v2647_v37 = vcvt.f32.s32 %v2646_v42  ;;  %v8813_v42 = vld [vmem:[#allocation34_spill] sm:$0xff] }
 0xb4c   : > { %v3059_v52 = vsel %vm3047_vm5, %v2962_v22, 0.0  ;;  %v2947_v31 = vmul.f32 %v3746_v9, %v7571_v11  ;;  %v3162_v25 = vmul.f32 %v3746_v9, %v8803_v51  ;;  %v431_v60 = vpop.xlane.xlu0 %430  ;;  %v2661_v14 = vpop.xlane.xlu1 %2660  ;;  %v3188_v56 = vadd.f32 %v3187_v49, %v3186_v38  ;;  %3101 = vst [vmem:[%s4145_s24 + $0x28] sm:$0xff] %v3085_v63 }
 0xb4d   : > { %3075 = vst [vmem:[%s4143_s28 + $0x58] sm:$0xff] %v3059_v52  ;;  %v3120_v1 = vadd.f32 %v3119_v33, %v3118_v2  ;;  %v2662_v11 = vcvt.f32.s32 %v2661_v14  ;;  %v3121_v26 = vsel %vm8807_vm9, %v2839_v32, 0.0  ;;  %v2650_v4 = vadd.s32 %v7606_v59, %v2647_v37 }
 0xb4e   : > { %v2963_v3 = vmul.f32 16.0, %v2947_v31  ;;  %v3189_v27 = vsel %vm8806_vm8, %v3162_v25, 0.0  ;;  %3751 = vrcp.f32 %v431_v60  ;;  %v2694_v10 = vshll.u32 %v2693_v50, 16  ;;  %v8811_v50 = vld [vmem:[#allocation57_spill] sm:$0xff]  ;;  %v8818_v60 = vld [vmem:[#allocation20_spill] sm:$0xff] }
 0xb4f   : > { %v3748_v46 = vpop.eup %3747  ;;  %v3122_v23 = vadd.f32 %v3121_v26, %v3120_v1  ;;  %vm2792_vm4 = vcmp.eq.s32.totalorder %v8346_v30, %v2650_v4  ;;  %v3037_v43 = vsel %vm2918_vm2, %v8809_v5, %v2650_v4  ;;  %v2665_v2 = vadd.s32 %v7609_v13, %v2662_v11  ;;  %v8821_v26 = vld [vmem:[#allocation103_spill] sm:$0xff] }
 0xb50   : > { %v3060_v18 = vsel %vm3047_vm5, %v2963_v3, 0.0  ;;  %v2948_v36 = vmul.f32 %v3748_v46, %v7575_v21  ;;  %v3163_v0 = vmul.f32 %v3748_v46, %v8808_v17  ;;  %v2676_v59 = vpop.xlane.xlu1 %2675  ;;  %v3190_v39 = vadd.f32 %v3189_v27, %v3188_v56  ;;  %v8820_v3 = vld [vmem:[#allocation35_spill] sm:$0xff] }
 0xb51   : > { %3076 = vst [vmem:[%s4143_s28 + $0x60] sm:$0xff] %v3060_v18  ;;  %v3548_v41 = vsel %vm2792_vm4, 1.0, %v8348_v44  ;;  %v3086_v19 = vsel %vm3047_vm5, %v3037_v43, 0  ;;  %vm2793_vm11 = vcmp.eq.s32.totalorder %v8346_v30, %v2665_v2  ;;  %v3038_v13 = vsel %vm2918_vm2, %v8812_v48, %v2665_v2  ;;  %v8822_v18 = vld [vmem:[#allocation61_spill] sm:$0xff]  ;;  %v8824_v2 = vld [vmem:[#allocation36_spill] sm:$0xff] }
 0xb52   : > { %v2964_v58 = vmul.f32 16.0, %v2948_v36  ;;  %v3191_v40 = vsel %vm8810_vm7, %v3163_v0, 0.0  ;;  %v2840_v54 = vadd.f32 %v3548_v41, %v8811_v50  ;;  %3102 = vst [vmem:[%s4145_s24 + $0x30] sm:$0xff] %v3086_v19  ;;  %v3549_v22 = vsel %vm2793_vm11, 1.0, %v8348_v44 }
 0xb53   : > { %v3750_v21 = vpop.eup %3749  ;;  %v2841_v9 = vadd.f32 %v3549_v22, %v8815_v62  ;;  %v3087_v49 = vsel %vm3047_vm5, %v3038_v13, 0  ;;  %v2677_v20 = vcvt.f32.s32 %v2676_v59  ;;  %v2709_v31 = vshll.u32 %v2708_v6, 16  ;;  %v8819_v6 = vld [vmem:[#allocation100_spill] sm:$0xff] }
 0xb54   : > { %v3061_v7 = vsel %vm3047_vm5, %v2964_v58, 0.0  ;;  %v2949_v35 = vmul.f32 %v3750_v21, %v7579_v55  ;;  %v3164_v38 = vmul.f32 %v3750_v21, %v8813_v42  ;;  %v3123_v16 = vsel %vm8814_vm12, %v2840_v54, 0.0  ;;  %v2691_v29 = vpop.xlane.xlu1 %2690  ;;  %3103 = vst [vmem:[%s4145_s24 + $0x38] sm:$0xff] %v3087_v49  ;;  %v8826_v54 = vld [vmem:[#allocation104_spill] sm:$0xff] }
 0xb55   : > { %3077 = vst [vmem:[%s4143_s28 + $0x68] sm:$0xff] %v3061_v7  ;;  %v3124_v15 = vadd.f32 %v3123_v16, %v3122_v23  ;;  %v2692_v55 = vcvt.f32.s32 %v2691_v29  ;;  %v3192_v51 = vadd.f32 %v3191_v40, %v3190_v39  ;;  %v3125_v25 = vsel %vm8817_vm14, %v2841_v9, 0.0 }
 0xb56   : > { %v2965_v57 = vmul.f32 16.0, %v2949_v35  ;;  %v3193_v52 = vsel %vm8816_vm13, %v3164_v38, 0.0  ;;  %v2680_v28 = vadd.s32 %v7620_v34, %v2677_v20  ;;  %v2723_v33 = vcvt.f32.s32 %v8818_v60 }
 0xb57   : > { %v3126_v32 = vadd.f32 %v3125_v25, %v3124_v15  ;;  %v2695_v63 = vadd.s32 %v2694_v10, %v2692_v55  ;;  %v2738_v14 = vcvt.f32.s32 %v7310_v61  ;;  %v3194_v24 = vadd.f32 %v3193_v52, %v3192_v51 }
 0xb58   : > { %v3062_v47 = vsel %vm3047_vm5, %v2965_v57, 0.0  ;;  %v3752_v37 = vpop.eup %3751  ;;  %vm2794_vm15 = vcmp.eq.s32.totalorder %v8346_v30, %v2680_v28  ;;  %v3039_v56 = vsel %vm2918_vm2, %v8819_v6, %v2680_v28  ;;  %v2706_v34 = vpop.xlane.xlu1 %2705  ;;  %v2724_v41 = vshll.u32 %v2723_v33, 16 }
 0xb59   : > { %3078 = vst [vmem:[%s4143_s28 + $0x70] sm:$0xff] %v3062_v47  ;;  %v2950_v1 = vmul.f32 %v3752_v37, %v7586_v53  ;;  %v3165_v11 = vmul.f32 %v3752_v37, %v8820_v3  ;;  %v3550_v46 = vsel %vm2794_vm15, 1.0, %v8348_v44  ;;  %v3088_v27 = vsel %vm3047_vm5, %v3039_v56, 0 }
 0xb5a   : > { %v2842_v4 = vadd.f32 %v3550_v46, %v8821_v26  ;;  %3104 = vst [vmem:[%s4145_s24 + $0x40] sm:$0xff] %v3088_v27  ;;  %vm2795_vm0 = vcmp.eq.s32.totalorder %v8346_v30, %v2695_v63  ;;  %v3040_v23 = vsel %vm2918_vm2, %v8822_v18, %v2695_v63  ;;  %v2707_v36 = vcvt.f32.s32 %v2706_v34 }
 0xb5b   : > { %v2966_v53 = vmul.f32 16.0, %v2950_v1  ;;  %v3195_v17 = vsel %vm8823_vm3, %v3165_v11, 0.0  ;;  %v3551_v0 = vsel %vm2795_vm0, 1.0, %v8348_v44  ;;  %v3089_v10 = vsel %vm3047_vm5, %v3040_v23, 0 }
 0xb5c   : > { %v3196_v5 = vadd.f32 %v3195_v17, %v3194_v24  ;;  %v3127_v43 = vsel %vm8800_vm1, %v2842_v4, 0.0  ;;  %v2843_v59 = vadd.f32 %v3551_v0, %v8824_v2  ;;  %3105 = vst [vmem:[%s4145_s24 + $0x48] sm:$0xff] %v3089_v10  ;;  %v2710_v39 = vadd.s32 %v2709_v31, %v2707_v36  ;;  %v2721_v58 = vpop.xlane.xlu1 %2720 }
 0xb5d   : > { %v3063_v19 = vsel %vm3047_vm5, %v2966_v53, 0.0  ;;  %v3128_v21 = vadd.f32 %v3127_v43, %v3126_v32  ;;  %v2722_v40 = vcvt.f32.s32 %v2721_v58 }
 0xb5e   : > { %3079 = vst [vmem:[%s4143_s28 + $0x78] sm:$0xff] %v3063_v19  ;;  %v3129_v50 = vsel %vm8825_vm6, %v2843_v59, 0.0  ;;  %vm2796_vm10 = vcmp.eq.s32.totalorder %v8346_v30, %v2710_v39  ;;  %v3041_v48 = vsel %vm2918_vm2, %v8826_v54, %v2710_v39  ;;  %v3197_v13 = vrot.slane %v3196_v5, 4  ;;  %s3972_s28 = smov [#allocation2]  }
 0xb5f   : > { %v3130_v7 = vadd.f32 %v3129_v50, %v3128_v21  ;;  %v3552_v35 = vsel %vm2796_vm10, 1.0, %v8348_v44  ;;  %v3090_v42 = vsel %vm3047_vm5, %v3041_v48, 0  ;;  %v2725_v38 = vadd.s32 %v2724_v41, %v2722_v40  ;;  %s3757_s7 = sshll.u32 %s3972_s28, 4  ;;  %s3758_s7 = int_to_ptr.vmem [resolvable:$false] %s3757_s7 }
 0xb60   : > { %s3759_s9 = scalar_lea.vmem %s3758_s7, 4096  ;;  %p3760_p10 = scmp.lt.s32.totalorder %s7718_s29, %s3758_s7 }
 0xb61   : > { %p3761_p11 = scmp.lt.s32.totalorder %s3759_s9, %s3753_s30 }
 0xb63   : > { %p3762_p0 = por %p3761_p11, %p3760_p10 }
 0xb65   : > { %p3763_p1 = pnand %p3762_p0, %p3756_p9 }
 0xb67   : > { %3766 = shalt.err (!%p3763_p1)
}
 0xb68   : > { %s3767_s13 = scalar_lea.hbm %s7716_s12, 2048  ;;  %s3771_s28 = scalar_lea.hbm %s7957_s1, 8192 }
 0xb69   : > { %p3768_p3 = scmp.ne.s32.totalorder %s7716_s12, %s3767_s13  ;;  %p3772_p6 = scmp.lt.u32.totalorder %s7716_s12, %s7957_s1 }
 0xb6a   : > { %p3773_p8 = scmp.lt.u32.totalorder %s3771_s28, %s3767_s13  ;;  %p3775_p10 = scmp.lt.u32.totalorder %s3767_s13, %s7716_s12 }
 0xb6b   : > { %p3769_p2 = pnand %p3768_p3, %p4080_p5 }
 0xb6c   : > { %p3774_p9 = por %p3773_p8, %p3772_p6 }
 0xb6d   : > { %p3770_p4 = pneg %p3769_p2 }
 0xb6e   : > { %p3776_p11 = por %p3775_p10, %p3774_p9 }
 0xb70   : > { %p3777_p0 = pnand %p3776_p11, %p3770_p4 }
 0xb72   : > { %3780 = shalt.err (!%p3777_p0)
}
 0xb73   : > { %s8160_s30 = smov 128   ;;  %s3974_s9 = smov 8   ;;  %v2753_v22 = vcvt.f32.s32 %v7317_v45  ;;  %v8828_v16 = vld [vmem:[#allocation85_spill] sm:$0xff]  ;;  %3106 = vst [vmem:[%s4145_s24 + $0x50] sm:$0xff] %v3090_v42  ;;  %v2736_v9 = vpop.xlane.xlu1 %2735  ;;  %v3198_v49 = vadd.f32 %v3197_v13, %v3196_v5  ;;  %v2739_v20 = vshll.u32 %v2738_v14, 16  ;;  %vm2797_vm8 = vcmp.eq.s32.totalorder %v8346_v30, %v2725_v38  ;;  %v8829_v29 = vld [vmem:[#allocation62_spill] sm:$0xff]  ;;  %vm8830_vm9 = vmmov %vm8800_vm1 }
 0xb74   : > { %3574 = dma.vmem_to_hbm [thread:$0]  (%p4080_p5), %s7718_s29, 2048, %s7716_s12, %s7730_s14, %s8160_s30, %s8160_s30, %s3974_s9   ;;  %v2844_v62 = vadd.f32 %v3552_v35, %v8828_v16  ;;  %v3042_v15 = vsel %vm2918_vm2, %v8829_v29, %v2725_v38  ;;  %v2737_v57 = vcvt.f32.s32 %v2736_v9  ;;  %v3553_v55 = vsel %vm2797_vm8, 1.0, %v8348_v44  ;;  %v8831_v25 = vld [vmem:[#allocation84_spill] sm:$0xff]  ;;  %vm8832_vm4 = vmmov %vm8800_vm1  ;;  %v8833_v37 = vld [vmem:[#allocation83_spill] sm:$0xff] }
 0xb75   : > { %v3091_v45 = vsel %vm3047_vm5, %v3042_v15, 0  ;;  %v3199_v31 = vrot.slane %v3198_v49, 2  ;;  %v2845_v28 = vadd.f32 %v3553_v55, %v8831_v25  ;;  %v2754_v60 = vshll.u32 %v2753_v22, 16  ;;  %v8834_v3 = vld [vmem:[#allocation88_spill] sm:$0xff]  ;;  %s8159_s0 = sshll.u32 %s3955_s22, 4  ;;  %s3286_s20 = sshll.u32 %s4151_s5, 4  ;;  %vm8835_vm12 = vmmov %vm8800_vm1  ;;  %s7796_s20 = int_to_ptr.vmem [resolvable:$true] %s3286_s20 }
 0xb76   : > { %v3131_v52 = vsel %vm8830_vm9, %v2844_v62, 0.0  ;;  %3107 = vst [vmem:[%s4145_s24 + $0x58] sm:$0xff] %v3091_v45  ;;  %v2740_v61 = vadd.s32 %v2739_v20, %v2737_v57  ;;  %v2768_v33 = vcvt.f32.s32 %v7319_v8  ;;  %v3207_v46 = vld [vmem:[%s4151_s5] sm:$0x1]  ;;  %v2783_v26 = vcvt.f32.s32 %v7324_v12  ;;  %v8836_v36 = vld [vmem:[#allocation86_spill] sm:$0xff]  ;;  %s7794_s12 = scalar_lea.hbm %s7960_s4, %s8159_s0  ;;  %v8837_v43 = vld [vmem:[#allocation89_spill] sm:$0xff] }
 0xb77   : > { %v3132_v51 = vadd.f32 %v3131_v52, %v3130_v7  ;;  %v2751_v47 = vpop.xlane.xlu1 %2750  ;;  %v3200_v32 = vadd.f32 %v3199_v31, %v3198_v49  ;;  %v3133_v63 = vsel %vm8832_vm4, %v2845_v28, 0.0  ;;  %vm3205_vm11 = vcmask 516096   ;;  %s8838_s14 = sadd.s32 4294967295, %s3967_s25   ;;  %vm8839_vm14 = vmmov %vm8800_vm1  ;;  %v8840_v19 = vld [vmem:[#allocation87_spill] sm:$0xff]  ;;  %s3225_s28 = scalar_lea.sflag [#allocation8], %s4129_s6 }
 0xb78   : > { %vm2798_vm7 = vcmp.eq.s32.totalorder %v8346_v30, %v2740_v61  ;;  %v3043_v14 = vsel %vm2918_vm2, %v8833_v37, %v2740_v61  ;;  %v2752_v24 = vcvt.f32.s32 %v2751_v47  ;;  %v2769_v27 = vshll.u32 %v2768_v33, 16  ;;  %s7802_s13 = sand.u32 1, %s8838_s14   ;;  %s3781_s7 = scalar_lea.vmem %s7796_s20, 16 }
 0xb79   : > { %v3134_v6 = vadd.f32 %v3133_v63, %v3132_v51  ;;  %v3554_v56 = vsel %vm2798_vm7, 1.0, %v8348_v44  ;;  %v3092_v34 = vsel %vm3047_vm5, %v3043_v14, 0  ;;  %v3201_v1 = vrot.slane %v3200_v32, 1  ;;  %p3782_p1 = scmp.ne.s32.totalorder %s7796_s20, %s3781_s7  ;;  %s3975_s21 = smov [#allocation7]  }
 0xb7a   : > { %v2846_v11 = vadd.f32 %v3554_v56, %v8834_v3  ;;  %3108 = vst [vmem:[%s4145_s24 + $0x60] sm:$0xff] %v3092_v34  ;;  %v2755_v8 = vadd.s32 %v2754_v60, %v2752_v24  ;;  %v2784_v39 = vshll.u32 %v2783_v26, 16  ;;  %s3785_s29 = sshll.u32 %s3975_s21, 4  ;;  %s3786_s29 = int_to_ptr.vmem [resolvable:$false] %s3785_s29 }
 0xb7b   : > { %v2766_v4 = vpop.xlane.xlu1 %2765  ;;  %v3202_v18 = vadd.f32 %v3201_v1, %v3200_v32  ;;  %p3783_p3 = pnand %p3782_p1, %p4115_p12  ;;  %s3787_s14 = scalar_lea.vmem %s3786_s29, 32 }
 0xb7c   : > { %v3135_v23 = vsel %vm8835_vm12, %v2846_v11, 0.0  ;;  %vm2799_vm13 = vcmp.eq.s32.totalorder %v8346_v30, %v2755_v8  ;;  %v3044_v53 = vsel %vm2918_vm2, %v8836_v36, %v2755_v8  ;;  %v2767_v17 = vcvt.f32.s32 %v2766_v4  ;;  %p3788_p4 = scmp.lt.s32.totalorder %s7796_s20, %s3786_s29  ;;  %p3789_p6 = scmp.lt.s32.totalorder %s3787_s14, %s3781_s7 }
 0xb7d   : > { %v3136_v0 = vadd.f32 %v3135_v23, %v3134_v6  ;;  %v3555_v10 = vsel %vm2799_vm13, 1.0, %v8348_v44  ;;  %v3093_v5 = vsel %vm3047_vm5, %v3044_v53, 0  ;;  %v3208_v12 = vadd.f32 %v3207_v46, %v3202_v18  ;;  %p3784_p2 = pneg %p3783_p3 }
 0xb7e   : > { %v2847_v2 = vadd.f32 %v3555_v10, %v8837_v43  ;;  %3109 = vst [vmem:[%s4145_s24 + $0x68] sm:$0xff] %v3093_v5  ;;  %v2770_v59 = vadd.s32 %v2769_v27, %v2767_v17  ;;  %p3790_p8 = por %p3789_p6, %p3788_p4 }
 0xb7f   : > { %v2781_v58 = vpop.xlane.xlu1 %2780  ;;  %3209 = vst.msk [vmem:[%s4151_s5] sm:$0x1] %vm3205_vm11, %v3208_v12 }
 0xb80   : > { %v3137_v41 = vsel %vm8839_vm14, %v2847_v2, 0.0  ;;  %vm2800_vm15 = vcmp.eq.s32.totalorder %v8346_v30, %v2770_v59  ;;  %v3045_v21 = vsel %vm2918_vm2, %v8840_v19, %v2770_v59  ;;  %v2782_v40 = vcvt.f32.s32 %v2781_v58  ;;  %p3791_p9 = pnand %p3790_p8, %p3784_p2 }
 0xb82   : > { %3794 = shalt.err (!%p3791_p9)
}
 0xb83   : > { %s3795_s5 = scalar_lea.hbm %s7794_s12, 16  ;;  %s3799_s21 = scalar_lea.hbm %s7960_s4, 32 }
 0xb84   : > { %p3796_p10 = scmp.ne.s32.totalorder %s7794_s12, %s3795_s5  ;;  %p3800_p1 = scmp.lt.u32.totalorder %s7794_s12, %s7960_s4 }
 0xb85   : > { %p3801_p3 = scmp.lt.u32.totalorder %s3799_s21, %s3795_s5  ;;  %p3803_p4 = scmp.lt.u32.totalorder %s3795_s5, %s7794_s12 }
 0xb86   : > { %p3797_p11 = pnand %p3796_p10, %p4115_p12 }
 0xb87   : > { %p3802_p2 = por %p3801_p3, %p3800_p1 }
 0xb88   : > { %p3798_p0 = pneg %p3797_p11 }
 0xb89   : > { %p3804_p6 = por %p3803_p4, %p3802_p2 }
 0xb8b   : > { %p3805_p8 = pnand %p3804_p6, %p3798_p0 }
 0xb8d   : > { %3808 = shalt.err (!%p3805_p8)
}
 0xb8e   : > { %3577 = dma.vmem_to_hbm [thread:$0]  (%p4115_p12), %s7796_s20, 16, %s7794_s12, %s3225_s28   ;;  %v3138_v50 = vadd.f32 %v3137_v41, %v3136_v0  ;;  %v3556_v54 = vsel %vm2800_vm15, 1.0, %v8348_v44  ;;  %v3094_v48 = vsel %vm3047_vm5, %v3045_v21, 0  ;;  %v8841_v13 = vld [vmem:[#allocation90_spill] sm:$0xff]  ;;  %v2785_v35 = vadd.s32 %v2784_v39, %v2782_v40  ;;  %vm8842_vm0 = vmmov %vm8800_vm1  ;;  %v8843_v38 = vld [vmem:[#allocation91_spill] sm:$0xff] }
 0xb8f   : > { %s3257_s30 = sshll.u32 %s4145_s24, 4  ;;  %v2848_v7 = vadd.f32 %v3556_v54, %v8841_v13  ;;  %3110 = vst [vmem:[%s4145_s24 + $0x70] sm:$0xff] %v3094_v48  ;;  %s8844_s0 = sshll.u32 %s4135_s11, 11  ;;  %s7850_s30 = int_to_ptr.vmem [resolvable:$true] %s3257_s30 }
 0xb90   : > { %vm2801_vm3 = vcmp.eq.s32.totalorder %v8346_v30, %v2785_v35  ;;  %v3046_v22 = vsel %vm2918_vm2, %v8843_v38, %v2785_v35  ;;  %s7848_s28 = scalar_lea.hbm %s7958_s2, %s8844_s0  ;;  %v8845_v30 = vld [vmem:[#allocation92_spill] sm:$0xff]  ;;  %s3216_s7 = scalar_lea.sflag [#allocation5], %s7802_s13 }
 0xb91   : > { %v3139_v42 = vsel %vm8842_vm0, %v2848_v7, 0.0  ;;  %v3557_v62 = vsel %vm2801_vm3, 1.0, %v8348_v44  ;;  %v3095_v9 = vsel %vm3047_vm5, %v3046_v22, 0  ;;  %s3809_s11 = scalar_lea.vmem %s7850_s30, 2048  ;;  %s3976_s14 = smov [#allocation4]  }
 0xb92   : > { %v3140_v16 = vadd.f32 %v3139_v42, %v3138_v50  ;;  %v2849_v49 = vadd.f32 %v3557_v62, %v8845_v30  ;;  %3111 = vst [vmem:[%s4145_s24 + $0x78] sm:$0xff] %v3095_v9  ;;  %p3810_p9 = scmp.ne.s32.totalorder %s7850_s30, %s3809_s11  ;;  %s3813_s5 = sshll.u32 %s3976_s14, 4  ;;  %s3814_s5 = int_to_ptr.vmem [resolvable:$false] %s3813_s5 }
 0xb93   : > { %s3815_s6 = scalar_lea.vmem %s3814_s5, 4096  ;;  %p3816_p0 = scmp.lt.s32.totalorder %s7850_s30, %s3814_s5 }
 0xb94   : > { %p3811_p10 = pnand %p3810_p9, %p4080_p5  ;;  %p3817_p1 = scmp.lt.s32.totalorder %s3815_s6, %s3809_s11 }
 0xb96   : > { %p3812_p11 = pneg %p3811_p10  ;;  %p3818_p3 = por %p3817_p1, %p3816_p0 }
 0xb98   : > { %p3819_p2 = pnand %p3818_p3, %p3812_p11 }
 0xb9a   : > { %3822 = shalt.err (!%p3819_p2)
}
 0xb9b   : > { %s3823_s24 = scalar_lea.hbm %s7848_s28, 2048  ;;  %s3827_s0 = scalar_lea.hbm %s7958_s2, 8192 }
 0xb9c   : > { %p3824_p4 = scmp.ne.s32.totalorder %s7848_s28, %s3823_s24  ;;  %p3828_p9 = scmp.lt.u32.totalorder %s7848_s28, %s7958_s2 }
 0xb9d   : > { %p3829_p10 = scmp.lt.u32.totalorder %s3827_s0, %s3823_s24  ;;  %p3831_p0 = scmp.lt.u32.totalorder %s3823_s24, %s7848_s28 }
 0xb9e   : > { %p3825_p6 = pnand %p3824_p4, %p4080_p5 }
 0xb9f   : > { %p3830_p11 = por %p3829_p10, %p3828_p9 }
 0xba0   : > { %p3826_p8 = pneg %p3825_p6 }
 0xba1   : > { %p3832_p1 = por %p3831_p0, %p3830_p11 }
 0xba3   : > { %p3833_p3 = pnand %p3832_p1, %p3826_p8 }
 0xba5   : > { %3836 = shalt.err (!%p3833_p3)
}
 0xba6   : > { %s8846_s11 = smov 128   ;;  %vm8847_vm2 = vmmov %vm8842_vm0  ;;  %v3203_v51 = vld [vmem:[%s4148_s26] sm:$0x1]  ;;  %s3273_s8 = sshll.u32 %s4148_s26, 4  ;;  %s3274_s8 = int_to_ptr.vmem [resolvable:$true] %s3273_s8 }
 0xba7   : > { %3575 = dma.vmem_to_hbm [thread:$0]  (%p4080_p5), %s7850_s30, 2048, %s7848_s28, %s3216_s7, %s8846_s11, %s8846_s11, %s3974_s9   ;;  %v3141_v44 = vsel %vm8847_vm2, %v2849_v49, 0.0 }
 0xba8   : > { %v3142_v20 = vadd.f32 %v3141_v44, %v3140_v16  ;;  %s8848_s14 = sshll.u32 %s3955_s22, 4  ;;  %s3837_s30 = scalar_lea.vmem %s3274_s8, 16 }
 0xba9   : > { %s7891_s9 = scalar_lea.hbm %s7959_s3, %s8848_s14  ;;  %p3838_p5 = scmp.ne.s32.totalorder %s3274_s8, %s3837_s30 }
 0xbaa   : > { %v3143_v29 = vrot.slane %v3142_v20, 4  ;;  %s3977_s28 = smov [#allocation6]  }
 0xbab   : > { %p3839_p2 = pnand %p3838_p5, %p4115_p12  ;;  %s3841_s24 = sshll.u32 %s3977_s28, 4  ;;  %s3842_s24 = int_to_ptr.vmem [resolvable:$false] %s3841_s24 }
 0xbac   : > { %v3144_v15 = vadd.f32 %v3143_v29, %v3142_v20  ;;  %s3843_s21 = scalar_lea.vmem %s3842_s24, 32  ;;  %p3844_p6 = scmp.lt.s32.totalorder %s3274_s8, %s3842_s24 }
 0xbad   : > { %p3840_p4 = pneg %p3839_p2  ;;  %p3845_p8 = scmp.lt.s32.totalorder %s3843_s21, %s3837_s30 }
 0xbae   : > { %v3145_v57 = vrot.slane %v3144_v15, 2 }
 0xbaf   : > { %p3846_p9 = por %p3845_p8, %p3844_p6 }
 0xbb0   : > { %v3146_v52 = vadd.f32 %v3145_v57, %v3144_v15 }
 0xbb1   : > { %p3847_p10 = pnand %p3846_p9, %p3840_p4 }
 0xbb2   : > { %v3147_v55 = vrot.slane %v3146_v52, 1 }
 0xbb4   : > { %v3148_v45 = vadd.f32 %v3147_v55, %v3146_v52 }
 0xbb6   : > { %v3572_v31 = vtrunc.f32 %v3148_v45 }
 0xbb8   : > { %v3573_v25 = vcvt.f32.s32 %v3572_v31 }
 0xbba   : > { %v3204_v28 = vadd.s32 %v3573_v25, %v3203_v51 }
 0xbbc   : > { %3206 = vst.msk [vmem:[%s4148_s26] sm:$0x1] %vm3205_vm11, %v3204_v28 }
 0xbbd   : > { %3850 = shalt.err (!%p3847_p10)
}
 0xbbe   : > { %s3851_s22 = scalar_lea.hbm %s7891_s9, 16  ;;  %s3855_s0 = scalar_lea.hbm %s7959_s3, 32 }
 0xbbf   : > { %p3852_p11 = scmp.ne.s32.totalorder %s7891_s9, %s3851_s22  ;;  %p3856_p3 = scmp.lt.u32.totalorder %s7891_s9, %s7959_s3 }
 0xbc0   : > { %p3857_p5 = scmp.lt.u32.totalorder %s3855_s0, %s3851_s22  ;;  %p3859_p4 = scmp.lt.u32.totalorder %s3851_s22, %s7891_s9 }
 0xbc1   : > { %p3853_p0 = pnand %p3852_p11, %p4115_p12 }
 0xbc2   : > { %p3858_p2 = por %p3857_p5, %p3856_p3 }
 0xbc3   : > { %p3854_p1 = pneg %p3853_p0 }
 0xbc4   : > { %p3860_p6 = por %p3859_p4, %p3858_p2 }
 0xbc6   : > { %p3861_p8 = pnand %p3860_p6, %p3854_p1 }
 0xbc8   : > { %3864 = shalt.err (!%p3861_p8)
}
 0xbc9   : > { %3576 = dma.vmem_to_hbm [thread:$0]  (%p4115_p12), %s3274_s8, 16, %s7891_s9, %s3216_s7  }
 0xbca PF: > { %p3595_p9 = scmp.ge.s32.totalorder %s3967_s25, 2  ;;  %s3298_s14 = sand.u32 1, %s3939_s18  }
 0xbcb   : > { %s3299_s5 = scalar_lea.sflag [#allocation3], %s3298_s14 }
 0xbcc   : > { %p3583_p10 = pnand %p3595_p9, %p4094_p7 }
 0xbce   : > { %3910 = dma.done.wait (!%p3583_p10), %s3299_s5, 2048  }
 0xbcf   : > { %3912 = vsyncadd (!%p3583_p10), %s3299_s5, 4294965248  ;;  %s8850_s6 = sadd.s32 4294967294, %s3967_s25  }
 0xbd0   : > { %s3307_s30 = sand.u32 1, %s8850_s6  }
 0xbd1   : > { %s3308_s28 = scalar_lea.sflag [#allocation5], %s3307_s30 }
 0xbd2   : > { %3914 = dma.done.wait (!%p3583_p10), %s3308_s28, 2048  }
 0xbd3   : > { %3916 = vsyncadd (!%p3583_p10), %s3308_s28, 4294965248  ;;  %p3589_p12 = pnand %p3595_p9, %p4121_p13 }
 0xbd5   : > { %3918 = dma.done.wait (!%p3589_p12), %s3308_s28, 16  }
 0xbd6   : > { %3920 = vsyncadd (!%p3589_p12), %s3308_s28, 4294967280  ;;  %s3324_s23 = sand.u32 1, %s3927_s15  }
 0xbd7   : > { %s3325_s13 = scalar_lea.sflag [#allocation8], %s3324_s23 }
 0xbd8   : > { %3922 = dma.done.wait (!%p3589_p12), %s3325_s13, 16  }
 0xbd9   : > { %3924 = vsyncadd (!%p3589_p12), %s3325_s13, 4294967280  ;;  %s24_s25 = sadd.s32 1, %s3967_s25   ;;  %s8851_s7 = sld [smem:[#allocation13_spill]] }
 0xbda   : > { %p21_p7 = scmp.ge.s32.totalorder %s24_s25, 6   ;;  %s8852_s20 = sld [smem:[#allocation19_spill]] }
 0xbdb   : > { %s8853_s21 = sld [smem:[#allocation14_spill]]  ;;  %s8854_s22 = sld [smem:[#allocation15_spill]] }
 0xbdc   : > { %s8855_s23 = sld [smem:[#allocation16_spill]]  ;;  %s8856_s24 = sld [smem:[#allocation17_spill]] }
 0xbdd   : > { %s8857_s15 = smov %s3931_s16  ;;  %s8858_s16 = smov %s3935_s17 }
 0xbde   : > { %s8859_s17 = smov %s4108_s27  ;;  %s8860_s18 = smov %s3943_s19 }
 0xbdf   : > { %s8861_s19 = smov %s8851_s7  ;;  %23 = sbr.rel (!%p21_p7) target bundleno = 13 (0xd), region = 112 }
 0xbe6   :  { %3329 = vsyncpa [#allocation3], 1 }
 0xbe7   :  { %3331 = vsyncpa [#allocation3 + $0x1], 1 }
 0xbe8   :  { %3332 = vsyncpa [#allocation5], 1 }
 0xbe9   :  { %3334 = vsyncpa [#allocation5 + $0x1], 1 }
 0xbea   :  { %3335 = vsyncpa [#allocation8], 1 }
 0xbeb   :  { %3337 = vsyncpa [#allocation8 + $0x1], 1 }

</bundles_post_ra>
